<compile_context>
chip_gen: v7x
topology: tpu7x:2x2x1
jax: 0.10.0
libtpu: 0.0.40
codegen_flags: <defaults>
</compile_context>

<pallas_src>
import functools
import math

import numpy as np
import jax
import jax.numpy as jnp
from jax import lax
from jax.experimental import pallas as pl
from jax.experimental.pallas import tpu as pltpu

# ----------------------------- config ---------------------------------------
NUM_AGENTS = 2
K_OBS = 2
HIDDEN_DIM = 32
NUM_HEADS = 2
HIDDEN_CHANNELS = 4
FOV_H, FOV_W = 7, 7
ACTION_DIM = 5
OBS_R = (FOV_H // 2, FOV_W // 2)
EMBED = HIDDEN_DIM * NUM_HEADS            # nn.MultiheadAttention embed dim (64)
HEAD_DIM = EMBED // NUM_HEADS             # 32

ENC_OUT_C = 16                            # channels after the 1x1 conv
NPIX = FOV_H * FOV_W                      # 49 valid spatial positions
CH_STRIDE = 64                            # per-channel feature stride (49 used, rest 0)
IN_DIM = 3 * CH_STRIDE                    # 192   obs features fed to enc0
MID_DIM = HIDDEN_CHANNELS * CH_STRIDE     # 256   hidden conv features
ENC_DIM = ENC_OUT_C * CH_STRIDE           # 1024  lane-expanded GRU input width
GRU_IN = ENC_OUT_C * NPIX                 # 784   true GRU input features
GRU_GATES = 3 * HIDDEN_DIM                # 96
PACK_W = 128                              # lane width of the small-weight slab


# ------------------- host-side weight repacking helpers ----------------------
def conv_toeplitz(w):
    """Expand a Conv2d weight (cout, cin, k, k), padding='same', over the 7x7
    FOV into a block-Toeplitz matmul matrix (cin*CH_STRIDE, cout*CH_STRIDE).
    Feature index = channel*CH_STRIDE + y*FOV_W + x (cols 49..63 of every
    channel block stay zero).  The conv's zero padding is implicit: out-of-range
    taps simply contribute nothing."""
    cout, cin, kh, kw = w.shape
    m = np.zeros((cin * CH_STRIDE, cout * CH_STRIDE), np.float32)
    for co in range(cout):
        for ci in range(cin):
            for y in range(FOV_H):
                for x in range(FOV_W):
                    p = y * FOV_W + x
                    for dy in range(kh):
                        for dx in range(kw):
                            yy, xx = y + dy - kh // 2, x + dx - kw // 2
                            if 0 <= yy < FOV_H and 0 <= xx < FOV_W:
                                m[ci * CH_STRIDE + yy * FOV_W + xx,
                                  co * CH_STRIDE + p] = w[co, ci, dy, dx]
    return m


def _pack_small(entries):
    """Pack many small 2-D arrays (cols <= 128) into one (R, 128) f32 slab with
    8-aligned row offsets; returns (slab, {name: (row_off, rows, cols)})."""
    blocks, offsets, pos = [], {}, 0
    for name, arr in entries:
        arr = np.asarray(arr, np.float32)
        r, c = arr.shape
        buf = np.zeros((r, PACK_W), np.float32)
        buf[:, :c] = arr
        offsets[name] = (pos, r, c)
        blocks.append(buf)
        pos += r
        pad = (-pos) % 8
        if pad:
            blocks.append(np.zeros((pad, PACK_W), np.float32))
            pos += pad
    return np.concatenate(blocks, axis=0), offsets


# ----------------------------- fused kernel ----------------------------------
def _policy_kernel(x_ref, h0_ref, adj_ref, enc0_ref, res_ref, convb_ref, pack_ref,
                   enc1_hbm, wih_hbm,
                   logpi_ref, act_ref, nh_ref,
                   enc1_vmem, wih_vmem, dma_sem,
                   *, offsets, communication):
    # Kick off the two late-use weight DMAs; they overlap with the early conv
    # matmuls and are waited on right before first use.
    enc1_cp = pltpu.make_async_copy(enc1_hbm, enc1_vmem, dma_sem.at[0])
    wih_cp = pltpu.make_async_copy(wih_hbm, wih_vmem, dma_sem.at[1])
    enc1_cp.start()
    wih_cp.start()

    def pw(name):                                   # static slice of the weight slab
        o, r, c = offsets[name]
        return pack_ref[o:o + r, :c]

    def mm(a, w_bf16):                              # bf16 MXU matmul, f32 accumulation
        return jnp.dot(a.astype(jnp.bfloat16), w_bf16,
                       preferred_element_type=jnp.float32)

    def lin(a, wname, bname=None):                  # small f32 matmul from the slab
        y = jnp.dot(a, pw(wname), preferred_element_type=jnp.float32)
        return y if bname is None else y + pw(bname)

    def cbias(layer, width):
        return convb_ref[layer:layer + 1, :width]

    # ---- obs_encoder: Conv3x3+ReLU -> 3 ResBlocks -> Conv1x1+ReLU -----------
    # Each Conv2d is one block-Toeplitz matmul over all N*K_obs samples.
    a = jnp.maximum(mm(x_ref[...], enc0_ref[...]) + cbias(0, MID_DIM), 0.0)
    for rb in range(3):
        t = jnp.maximum(mm(a, res_ref[2 * rb]) + cbias(1 + 2 * rb, MID_DIM), 0.0)
        a = jnp.maximum(mm(t, res_ref[2 * rb + 1]) + cbias(2 + 2 * rb, MID_DIM) + a, 0.0)
    enc1_cp.wait()
    feat = jnp.maximum(mm(a, enc1_vmem[...]) + cbias(7, ENC_DIM), 0.0)   # (B, 1024)

    # ---- GRUCell over all N*K_obs observations at once (gate order r,z,n) ---
    wih_cp.wait()
    h0 = h0_ref[...]
    gi = mm(feat, wih_vmem[...]) + pw("gru_bih")
    gh = lin(h0, "gru_whh", "gru_bhh")
    hd = HIDDEN_DIM
    r_g = jax.nn.sigmoid(gi[:, :hd] + gh[:, :hd])
    z_g = jax.nn.sigmoid(gi[:, hd:2 * hd] + gh[:, hd:2 * hd])
    n_g = jnp.tanh(gi[:, 2 * hd:] + r_g * gh[:, 2 * hd:])
    h1 = (1.0 - z_g) * n_g + z_g * h0                                    # (B, 32)

    # ---- MHABlock: batched over agents; per-agent attention via block mask --
    q = lin(lin(h1, "wq", "bq"), "wiq", "biq")     # outer W_Q then MHA in-proj
    k = lin(lin(h1, "wk", "bk"), "wik", "bik")
    v = lin(lin(h1, "wv", "bv"), "wiv", "biv")
    amask = pw("amask")                                                  # (B, B)
    scale = 1.0 / math.sqrt(HEAD_DIM)
    heads = []
    for hh in range(NUM_HEADS):
        sl = slice(hh * HEAD_DIM, (hh + 1) * HEAD_DIM)
        s = lax.dot_general(q[:, sl], k[:, sl], (((1,), (1,)), ((), ())),
                            preferred_element_type=jnp.float32) * scale
        s = jnp.where(amask > 0.5, s, -1e30)       # mask cross-agent pairs
        s = s - jnp.max(s, axis=-1, keepdims=True)
        e = jnp.exp(s)
        p = e / jnp.sum(e, axis=-1, keepdims=True)
        heads.append(jnp.dot(p, v[:, sl], preferred_element_type=jnp.float32))
    attn = lin(jnp.concatenate(heads, axis=1), "wout", "bout")           # out_proj
    tok = lin(attn, "wo")                                                # W_O: (B, 32)
    # torch.sum(o_i, 0): sum each agent's K_obs tokens (tiny pooling matmul).
    nh = jnp.dot(pw("pool"), tok, preferred_element_type=jnp.float32)    # (N, 32)
    nh_ref[...] = nh

    # ---- CommBlock: 2x GCN over the agent graph ------------------------------
    latent = nh
    if communication:
        adj = adj_ref[...]
        t1 = jnp.maximum(jnp.dot(adj, lin(nh, "g1w", "g1b"),
                                 preferred_element_type=jnp.float32), 0.0)
        # TODO(synk): nn.Dropout(p=0.5) between the GCN layers is identity in eval mode.
        latent = jnp.dot(adj, lin(t1, "g2w", "g2b"),
                         preferred_element_type=jnp.float32)

    # ---- dueling heads: V, A, Q, log-softmax, argmax -------------------------
    V = jnp.sum(latent * pw("vw"), axis=-1, keepdims=True) + pw("vb")    # (N, 1)
    A = lin(latent, "aw", "ab")                                          # (N, 5)
    Q = V + A - jnp.mean(A, axis=-1, keepdims=True)
    m = jnp.max(Q, axis=-1, keepdims=True)
    e = jnp.exp(Q - m)
    logpi_ref[...] = (Q - m) - jnp.log(jnp.sum(e, axis=-1, keepdims=True))
    ids = lax.broadcasted_iota(jnp.int32, Q.shape, 1)
    act_ref[...] = jnp.min(jnp.where(Q == m, ids, jnp.int32(2 ** 31 - 1)),
                           axis=-1, keepdims=True)


# ----------------------------- forward wrapper --------------------------------
def attention_policy_forward(params, obs, hidden, state, communication=True):
    """obs: (num_agents, K_obs, 3, 7, 7); hidden: (K_obs, hidden_dim).
    Returns (action (N,), next_hidden (N, hidden_dim), log_pi (N, action_dim))."""
    n_agents, k_obs = int(obs.shape[0]), int(obs.shape[1])
    B = n_agents * k_obs
    # Host-side layout glue: flatten obs in (c, y, x) order and zero-expand each
    # channel to a 64-wide feature block (matches the Toeplitz weight layout).
    x = obs.astype(jnp.float32).reshape(B, 3, NPIX)
    x = jnp.pad(x, ((0, 0), (0, 0), (0, CH_STRIDE - NPIX))).reshape(B, IN_DIM)
    h0 = jnp.tile(hidden.astype(jnp.float32), (n_agents, 1))  # hidden[k] shared across agents
    adj = (build_adj(state) if communication
           else jnp.zeros((n_agents, n_agents), jnp.float32))

    kern = functools.partial(_policy_kernel, offsets=params["pack_offsets"],
                             communication=communication)
    vmem = pl.BlockSpec(memory_space=pltpu.MemorySpace.VMEM)
    hbm = pl.BlockSpec(memory_space=pl.ANY)

    log_pi, action, next_hidden = pl.pallas_call(
        kern,
        in_specs=[vmem, vmem, vmem, vmem, vmem, vmem, vmem, hbm, hbm],
        out_specs=(vmem, vmem, vmem),
        out_shape=(jax.ShapeDtypeStruct((n_agents, ACTION_DIM), jnp.float32),
                   jax.ShapeDtypeStruct((n_agents, 1), jnp.int32),
                   jax.ShapeDtypeStruct((n_agents, HIDDEN_DIM), jnp.float32)),
        scratch_shapes=[pltpu.VMEM((MID_DIM, ENC_DIM), jnp.bfloat16),   # enc1 Toeplitz
                        pltpu.VMEM((ENC_DIM, GRU_GATES), jnp.bfloat16),  # GRU W_ih
                        pltpu.SemaphoreType.DMA((2,))],
    )(x, h0, adj, params["enc0_w"], params["res_w"], params["conv_b"],
      params["pack"], params["enc1_w"], params["gru_wih"])
    return action[:, 0], next_hidden, log_pi


# ----------------------------- adjacency (host glue) --------------------------
def build_adj(state):
    n = len(state)
    adj = np.zeros((n, n), dtype=np.float32)
    for i in range(n):
        for j in range(i + 1, n):
            if (abs(state[i][0] - state[j][0]) <= OBS_R[0]
                    and abs(state[i][1] - state[j][1]) <= OBS_R[1]):
                adj[i, j] = 1.0
                adj[j, i] = 1.0
    return jnp.asarray(adj)


# ----------------------------- parameter init ---------------------------------
def init_params(key):
    ks = iter(jax.random.split(key, 64))

    def xavier(shape, fan_in, fan_out):
        bound = math.sqrt(6.0 / (fan_in + fan_out))
        return np.asarray(jax.random.uniform(next(ks), shape, jnp.float32, -bound, bound))

    p = {}

    # obs_encoder convs (torch xavier_uniform_, zero bias) -> Toeplitz matmul form.
    enc0 = xavier((HIDDEN_CHANNELS, 3, 3, 3), 3 * 9, HIDDEN_CHANNELS * 9)
    res = [xavier((HIDDEN_CHANNELS, HIDDEN_CHANNELS, 3, 3),
                  HIDDEN_CHANNELS * 9, HIDDEN_CHANNELS * 9) for _ in range(6)]
    enc1 = xavier((ENC_OUT_C, HIDDEN_CHANNELS, 1, 1), HIDDEN_CHANNELS, ENC_OUT_C)
    # TODO(synk): bf16 weight storage (f32 accumulation) drifts ~1e-3 vs. the f32
    # torch reference; validate logits/argmax agreement before deployment.
    p["enc0_w"] = jnp.asarray(conv_toeplitz(enc0), jnp.bfloat16)
    p["res_w"] = jnp.asarray(np.stack([conv_toeplitz(w) for w in res]), jnp.bfloat16)
    p["enc1_w"] = jnp.asarray(conv_toeplitz(enc1), jnp.bfloat16)
    p["conv_b"] = jnp.zeros((8, ENC_DIM), jnp.float32)     # conv biases init to 0

    # GRUCell: torch default U(-1/sqrt(hd), 1/sqrt(hd)), gate order (r, z, n).
    bnd = 1.0 / math.sqrt(HIDDEN_DIM)

    def uni(shape):
        return np.asarray(jax.random.uniform(next(ks), shape, jnp.float32, -bnd, bnd))

    wih = uni((GRU_IN, GRU_GATES))                          # (784, 96), torch W_ih^T
    rows = np.array([c * CH_STRIDE + s for c in range(ENC_OUT_C) for s in range(NPIX)],
                    np.int32)
    wih_big = np.zeros((ENC_DIM, GRU_GATES), np.float32)
    wih_big[rows] = wih                                     # lane-expanded to conv layout
    p["gru_wih"] = jnp.asarray(wih_big, jnp.bfloat16)

    small = [("gru_whh", uni((HIDDEN_DIM, GRU_GATES))),
             ("gru_bih", uni((1, GRU_GATES))),
             ("gru_bhh", uni((1, GRU_GATES)))]

    # MHABlock: outer W_Q/W_K/W_V (hd -> E), MHA in-proj (E -> E each),
    # out_proj (E -> E), W_O (E -> hd, no bias).  Biases zero per torch init.
    for nm in ("wq", "wk", "wv"):
        small.append((nm, xavier((HIDDEN_DIM, EMBED), HIDDEN_DIM, EMBED)))
        small.append(("b" + nm[1], np.zeros((1, EMBED), np.float32)))
    for nm in ("wiq", "wik", "wiv"):
        small.append((nm, xavier((EMBED, EMBED), EMBED, EMBED)))
        small.append(("bi" + nm[2], np.zeros((1, EMBED), np.float32)))
    small.append(("wout", xavier((EMBED, EMBED), EMBED, EMBED)))
    small.append(("bout", np.zeros((1, EMBED), np.float32)))
    small.append(("wo", xavier((EMBED, HIDDEN_DIM), EMBED, HIDDEN_DIM)))

    # CommBlock GCN layers + dueling heads.
    small += [("g1w", xavier((HIDDEN_DIM, HIDDEN_DIM), HIDDEN_DIM, HIDDEN_DIM)),
              ("g1b", np.zeros((1, HIDDEN_DIM), np.float32)),
              ("g2w", xavier((HIDDEN_DIM, HIDDEN_DIM), HIDDEN_DIM, HIDDEN_DIM)),
              ("g2b", np.zeros((1, HIDDEN_DIM), np.float32)),
              ("vw", xavier((1, HIDDEN_DIM), HIDDEN_DIM, 1)),
              ("vb", np.zeros((1, 1), np.float32)),
              ("aw", xavier((HIDDEN_DIM, ACTION_DIM), HIDDEN_DIM, ACTION_DIM)),
              ("ab", np.zeros((1, ACTION_DIM), np.float32))]

    # Kernel constants: per-agent block-diagonal attention mask + K_obs pooling.
    nk = NUM_AGENTS * K_OBS
    amask = np.zeros((nk, nk), np.float32)
    pool = np.zeros((NUM_AGENTS, nk), np.float32)
    for a in range(NUM_AGENTS):
        amask[a * K_OBS:(a + 1) * K_OBS, a * K_OBS:(a + 1) * K_OBS] = 1.0
        pool[a, a * K_OBS:(a + 1) * K_OBS] = 1.0
    small += [("amask", amask), ("pool", pool)]

    slab, offsets = _pack_small(small)
    p["pack"] = jnp.asarray(slab)
    p["pack_offsets"] = offsets                             # static python metadata
    return p


if __name__ == "__main__":
    key = jax.random.PRNGKey(0)
    k_obs_inp, k_hid, k_par = jax.random.split(key, 3)
    obs = jax.random.normal(k_obs_inp, (NUM_AGENTS, K_OBS, 3, FOV_H, FOV_W), jnp.float32)
    hidden = jax.random.normal(k_hid, (K_OBS, HIDDEN_DIM), jnp.float32)
    state = [(0, 0), (2, 1)]                  # agent grid positions (for adjacency)
    params = init_params(k_par)

    action, next_hidden, log_pi = attention_policy_forward(
        params, obs, hidden, state, communication=True)
    jax.block_until_ready((action, next_hidden, log_pi))

    assert action.shape == (NUM_AGENTS,) and action.dtype == jnp.int32
    assert next_hidden.shape == (NUM_AGENTS, HIDDEN_DIM)
    assert log_pi.shape == (NUM_AGENTS, ACTION_DIM)
    assert bool(jnp.all(jnp.isfinite(log_pi)))
    print("KERNEL_OK")
</pallas_src>

<mosaic_0001>
module attributes {stable_mosaic.version = 11 : i64} {
  func.func @_policy_kernel(%arg0: memref<4x192xf32, #tpu.memory_space<vmem>>, %arg1: memref<4x32xf32, #tpu.memory_space<vmem>>, %arg2: memref<2x2xf32, #tpu.memory_space<vmem>>, %arg3: memref<192x256xbf16, #tpu.memory_space<vmem>>, %arg4: memref<6x256x256xbf16, #tpu.memory_space<vmem>>, %arg5: memref<8x1024xf32, #tpu.memory_space<vmem>>, %arg6: memref<672x128xf32, #tpu.memory_space<vmem>>, %arg7: memref<256x1024xbf16, #tpu.memory_space<any>>, %arg8: memref<1024x96xbf16, #tpu.memory_space<any>>, %arg9: memref<2x5xf32, #tpu.memory_space<vmem>>, %arg10: memref<2x1xi32, #tpu.memory_space<vmem>>, %arg11: memref<2x32xf32, #tpu.memory_space<vmem>>, %arg12: memref<256x1024xbf16, #tpu.memory_space<vmem>>, %arg13: memref<1024x96xbf16, #tpu.memory_space<vmem>>, %arg14: memref<2x!tpu.dma_semaphore, #tpu.memory_space<semaphore_mem>>) attributes {dimension_semantics = [], scalar_prefetch = 0 : i64, scratch_operands = 3 : i64, tpu.core_type = #tpu.core_type<tc>} {
    %c0_i32 = arith.constant 0 : i32
    %0 = tpu.memref_slice %arg14[%c0_i32] : memref<2x!tpu.dma_semaphore, #tpu.memory_space<semaphore_mem>> -> memref<1x!tpu.dma_semaphore, #tpu.memory_space<semaphore_mem>>
    %1 = tpu.memref_squeeze %0 : memref<1x!tpu.dma_semaphore, #tpu.memory_space<semaphore_mem>> -> memref<!tpu.dma_semaphore, #tpu.memory_space<semaphore_mem>>
    tpu.enqueue_dma source(%arg7 : memref<256x1024xbf16, #tpu.memory_space<any>>) target(%arg12 : memref<256x1024xbf16, #tpu.memory_space<vmem>>) target_semaphore(%1 : memref<!tpu.dma_semaphore, #tpu.memory_space<semaphore_mem>>)
    %c1_i32 = arith.constant 1 : i32
    %2 = tpu.memref_slice %arg14[%c1_i32] : memref<2x!tpu.dma_semaphore, #tpu.memory_space<semaphore_mem>> -> memref<1x!tpu.dma_semaphore, #tpu.memory_space<semaphore_mem>>
    %3 = tpu.memref_squeeze %2 : memref<1x!tpu.dma_semaphore, #tpu.memory_space<semaphore_mem>> -> memref<!tpu.dma_semaphore, #tpu.memory_space<semaphore_mem>>
    tpu.enqueue_dma source(%arg8 : memref<1024x96xbf16, #tpu.memory_space<any>>) target(%arg13 : memref<1024x96xbf16, #tpu.memory_space<vmem>>) target_semaphore(%3 : memref<!tpu.dma_semaphore, #tpu.memory_space<semaphore_mem>>)
    %c0 = arith.constant 0 : index
    %c0_0 = arith.constant 0 : index
    %4 = vector.load %arg0[%c0, %c0_0] : memref<4x192xf32, #tpu.memory_space<vmem>>, vector<4x192xf32>
    %c0_1 = arith.constant 0 : index
    %c0_2 = arith.constant 0 : index
    %5 = vector.load %arg3[%c0_1, %c0_2] : memref<192x256xbf16, #tpu.memory_space<vmem>>, vector<192x256xbf16>
    %6 = arith.truncf %4 : vector<4x192xf32> to vector<4x192xbf16>
    %cst = arith.constant dense<0.000000e+00> : vector<4x256xf32>
    %7 = tpu.matmul %6, %5, %cst {dimension_numbers = #tpu.dot_dimension_numbers<[1], [0], [0], [1], [0, 0, 1, 1], [], []>} : vector<4x192xbf16>, vector<192x256xbf16>, vector<4x256xf32> -> vector<4x256xf32>
    %c0_3 = arith.constant 0 : index
    %c0_4 = arith.constant 0 : index
    %8 = vector.load %arg5[%c0_3, %c0_4] : memref<8x1024xf32, #tpu.memory_space<vmem>>, vector<1x256xf32>
    %9 = vector.broadcast %8 : vector<1x256xf32> to vector<4x256xf32>
    %10 = arith.addf %7, %9 : vector<4x256xf32>
    %cst_5 = arith.constant 0.000000e+00 : f32
    %11 = vector.broadcast %cst_5 : f32 to vector<4x256xf32>
    %12 = arith.maximumf %10, %11 : vector<4x256xf32>
    %c0_6 = arith.constant 0 : index
    %c0_7 = arith.constant 0 : index
    %c0_8 = arith.constant 0 : index
    %13 = vector.load %arg4[%c0_6, %c0_7, %c0_8] : memref<6x256x256xbf16, #tpu.memory_space<vmem>>, vector<1x256x256xbf16>
    %14 = vector.shape_cast %13 : vector<1x256x256xbf16> to vector<256x256xbf16>
    %15 = arith.truncf %12 : vector<4x256xf32> to vector<4x256xbf16>
    %cst_9 = arith.constant dense<0.000000e+00> : vector<4x256xf32>
    %16 = tpu.matmul %15, %14, %cst_9 {dimension_numbers = #tpu.dot_dimension_numbers<[1], [0], [0], [1], [0, 0, 1, 1], [], []>} : vector<4x256xbf16>, vector<256x256xbf16>, vector<4x256xf32> -> vector<4x256xf32>
    %c1 = arith.constant 1 : index
    %c0_10 = arith.constant 0 : index
    %17 = vector.load %arg5[%c1, %c0_10] : memref<8x1024xf32, #tpu.memory_space<vmem>>, vector<1x256xf32>
    %18 = vector.broadcast %17 : vector<1x256xf32> to vector<4x256xf32>
    %19 = arith.addf %16, %18 : vector<4x256xf32>
    %cst_11 = arith.constant 0.000000e+00 : f32
    %20 = vector.broadcast %cst_11 : f32 to vector<4x256xf32>
    %21 = arith.maximumf %19, %20 : vector<4x256xf32>
    %c1_12 = arith.constant 1 : index
    %c0_13 = arith.constant 0 : index
    %c0_14 = arith.constant 0 : index
    %22 = vector.load %arg4[%c1_12, %c0_13, %c0_14] : memref<6x256x256xbf16, #tpu.memory_space<vmem>>, vector<1x256x256xbf16>
    %23 = vector.shape_cast %22 : vector<1x256x256xbf16> to vector<256x256xbf16>
    %24 = arith.truncf %21 : vector<4x256xf32> to vector<4x256xbf16>
    %cst_15 = arith.constant dense<0.000000e+00> : vector<4x256xf32>
    %25 = tpu.matmul %24, %23, %cst_15 {dimension_numbers = #tpu.dot_dimension_numbers<[1], [0], [0], [1], [0, 0, 1, 1], [], []>} : vector<4x256xbf16>, vector<256x256xbf16>, vector<4x256xf32> -> vector<4x256xf32>
    %c2 = arith.constant 2 : index
    %c0_16 = arith.constant 0 : index
    %26 = vector.load %arg5[%c2, %c0_16] : memref<8x1024xf32, #tpu.memory_space<vmem>>, vector<1x256xf32>
    %27 = vector.broadcast %26 : vector<1x256xf32> to vector<4x256xf32>
    %28 = arith.addf %25, %27 : vector<4x256xf32>
    %29 = arith.addf %28, %12 : vector<4x256xf32>
    %cst_17 = arith.constant 0.000000e+00 : f32
    %30 = vector.broadcast %cst_17 : f32 to vector<4x256xf32>
    %31 = arith.maximumf %29, %30 : vector<4x256xf32>
    %c2_18 = arith.constant 2 : index
    %c0_19 = arith.constant 0 : index
    %c0_20 = arith.constant 0 : index
    %32 = vector.load %arg4[%c2_18, %c0_19, %c0_20] : memref<6x256x256xbf16, #tpu.memory_space<vmem>>, vector<1x256x256xbf16>
    %33 = vector.shape_cast %32 : vector<1x256x256xbf16> to vector<256x256xbf16>
    %34 = arith.truncf %31 : vector<4x256xf32> to vector<4x256xbf16>
    %cst_21 = arith.constant dense<0.000000e+00> : vector<4x256xf32>
    %35 = tpu.matmul %34, %33, %cst_21 {dimension_numbers = #tpu.dot_dimension_numbers<[1], [0], [0], [1], [0, 0, 1, 1], [], []>} : vector<4x256xbf16>, vector<256x256xbf16>, vector<4x256xf32> -> vector<4x256xf32>
    %c3 = arith.constant 3 : index
    %c0_22 = arith.constant 0 : index
    %36 = vector.load %arg5[%c3, %c0_22] : memref<8x1024xf32, #tpu.memory_space<vmem>>, vector<1x256xf32>
    %37 = vector.broadcast %36 : vector<1x256xf32> to vector<4x256xf32>
    %38 = arith.addf %35, %37 : vector<4x256xf32>
    %cst_23 = arith.constant 0.000000e+00 : f32
    %39 = vector.broadcast %cst_23 : f32 to vector<4x256xf32>
    %40 = arith.maximumf %38, %39 : vector<4x256xf32>
    %c3_24 = arith.constant 3 : index
    %c0_25 = arith.constant 0 : index
    %c0_26 = arith.constant 0 : index
    %41 = vector.load %arg4[%c3_24, %c0_25, %c0_26] : memref<6x256x256xbf16, #tpu.memory_space<vmem>>, vector<1x256x256xbf16>
    %42 = vector.shape_cast %41 : vector<1x256x256xbf16> to vector<256x256xbf16>
    %43 = arith.truncf %40 : vector<4x256xf32> to vector<4x256xbf16>
    %cst_27 = arith.constant dense<0.000000e+00> : vector<4x256xf32>
    %44 = tpu.matmul %43, %42, %cst_27 {dimension_numbers = #tpu.dot_dimension_numbers<[1], [0], [0], [1], [0, 0, 1, 1], [], []>} : vector<4x256xbf16>, vector<256x256xbf16>, vector<4x256xf32> -> vector<4x256xf32>
    %c4 = arith.constant 4 : index
    %c0_28 = arith.constant 0 : index
    %45 = vector.load %arg5[%c4, %c0_28] : memref<8x1024xf32, #tpu.memory_space<vmem>>, vector<1x256xf32>
    %46 = vector.broadcast %45 : vector<1x256xf32> to vector<4x256xf32>
    %47 = arith.addf %44, %46 : vector<4x256xf32>
    %48 = arith.addf %47, %31 : vector<4x256xf32>
    %cst_29 = arith.constant 0.000000e+00 : f32
    %49 = vector.broadcast %cst_29 : f32 to vector<4x256xf32>
    %50 = arith.maximumf %48, %49 : vector<4x256xf32>
    %c4_30 = arith.constant 4 : index
    %c0_31 = arith.constant 0 : index
    %c0_32 = arith.constant 0 : index
    %51 = vector.load %arg4[%c4_30, %c0_31, %c0_32] : memref<6x256x256xbf16, #tpu.memory_space<vmem>>, vector<1x256x256xbf16>
    %52 = vector.shape_cast %51 : vector<1x256x256xbf16> to vector<256x256xbf16>
    %53 = arith.truncf %50 : vector<4x256xf32> to vector<4x256xbf16>
    %cst_33 = arith.constant dense<0.000000e+00> : vector<4x256xf32>
    %54 = tpu.matmul %53, %52, %cst_33 {dimension_numbers = #tpu.dot_dimension_numbers<[1], [0], [0], [1], [0, 0, 1, 1], [], []>} : vector<4x256xbf16>, vector<256x256xbf16>, vector<4x256xf32> -> vector<4x256xf32>
    %c5 = arith.constant 5 : index
    %c0_34 = arith.constant 0 : index
    %55 = vector.load %arg5[%c5, %c0_34] : memref<8x1024xf32, #tpu.memory_space<vmem>>, vector<1x256xf32>
    %56 = vector.broadcast %55 : vector<1x256xf32> to vector<4x256xf32>
    %57 = arith.addf %54, %56 : vector<4x256xf32>
    %cst_35 = arith.constant 0.000000e+00 : f32
    %58 = vector.broadcast %cst_35 : f32 to vector<4x256xf32>
    %59 = arith.maximumf %57, %58 : vector<4x256xf32>
    %c5_36 = arith.constant 5 : index
    %c0_37 = arith.constant 0 : index
    %c0_38 = arith.constant 0 : index
    %60 = vector.load %arg4[%c5_36, %c0_37, %c0_38] : memref<6x256x256xbf16, #tpu.memory_space<vmem>>, vector<1x256x256xbf16>
    %61 = vector.shape_cast %60 : vector<1x256x256xbf16> to vector<256x256xbf16>
    %62 = arith.truncf %59 : vector<4x256xf32> to vector<4x256xbf16>
    %cst_39 = arith.constant dense<0.000000e+00> : vector<4x256xf32>
    %63 = tpu.matmul %62, %61, %cst_39 {dimension_numbers = #tpu.dot_dimension_numbers<[1], [0], [0], [1], [0, 0, 1, 1], [], []>} : vector<4x256xbf16>, vector<256x256xbf16>, vector<4x256xf32> -> vector<4x256xf32>
    %c6 = arith.constant 6 : index
    %c0_40 = arith.constant 0 : index
    %64 = vector.load %arg5[%c6, %c0_40] : memref<8x1024xf32, #tpu.memory_space<vmem>>, vector<1x256xf32>
    %65 = vector.broadcast %64 : vector<1x256xf32> to vector<4x256xf32>
    %66 = arith.addf %63, %65 : vector<4x256xf32>
    %67 = arith.addf %66, %50 : vector<4x256xf32>
    %cst_41 = arith.constant 0.000000e+00 : f32
    %68 = vector.broadcast %cst_41 : f32 to vector<4x256xf32>
    %69 = arith.maximumf %67, %68 : vector<4x256xf32>
    %c0_i32_42 = arith.constant 0 : i32
    %70 = tpu.memref_slice %arg14[%c0_i32_42] : memref<2x!tpu.dma_semaphore, #tpu.memory_space<semaphore_mem>> -> memref<1x!tpu.dma_semaphore, #tpu.memory_space<semaphore_mem>>
    %71 = tpu.memref_squeeze %70 : memref<1x!tpu.dma_semaphore, #tpu.memory_space<semaphore_mem>> -> memref<!tpu.dma_semaphore, #tpu.memory_space<semaphore_mem>>
    tpu.wait_dma2 semaphore(%71 : memref<!tpu.dma_semaphore, #tpu.memory_space<semaphore_mem>>) src(%arg7 : memref<256x1024xbf16, #tpu.memory_space<any>>) dst(%arg12 : memref<256x1024xbf16, #tpu.memory_space<vmem>>)
    %c0_43 = arith.constant 0 : index
    %c0_44 = arith.constant 0 : index
    %72 = vector.load %arg12[%c0_43, %c0_44] : memref<256x1024xbf16, #tpu.memory_space<vmem>>, vector<256x1024xbf16>
    %73 = arith.truncf %69 : vector<4x256xf32> to vector<4x256xbf16>
    %cst_45 = arith.constant dense<0.000000e+00> : vector<4x1024xf32>
    %74 = tpu.matmul %73, %72, %cst_45 {dimension_numbers = #tpu.dot_dimension_numbers<[1], [0], [0], [1], [0, 0, 1, 1], [], []>} : vector<4x256xbf16>, vector<256x1024xbf16>, vector<4x1024xf32> -> vector<4x1024xf32>
    %c7 = arith.constant 7 : index
    %c0_46 = arith.constant 0 : index
    %75 = vector.load %arg5[%c7, %c0_46] : memref<8x1024xf32, #tpu.memory_space<vmem>>, vector<1x1024xf32>
    %76 = vector.broadcast %75 : vector<1x1024xf32> to vector<4x1024xf32>
    %77 = arith.addf %74, %76 : vector<4x1024xf32>
    %cst_47 = arith.constant 0.000000e+00 : f32
    %78 = vector.broadcast %cst_47 : f32 to vector<4x1024xf32>
    %79 = arith.maximumf %77, %78 : vector<4x1024xf32>
    %c1_i32_48 = arith.constant 1 : i32
    %80 = tpu.memref_slice %arg14[%c1_i32_48] : memref<2x!tpu.dma_semaphore, #tpu.memory_space<semaphore_mem>> -> memref<1x!tpu.dma_semaphore, #tpu.memory_space<semaphore_mem>>
    %81 = tpu.memref_squeeze %80 : memref<1x!tpu.dma_semaphore, #tpu.memory_space<semaphore_mem>> -> memref<!tpu.dma_semaphore, #tpu.memory_space<semaphore_mem>>
    tpu.wait_dma2 semaphore(%81 : memref<!tpu.dma_semaphore, #tpu.memory_space<semaphore_mem>>) src(%arg8 : memref<1024x96xbf16, #tpu.memory_space<any>>) dst(%arg13 : memref<1024x96xbf16, #tpu.memory_space<vmem>>)
    %c0_49 = arith.constant 0 : index
    %c0_50 = arith.constant 0 : index
    %82 = vector.load %arg1[%c0_49, %c0_50] : memref<4x32xf32, #tpu.memory_space<vmem>>, vector<4x32xf32>
    %c0_51 = arith.constant 0 : index
    %c0_52 = arith.constant 0 : index
    %83 = vector.load %arg13[%c0_51, %c0_52] : memref<1024x96xbf16, #tpu.memory_space<vmem>>, vector<1024x96xbf16>
    %84 = arith.truncf %79 : vector<4x1024xf32> to vector<4x1024xbf16>
    %cst_53 = arith.constant dense<0.000000e+00> : vector<4x96xf32>
    %85 = tpu.matmul %84, %83, %cst_53 {dimension_numbers = #tpu.dot_dimension_numbers<[1], [0], [0], [1], [0, 0, 1, 1], [], []>} : vector<4x1024xbf16>, vector<1024x96xbf16>, vector<4x96xf32> -> vector<4x96xf32>
    %c32 = arith.constant 32 : index
    %c0_54 = arith.constant 0 : index
    %86 = vector.load %arg6[%c32, %c0_54] : memref<672x128xf32, #tpu.memory_space<vmem>>, vector<1x96xf32>
    %87 = vector.broadcast %86 : vector<1x96xf32> to vector<4x96xf32>
    %88 = arith.addf %85, %87 : vector<4x96xf32>
    %c0_55 = arith.constant 0 : index
    %c0_56 = arith.constant 0 : index
    %89 = vector.load %arg6[%c0_55, %c0_56] : memref<672x128xf32, #tpu.memory_space<vmem>>, vector<32x96xf32>
    %cst_57 = arith.constant dense<0.000000e+00> : vector<4x96xf32>
    %90 = tpu.matmul %82, %89, %cst_57 {dimension_numbers = #tpu.dot_dimension_numbers<[1], [0], [0], [1], [0, 0, 1, 1], [], []>} : vector<4x32xf32>, vector<32x96xf32>, vector<4x96xf32> -> vector<4x96xf32>
    %c40 = arith.constant 40 : index
    %c0_58 = arith.constant 0 : index
    %91 = vector.load %arg6[%c40, %c0_58] : memref<672x128xf32, #tpu.memory_space<vmem>>, vector<1x96xf32>
    %92 = vector.broadcast %91 : vector<1x96xf32> to vector<4x96xf32>
    %93 = arith.addf %90, %92 : vector<4x96xf32>
    %94 = vector.extract_strided_slice %88 {offsets = [0, 0], sizes = [4, 32], strides = [1, 1]} : vector<4x96xf32> to vector<4x32xf32>
    %95 = vector.extract_strided_slice %93 {offsets = [0, 0], sizes = [4, 32], strides = [1, 1]} : vector<4x96xf32> to vector<4x32xf32>
    %96 = arith.addf %94, %95 : vector<4x32xf32>
    %97 = arith.negf %96 : vector<4x32xf32>
    %98 = math.exp %97 : vector<4x32xf32>
    %cst_59 = arith.constant 1.000000e+00 : f32
    %99 = vector.broadcast %cst_59 : f32 to vector<4x32xf32>
    %100 = arith.addf %99, %98 : vector<4x32xf32>
    %101 = arith.divf %99, %100 : vector<4x32xf32>
    %102 = vector.extract_strided_slice %88 {offsets = [0, 32], sizes = [4, 32], strides = [1, 1]} : vector<4x96xf32> to vector<4x32xf32>
    %103 = vector.extract_strided_slice %93 {offsets = [0, 32], sizes = [4, 32], strides = [1, 1]} : vector<4x96xf32> to vector<4x32xf32>
    %104 = arith.addf %102, %103 : vector<4x32xf32>
    %105 = arith.negf %104 : vector<4x32xf32>
    %106 = math.exp %105 : vector<4x32xf32>
    %cst_60 = arith.constant 1.000000e+00 : f32
    %107 = vector.broadcast %cst_60 : f32 to vector<4x32xf32>
    %108 = arith.addf %107, %106 : vector<4x32xf32>
    %109 = arith.divf %107, %108 : vector<4x32xf32>
    %110 = vector.extract_strided_slice %88 {offsets = [0, 64], sizes = [4, 32], strides = [1, 1]} : vector<4x96xf32> to vector<4x32xf32>
    %111 = vector.extract_strided_slice %93 {offsets = [0, 64], sizes = [4, 32], strides = [1, 1]} : vector<4x96xf32> to vector<4x32xf32>
    %112 = arith.mulf %101, %111 : vector<4x32xf32>
    %113 = arith.addf %110, %112 : vector<4x32xf32>
    %114 = math.tanh %113 : vector<4x32xf32>
    %cst_61 = arith.constant 1.000000e+00 : f32
    %115 = vector.broadcast %cst_61 : f32 to vector<4x32xf32>
    %116 = arith.subf %115, %109 : vector<4x32xf32>
    %117 = arith.mulf %116, %114 : vector<4x32xf32>
    %118 = arith.mulf %109, %82 : vector<4x32xf32>
    %119 = arith.addf %117, %118 : vector<4x32xf32>
    %c48 = arith.constant 48 : index
    %c0_62 = arith.constant 0 : index
    %120 = vector.load %arg6[%c48, %c0_62] : memref<672x128xf32, #tpu.memory_space<vmem>>, vector<32x64xf32>
    %cst_63 = arith.constant dense<0.000000e+00> : vector<4x64xf32>
    %121 = tpu.matmul %119, %120, %cst_63 {dimension_numbers = #tpu.dot_dimension_numbers<[1], [0], [0], [1], [0, 0, 1, 1], [], []>} : vector<4x32xf32>, vector<32x64xf32>, vector<4x64xf32> -> vector<4x64xf32>
    %c80 = arith.constant 80 : index
    %c0_64 = arith.constant 0 : index
    %122 = vector.load %arg6[%c80, %c0_64] : memref<672x128xf32, #tpu.memory_space<vmem>>, vector<1x64xf32>
    %123 = vector.broadcast %122 : vector<1x64xf32> to vector<4x64xf32>
    %124 = arith.addf %121, %123 : vector<4x64xf32>
    %c168 = arith.constant 168 : index
    %c0_65 = arith.constant 0 : index
    %125 = vector.load %arg6[%c168, %c0_65] : memref<672x128xf32, #tpu.memory_space<vmem>>, vector<64x64xf32>
    %cst_66 = arith.constant dense<0.000000e+00> : vector<4x64xf32>
    %126 = tpu.matmul %124, %125, %cst_66 {dimension_numbers = #tpu.dot_dimension_numbers<[1], [0], [0], [1], [0, 0, 1, 1], [], []>} : vector<4x64xf32>, vector<64x64xf32>, vector<4x64xf32> -> vector<4x64xf32>
    %c232 = arith.constant 232 : index
    %c0_67 = arith.constant 0 : index
    %127 = vector.load %arg6[%c232, %c0_67] : memref<672x128xf32, #tpu.memory_space<vmem>>, vector<1x64xf32>
    %128 = vector.broadcast %127 : vector<1x64xf32> to vector<4x64xf32>
    %129 = arith.addf %126, %128 : vector<4x64xf32>
    %c88 = arith.constant 88 : index
    %c0_68 = arith.constant 0 : index
    %130 = vector.load %arg6[%c88, %c0_68] : memref<672x128xf32, #tpu.memory_space<vmem>>, vector<32x64xf32>
    %cst_69 = arith.constant dense<0.000000e+00> : vector<4x64xf32>
    %131 = tpu.matmul %119, %130, %cst_69 {dimension_numbers = #tpu.dot_dimension_numbers<[1], [0], [0], [1], [0, 0, 1, 1], [], []>} : vector<4x32xf32>, vector<32x64xf32>, vector<4x64xf32> -> vector<4x64xf32>
    %c120 = arith.constant 120 : index
    %c0_70 = arith.constant 0 : index
    %132 = vector.load %arg6[%c120, %c0_70] : memref<672x128xf32, #tpu.memory_space<vmem>>, vector<1x64xf32>
    %133 = vector.broadcast %132 : vector<1x64xf32> to vector<4x64xf32>
    %134 = arith.addf %131, %133 : vector<4x64xf32>
    %c240 = arith.constant 240 : index
    %c0_71 = arith.constant 0 : index
    %135 = vector.load %arg6[%c240, %c0_71] : memref<672x128xf32, #tpu.memory_space<vmem>>, vector<64x64xf32>
    %cst_72 = arith.constant dense<0.000000e+00> : vector<4x64xf32>
    %136 = tpu.matmul %134, %135, %cst_72 {dimension_numbers = #tpu.dot_dimension_numbers<[1], [0], [0], [1], [0, 0, 1, 1], [], []>} : vector<4x64xf32>, vector<64x64xf32>, vector<4x64xf32> -> vector<4x64xf32>
    %c304 = arith.constant 304 : index
    %c0_73 = arith.constant 0 : index
    %137 = vector.load %arg6[%c304, %c0_73] : memref<672x128xf32, #tpu.memory_space<vmem>>, vector<1x64xf32>
    %138 = vector.broadcast %137 : vector<1x64xf32> to vector<4x64xf32>
    %139 = arith.addf %136, %138 : vector<4x64xf32>
    %c128 = arith.constant 128 : index
    %c0_74 = arith.constant 0 : index
    %140 = vector.load %arg6[%c128, %c0_74] : memref<672x128xf32, #tpu.memory_space<vmem>>, vector<32x64xf32>
    %cst_75 = arith.constant dense<0.000000e+00> : vector<4x64xf32>
    %141 = tpu.matmul %119, %140, %cst_75 {dimension_numbers = #tpu.dot_dimension_numbers<[1], [0], [0], [1], [0, 0, 1, 1], [], []>} : vector<4x32xf32>, vector<32x64xf32>, vector<4x64xf32> -> vector<4x64xf32>
    %c160 = arith.constant 160 : index
    %c0_76 = arith.constant 0 : index
    %142 = vector.load %arg6[%c160, %c0_76] : memref<672x128xf32, #tpu.memory_space<vmem>>, vector<1x64xf32>
    %143 = vector.broadcast %142 : vector<1x64xf32> to vector<4x64xf32>
    %144 = arith.addf %141, %143 : vector<4x64xf32>
    %c312 = arith.constant 312 : index
    %c0_77 = arith.constant 0 : index
    %145 = vector.load %arg6[%c312, %c0_77] : memref<672x128xf32, #tpu.memory_space<vmem>>, vector<64x64xf32>
    %cst_78 = arith.constant dense<0.000000e+00> : vector<4x64xf32>
    %146 = tpu.matmul %144, %145, %cst_78 {dimension_numbers = #tpu.dot_dimension_numbers<[1], [0], [0], [1], [0, 0, 1, 1], [], []>} : vector<4x64xf32>, vector<64x64xf32>, vector<4x64xf32> -> vector<4x64xf32>
    %c376 = arith.constant 376 : index
    %c0_79 = arith.constant 0 : index
    %147 = vector.load %arg6[%c376, %c0_79] : memref<672x128xf32, #tpu.memory_space<vmem>>, vector<1x64xf32>
    %148 = vector.broadcast %147 : vector<1x64xf32> to vector<4x64xf32>
    %149 = arith.addf %146, %148 : vector<4x64xf32>
    %c656 = arith.constant 656 : index
    %c0_80 = arith.constant 0 : index
    %150 = vector.load %arg6[%c656, %c0_80] : memref<672x128xf32, #tpu.memory_space<vmem>>, vector<4x4xf32>
    %151 = vector.extract_strided_slice %129 {offsets = [0, 0], sizes = [4, 32], strides = [1, 1]} : vector<4x64xf32> to vector<4x32xf32>
    %152 = vector.extract_strided_slice %139 {offsets = [0, 0], sizes = [4, 32], strides = [1, 1]} : vector<4x64xf32> to vector<4x32xf32>
    %cst_81 = arith.constant dense<0.000000e+00> : vector<4x4xf32>
    %153 = tpu.matmul %151, %152, %cst_81 {dimension_numbers = #tpu.dot_dimension_numbers<[1], [1], [0], [0], [0, 0, 1, 0], [], []>} : vector<4x32xf32>, vector<4x32xf32>, vector<4x4xf32> -> vector<4x4xf32>
    %cst_82 = arith.constant 0.176776692 : f32
    %154 = vector.broadcast %cst_82 : f32 to vector<4x4xf32>
    %155 = arith.mulf %153, %154 : vector<4x4xf32>
    %cst_83 = arith.constant 5.000000e-01 : f32
    %156 = vector.broadcast %cst_83 : f32 to vector<4x4xf32>
    %157 = arith.cmpf ogt, %150, %156 : vector<4x4xf32>
    %cst_84 = arith.constant -1.000000e+30 : f32
    %158 = vector.broadcast %cst_84 : f32 to vector<4x4xf32>
    %159 = arith.select %157, %155, %158 : vector<4x4xi1>, vector<4x4xf32>
    %cst_85 = arith.constant dense<0xFF800000> : vector<4xf32>
    %160 = vector.multi_reduction <maximumf>, %159, %cst_85 [1] : vector<4x4xf32> to vector<4xf32>
    %161 = vector.shape_cast %160 : vector<4xf32> to vector<4x1xf32>
    %162 = vector.broadcast %161 : vector<4x1xf32> to vector<4x4xf32>
    %163 = arith.subf %159, %162 : vector<4x4xf32>
    %164 = math.exp %163 : vector<4x4xf32>
    %cst_86 = arith.constant dense<0.000000e+00> : vector<4xf32>
    %165 = vector.multi_reduction <add>, %164, %cst_86 [1] : vector<4x4xf32> to vector<4xf32>
    %166 = vector.shape_cast %165 : vector<4xf32> to vector<4x1xf32>
    %167 = vector.broadcast %166 : vector<4x1xf32> to vector<4x4xf32>
    %168 = arith.divf %164, %167 : vector<4x4xf32>
    %169 = vector.extract_strided_slice %149 {offsets = [0, 0], sizes = [4, 32], strides = [1, 1]} : vector<4x64xf32> to vector<4x32xf32>
    %cst_87 = arith.constant dense<0.000000e+00> : vector<4x32xf32>
    %170 = tpu.matmul %168, %169, %cst_87 {dimension_numbers = #tpu.dot_dimension_numbers<[1], [0], [0], [1], [0, 0, 1, 1], [], []>} : vector<4x4xf32>, vector<4x32xf32>, vector<4x32xf32> -> vector<4x32xf32>
    %171 = vector.extract_strided_slice %129 {offsets = [0, 32], sizes = [4, 32], strides = [1, 1]} : vector<4x64xf32> to vector<4x32xf32>
    %172 = vector.extract_strided_slice %139 {offsets = [0, 32], sizes = [4, 32], strides = [1, 1]} : vector<4x64xf32> to vector<4x32xf32>
    %cst_88 = arith.constant dense<0.000000e+00> : vector<4x4xf32>
    %173 = tpu.matmul %171, %172, %cst_88 {dimension_numbers = #tpu.dot_dimension_numbers<[1], [1], [0], [0], [0, 0, 1, 0], [], []>} : vector<4x32xf32>, vector<4x32xf32>, vector<4x4xf32> -> vector<4x4xf32>
    %cst_89 = arith.constant 0.176776692 : f32
    %174 = vector.broadcast %cst_89 : f32 to vector<4x4xf32>
    %175 = arith.mulf %173, %174 : vector<4x4xf32>
    %cst_90 = arith.constant 5.000000e-01 : f32
    %176 = vector.broadcast %cst_90 : f32 to vector<4x4xf32>
    %177 = arith.cmpf ogt, %150, %176 : vector<4x4xf32>
    %cst_91 = arith.constant -1.000000e+30 : f32
    %178 = vector.broadcast %cst_91 : f32 to vector<4x4xf32>
    %179 = arith.select %177, %175, %178 : vector<4x4xi1>, vector<4x4xf32>
    %cst_92 = arith.constant dense<0xFF800000> : vector<4xf32>
    %180 = vector.multi_reduction <maximumf>, %179, %cst_92 [1] : vector<4x4xf32> to vector<4xf32>
    %181 = vector.shape_cast %180 : vector<4xf32> to vector<4x1xf32>
    %182 = vector.broadcast %181 : vector<4x1xf32> to vector<4x4xf32>
    %183 = arith.subf %179, %182 : vector<4x4xf32>
    %184 = math.exp %183 : vector<4x4xf32>
    %cst_93 = arith.constant dense<0.000000e+00> : vector<4xf32>
    %185 = vector.multi_reduction <add>, %184, %cst_93 [1] : vector<4x4xf32> to vector<4xf32>
    %186 = vector.shape_cast %185 : vector<4xf32> to vector<4x1xf32>
    %187 = vector.broadcast %186 : vector<4x1xf32> to vector<4x4xf32>
    %188 = arith.divf %184, %187 : vector<4x4xf32>
    %189 = vector.extract_strided_slice %149 {offsets = [0, 32], sizes = [4, 32], strides = [1, 1]} : vector<4x64xf32> to vector<4x32xf32>
    %cst_94 = arith.constant dense<0.000000e+00> : vector<4x32xf32>
    %190 = tpu.matmul %188, %189, %cst_94 {dimension_numbers = #tpu.dot_dimension_numbers<[1], [0], [0], [1], [0, 0, 1, 1], [], []>} : vector<4x4xf32>, vector<4x32xf32>, vector<4x32xf32> -> vector<4x32xf32>
    %191 = tpu.concatenate %170, %190 in 1 : vector<4x32xf32>, vector<4x32xf32> -> vector<4x64xf32>
    %c384 = arith.constant 384 : index
    %c0_95 = arith.constant 0 : index
    %192 = vector.load %arg6[%c384, %c0_95] : memref<672x128xf32, #tpu.memory_space<vmem>>, vector<64x64xf32>
    %cst_96 = arith.constant dense<0.000000e+00> : vector<4x64xf32>
    %193 = tpu.matmul %191, %192, %cst_96 {dimension_numbers = #tpu.dot_dimension_numbers<[1], [0], [0], [1], [0, 0, 1, 1], [], []>} : vector<4x64xf32>, vector<64x64xf32>, vector<4x64xf32> -> vector<4x64xf32>
    %c448 = arith.constant 448 : index
    %c0_97 = arith.constant 0 : index
    %194 = vector.load %arg6[%c448, %c0_97] : memref<672x128xf32, #tpu.memory_space<vmem>>, vector<1x64xf32>
    %195 = vector.broadcast %194 : vector<1x64xf32> to vector<4x64xf32>
    %196 = arith.addf %193, %195 : vector<4x64xf32>
    %c456 = arith.constant 456 : index
    %c0_98 = arith.constant 0 : index
    %197 = vector.load %arg6[%c456, %c0_98] : memref<672x128xf32, #tpu.memory_space<vmem>>, vector<64x32xf32>
    %cst_99 = arith.constant dense<0.000000e+00> : vector<4x32xf32>
    %198 = tpu.matmul %196, %197, %cst_99 {dimension_numbers = #tpu.dot_dimension_numbers<[1], [0], [0], [1], [0, 0, 1, 1], [], []>} : vector<4x64xf32>, vector<64x32xf32>, vector<4x32xf32> -> vector<4x32xf32>
    %c664 = arith.constant 664 : index
    %c0_100 = arith.constant 0 : index
    %199 = vector.load %arg6[%c664, %c0_100] : memref<672x128xf32, #tpu.memory_space<vmem>>, vector<2x4xf32>
    %cst_101 = arith.constant dense<0.000000e+00> : vector<2x32xf32>
    %200 = tpu.matmul %199, %198, %cst_101 {dimension_numbers = #tpu.dot_dimension_numbers<[1], [0], [0], [1], [0, 0, 1, 1], [], []>} : vector<2x4xf32>, vector<4x32xf32>, vector<2x32xf32> -> vector<2x32xf32>
    %c0_102 = arith.constant 0 : index
    %c0_103 = arith.constant 0 : index
    %201 = vector.load %arg11[%c0_102, %c0_103] : memref<2x32xf32, #tpu.memory_space<vmem>>, vector<2x32xf32>
    tpu.vector_store %arg11[%c0_102, %c0_103], %200 {strides = array<i32>} : memref<2x32xf32, #tpu.memory_space<vmem>>, vector<2x32xf32>,
    %c0_104 = arith.constant 0 : index
    %c0_105 = arith.constant 0 : index
    %202 = vector.load %arg2[%c0_104, %c0_105] : memref<2x2xf32, #tpu.memory_space<vmem>>, vector<2x2xf32>
    %c520 = arith.constant 520 : index
    %c0_106 = arith.constant 0 : index
    %203 = vector.load %arg6[%c520, %c0_106] : memref<672x128xf32, #tpu.memory_space<vmem>>, vector<32x32xf32>
    %cst_107 = arith.constant dense<0.000000e+00> : vector<2x32xf32>
    %204 = tpu.matmul %200, %203, %cst_107 {dimension_numbers = #tpu.dot_dimension_numbers<[1], [0], [0], [1], [0, 0, 1, 1], [], []>} : vector<2x32xf32>, vector<32x32xf32>, vector<2x32xf32> -> vector<2x32xf32>
    %c552 = arith.constant 552 : index
    %c0_108 = arith.constant 0 : index
    %205 = vector.load %arg6[%c552, %c0_108] : memref<672x128xf32, #tpu.memory_space<vmem>>, vector<1x32xf32>
    %206 = vector.broadcast %205 : vector<1x32xf32> to vector<2x32xf32>
    %207 = arith.addf %204, %206 : vector<2x32xf32>
    %cst_109 = arith.constant dense<0.000000e+00> : vector<2x32xf32>
    %208 = tpu.matmul %202, %207, %cst_109 {dimension_numbers = #tpu.dot_dimension_numbers<[1], [0], [0], [1], [0, 0, 1, 1], [], []>} : vector<2x2xf32>, vector<2x32xf32>, vector<2x32xf32> -> vector<2x32xf32>
    %cst_110 = arith.constant 0.000000e+00 : f32
    %209 = vector.broadcast %cst_110 : f32 to vector<2x32xf32>
    %210 = arith.maximumf %208, %209 : vector<2x32xf32>
    %c560 = arith.constant 560 : index
    %c0_111 = arith.constant 0 : index
    %211 = vector.load %arg6[%c560, %c0_111] : memref<672x128xf32, #tpu.memory_space<vmem>>, vector<32x32xf32>
    %cst_112 = arith.constant dense<0.000000e+00> : vector<2x32xf32>
    %212 = tpu.matmul %210, %211, %cst_112 {dimension_numbers = #tpu.dot_dimension_numbers<[1], [0], [0], [1], [0, 0, 1, 1], [], []>} : vector<2x32xf32>, vector<32x32xf32>, vector<2x32xf32> -> vector<2x32xf32>
    %c592 = arith.constant 592 : index
    %c0_113 = arith.constant 0 : index
    %213 = vector.load %arg6[%c592, %c0_113] : memref<672x128xf32, #tpu.memory_space<vmem>>, vector<1x32xf32>
    %214 = vector.broadcast %213 : vector<1x32xf32> to vector<2x32xf32>
    %215 = arith.addf %212, %214 : vector<2x32xf32>
    %cst_114 = arith.constant dense<0.000000e+00> : vector<2x32xf32>
    %216 = tpu.matmul %202, %215, %cst_114 {dimension_numbers = #tpu.dot_dimension_numbers<[1], [0], [0], [1], [0, 0, 1, 1], [], []>} : vector<2x2xf32>, vector<2x32xf32>, vector<2x32xf32> -> vector<2x32xf32>
    %c600 = arith.constant 600 : index
    %c0_115 = arith.constant 0 : index
    %217 = vector.load %arg6[%c600, %c0_115] : memref<672x128xf32, #tpu.memory_space<vmem>>, vector<1x32xf32>
    %218 = vector.broadcast %217 : vector<1x32xf32> to vector<2x32xf32>
    %219 = arith.mulf %216, %218 : vector<2x32xf32>
    %cst_116 = arith.constant dense<0.000000e+00> : vector<2xf32>
    %220 = vector.multi_reduction <add>, %219, %cst_116 [1] : vector<2x32xf32> to vector<2xf32>
    %221 = vector.shape_cast %220 : vector<2xf32> to vector<2x1xf32>
    %c608 = arith.constant 608 : index
    %c0_117 = arith.constant 0 : index
    %222 = vector.load %arg6[%c608, %c0_117] : memref<672x128xf32, #tpu.memory_space<vmem>>, vector<1x1xf32>
    %223 = vector.broadcast %222 : vector<1x1xf32> to vector<2x1xf32>
    %224 = arith.addf %221, %223 : vector<2x1xf32>
    %c616 = arith.constant 616 : index
    %c0_118 = arith.constant 0 : index
    %225 = vector.load %arg6[%c616, %c0_118] : memref<672x128xf32, #tpu.memory_space<vmem>>, vector<32x5xf32>
    %cst_119 = arith.constant dense<0.000000e+00> : vector<2x5xf32>
    %226 = tpu.matmul %216, %225, %cst_119 {dimension_numbers = #tpu.dot_dimension_numbers<[1], [0], [0], [1], [0, 0, 1, 1], [], []>} : vector<2x32xf32>, vector<32x5xf32>, vector<2x5xf32> -> vector<2x5xf32>
    %c648 = arith.constant 648 : index
    %c0_120 = arith.constant 0 : index
    %227 = vector.load %arg6[%c648, %c0_120] : memref<672x128xf32, #tpu.memory_space<vmem>>, vector<1x5xf32>
    %228 = vector.broadcast %227 : vector<1x5xf32> to vector<2x5xf32>
    %229 = arith.addf %226, %228 : vector<2x5xf32>
    %230 = vector.broadcast %224 : vector<2x1xf32> to vector<2x5xf32>
    %231 = arith.addf %230, %229 : vector<2x5xf32>
    %cst_121 = arith.constant dense<0.000000e+00> : vector<2xf32>
    %232 = vector.multi_reduction <add>, %229, %cst_121 [1] : vector<2x5xf32> to vector<2xf32>
    %233 = vector.shape_cast %232 : vector<2xf32> to vector<2x1xf32>
    %cst_122 = arith.constant 5.000000e+00 : f32
    %234 = vector.broadcast %cst_122 : f32 to vector<2x1xf32>
    %235 = arith.divf %233, %234 : vector<2x1xf32>
    %236 = vector.broadcast %235 : vector<2x1xf32> to vector<2x5xf32>
    %237 = arith.subf %231, %236 : vector<2x5xf32>
    %cst_123 = arith.constant dense<0xFF800000> : vector<2xf32>
    %238 = vector.multi_reduction <maximumf>, %237, %cst_123 [1] : vector<2x5xf32> to vector<2xf32>
    %239 = vector.shape_cast %238 : vector<2xf32> to vector<2x1xf32>
    %240 = vector.broadcast %239 : vector<2x1xf32> to vector<2x5xf32>
    %241 = arith.subf %237, %240 : vector<2x5xf32>
    %242 = math.exp %241 : vector<2x5xf32>
    %243 = vector.broadcast %239 : vector<2x1xf32> to vector<2x5xf32>
    %244 = arith.subf %237, %243 : vector<2x5xf32>
    %cst_124 = arith.constant dense<0.000000e+00> : vector<2xf32>
    %245 = vector.multi_reduction <add>, %242, %cst_124 [1] : vector<2x5xf32> to vector<2xf32>
    %246 = vector.shape_cast %245 : vector<2xf32> to vector<2x1xf32>
    %247 = math.log %246 : vector<2x1xf32>
    %248 = vector.broadcast %247 : vector<2x1xf32> to vector<2x5xf32>
    %249 = arith.subf %244, %248 : vector<2x5xf32>
    %c0_125 = arith.constant 0 : index
    %c0_126 = arith.constant 0 : index
    %250 = vector.load %arg9[%c0_125, %c0_126] : memref<2x5xf32, #tpu.memory_space<vmem>>, vector<2x5xf32>
    tpu.vector_store %arg9[%c0_125, %c0_126], %249 {strides = array<i32>} : memref<2x5xf32, #tpu.memory_space<vmem>>, vector<2x5xf32>,
    %251 = tpu.iota {dimensions = array<i32: 1>} : vector<2x5xi32>
    %252 = vector.broadcast %239 : vector<2x1xf32> to vector<2x5xf32>
    %253 = arith.cmpf oeq, %237, %252 : vector<2x5xf32>
    %c2147483647_i32 = arith.constant 2147483647 : i32
    %254 = vector.broadcast %c2147483647_i32 : i32 to vector<2x5xi32>
    %255 = arith.select %253, %251, %254 : vector<2x5xi1>, vector<2x5xi32>
    %cst_127 = arith.constant dense<2147483647> : vector<2xi32>
    %256 = vector.multi_reduction <minsi>, %255, %cst_127 [1] : vector<2x5xi32> to vector<2xi32>
    %257 = vector.shape_cast %256 : vector<2xi32> to vector<2x1xi32>
    %c0_128 = arith.constant 0 : index
    %c0_129 = arith.constant 0 : index
    %258 = vector.load %arg10[%c0_128, %c0_129] : memref<2x1xi32, #tpu.memory_space<vmem>>, vector<2x1xi32>
    tpu.vector_store %arg10[%c0_128, %c0_129], %257 {strides = array<i32>} : memref<2x1xi32, #tpu.memory_space<vmem>>, vector<2x1xi32>,
    return
  }
}

</mosaic_0001>

<bundles_post_ra>
// kernel: tpu_custom_call.1
= control target key start
LH: loop header
LB: loop body
LE: loop exit
PB: predicated region body
PF: predicated region fallthrough
CT: control target
= control target key end

     0   :  { %17 = vsyncpa [#allocation6], 0  ;;  %s6609_s0 = inlined_call_operand.vmem [shape: f32[4,192], index: 0, kind: input, shape index: {}]   ;;  %s6610_s1 = inlined_call_operand.vmem [shape: f32[4,32], index: 1, kind: input, shape index: {}]   ;;  %s6611_s2 = inlined_call_operand.vmem [shape: f32[2,2], index: 2, kind: input, shape index: {}]   ;;  %s6612_s3 = inlined_call_operand.vmem [shape: bf16[192,256], index: 3, kind: input, shape index: {}]   ;;  %s6613_s4 = inlined_call_operand.hbm [shape: bf16[6,256,256], index: 4, kind: input, shape index: {}]   ;;  %s6614_s5 = inlined_call_operand.hbm [shape: f32[8,1024], index: 5, kind: input, shape index: {}]   ;;  %s6615_s6 = inlined_call_operand.vmem [shape: f32[672,128], index: 6, kind: input, shape index: {}]   ;;  %s6616_s7 = inlined_call_operand.hbm [shape: bf16[256,1024], index: 7, kind: input, shape index: {}]   ;;  %s6617_s8 = inlined_call_operand.vmem [shape: bf16[1024,96], index: 8, kind: input, shape index: {}]   ;;  %s6618_s9 = inlined_call_operand.hbm [shape: f32[2,5], index: 9, kind: output, shape index: {0}]   ;;  %s6619_s10 = inlined_call_operand.vmem [shape: s32[2,1], index: 10, kind: output, shape index: {1}]   ;;  %s6620_s11 = inlined_call_operand.hbm [shape: f32[2,32], index: 11, kind: output, shape index: {2}]  }
   0x1   :  { %18 = vsyncpa [#allocation9], 0 }
   0x2   :  { %19 = vsyncpa [#allocation7], 0 }
   0x3   :  { %20 = vsyncpa [#allocation12], 0  ;;  %s5511_s17 = smov [#allocation5]   ;;  %s5411_s21 = scalar_lea.hbm %s6613_s4, 24576 }
   0x4   :  { %s34_s18 = sshll.u32 %s5511_s17, 4  ;;  %p5412_p0 = scmp.ne.s32.totalorder %s6613_s4, %s5411_s21  ;;  %s35_s18 = int_to_ptr.vmem [resolvable:$true] %s34_s18 }
   0x5   :  { %p5415_p1 = scmp.lt.u32.totalorder %s5411_s21, %s6613_s4 }
   0x7   :  { %p5417_p2 = pnand %p5415_p1, %p5412_p0 }
   0x9   :  { %5420 = shalt.err (!%p5417_p2)
}
   0xa   :  { %s5421_s26 = scalar_lea.vmem %s35_s18, 24576  ;;  %p5426_p4 = scmp.lt.s32.totalorder %s35_s18, %s35_s18 }
   0xb   :  { %p5422_p3 = scmp.ne.s32.totalorder %s35_s18, %s5421_s26  ;;  %p5427_p5 = scmp.lt.s32.totalorder %s5421_s26, %s5421_s26 }
   0xd   :  { %p5428_p6 = por %p5427_p5, %p5426_p4 }
   0xf   :  { %p5429_p7 = pnand %p5428_p6, %p5422_p3 }
  0x11   :  { %5432 = shalt.err (!%p5429_p7)
}
  0x12   :  { %s5512_s27 = smov 128   ;;  %s5513_s28 = smov 8  }
  0x13   :  { %40 = dma.hbm_to_vmem [thread:$0]  %s6613_s4, 24576, %s35_s18, [#allocation6], %s5512_s27, %s5512_s27, %s5513_s28  }
  0x14   :  { %s5514_s12 = smov [#allocation8]   ;;  %s5433_s16 = scalar_lea.hbm %s6614_s5, 1024 }
  0x15   :  { %s47_s13 = sshll.u32 %s5514_s12, 4  ;;  %p5434_p8 = scmp.ne.s32.totalorder %s6614_s5, %s5433_s16  ;;  %s48_s13 = int_to_ptr.vmem [resolvable:$true] %s47_s13 }
  0x16   :  { %p5437_p9 = scmp.lt.u32.totalorder %s5433_s16, %s6614_s5 }
  0x18   :  { %p5439_p10 = pnand %p5437_p9, %p5434_p8 }
  0x1a   :  { %5442 = shalt.err (!%p5439_p10)
}
  0x1b   :  { %s5443_s22 = scalar_lea.vmem %s48_s13, 1024  ;;  %p5448_p12 = scmp.lt.s32.totalorder %s48_s13, %s48_s13 }
  0x1c   :  { %p5444_p11 = scmp.ne.s32.totalorder %s48_s13, %s5443_s22  ;;  %p5449_p13 = scmp.lt.s32.totalorder %s5443_s22, %s5443_s22 }
  0x1e   :  { %p5450_p0 = por %p5449_p13, %p5448_p12 }
  0x20   :  { %p5451_p1 = pnand %p5450_p0, %p5444_p11 }
  0x22   :  { %5454 = shalt.err (!%p5451_p1)
}
  0x23   :  { %50 = dma.hbm_to_vmem [thread:$0]  %s6614_s5, 1024, %s48_s13, [#allocation9]  }
  0x24   :  { %5499 = dma.done.wait [#allocation6], 24576  }
  0x25   :  { %5500 = vsyncadd [#allocation6], 4294942720 }
  0x26   :  { %5501 = dma.done.wait [#allocation9], 1024  }
  0x27   :  { %5502 = vsyncadd [#allocation9], 4294966272  ;;  %s64_s23 = sld [smem:[#allocation0]]   ;;  %s5515_s24 = smov 1024  }
  0x28   :  { %76 = sst [smem:[#allocation14]] %s5515_s24  ;;  %s5516_s25 = smov 64  }
  0x29   :  { %78 = sst [smem:[#allocation14 + $0x1]] %s5515_s24  ;;  %s5517_s26 = smov 2  }
  0x2a   :  { %80 = sst [smem:[#allocation14 + $0x2]] %s5513_s28  ;;  %s5518_s29 = smov [#allocation2]  }
  0x2b   :  { %82 = sst [smem:[#allocation14 + $0x3]] %s5516_s25  ;;  %s72_s30 = sshll.u32 %s5518_s29, 4  ;;  %s73_s30 = int_to_ptr.vmem [resolvable:$true] %s72_s30 }
  0x2c   :  { %84 = sst [smem:[#allocation14 + $0x4]] %s5512_s27  ;;  %s5519_s5 = smov 512  }
  0x2d   :  { %86 = sst [smem:[#allocation14 + $0x5]] %s5517_s26  ;;  %s4294_s12 = sshll.u32 %s64_s23, 26 }
  0x2e   :  { %88 = sst [smem:[#allocation14 + $0x6]] %s5519_s5  ;;  %s4295_s13 = sadd.s32 134217728, %s4294_s12 }
  0x2f   :  { %90 = sst [smem:[#allocation14 + $0x7]] %s5516_s25  ;;  %s5520_s14 = smov 4  }
  0x30   :  { %92 = sst [smem:[#allocation14 + $0x8]] %s5520_s14  ;;  %s5521_s15 = smov [#allocation4]  }
  0x31   :  { %s5522_s28 = smov [#allocation13]  }
  0x32   :  { %94 = dma.general %s6616_s7, 16384, %s73_s30, %s5521_s15, %s5522_s28, [#allocation14], %s4295_s13, 0  }
  0x33   :  { %v5626_v0 = vld [vmem:[%s6617_s8] sm:$0xff]  ;;  %v5631_v1 = vld [vmem:[%s6617_s8 + $0x8] sm:$0xff]  ;;  %v5636_v2 = vld [vmem:[%s6617_s8 + $0x10] sm:$0xff] }
  0x34   :  { %v5641_v3 = vld [vmem:[%s6617_s8 + $0x18] sm:$0xff]  ;;  %v5646_v4 = vld [vmem:[%s6617_s8 + $0x20] sm:$0xff]  ;;  %v5651_v5 = vld [vmem:[%s6617_s8 + $0x28] sm:$0xff] }
  0x35   :  { %v5656_v6 = vld [vmem:[%s6617_s8 + $0x30] sm:$0xff]  ;;  %v5661_v7 = vld [vmem:[%s6617_s8 + $0x38] sm:$0xff]  ;;  %v5666_v8 = vld [vmem:[%s6617_s8 + $0x40] sm:$0xff] }
  0x36   :  { %v5671_v9 = vld [vmem:[%s6617_s8 + $0x48] sm:$0xff]  ;;  %v5676_v10 = vld [vmem:[%s6617_s8 + $0x50] sm:$0xff]  ;;  %v5681_v11 = vld [vmem:[%s6617_s8 + $0x58] sm:$0xff] }
  0x37   :  { %v5686_v12 = vld [vmem:[%s6617_s8 + $0x60] sm:$0xff]  ;;  %v5691_v13 = vld [vmem:[%s6617_s8 + $0x68] sm:$0xff]  ;;  %v5696_v14 = vld [vmem:[%s6617_s8 + $0x70] sm:$0xff] }
  0x38   :  { %v5701_v15 = vld [vmem:[%s6617_s8 + $0x78] sm:$0xff]  ;;  %v5706_v16 = vld [vmem:[%s6617_s8 + $0x80] sm:$0xff]  ;;  %v5711_v17 = vld [vmem:[%s6617_s8 + $0x88] sm:$0xff] }
  0x39   :  { %v5716_v18 = vld [vmem:[%s6617_s8 + $0x90] sm:$0xff]  ;;  %v5721_v19 = vld [vmem:[%s6617_s8 + $0x98] sm:$0xff]  ;;  %v5726_v20 = vld [vmem:[%s6617_s8 + $0xa0] sm:$0xff] }
  0x3a   :  { %6623 = vst [vmem:[#allocation22_spill] sm:$0xff] %v5721_v19  ;;  %6624 = vst [vmem:[#allocation23_spill] sm:$0xff] %v5726_v20  ;;  %v5731_v21 = vld [vmem:[%s6617_s8 + $0xa8] sm:$0xff]  ;;  %v5736_v22 = vld [vmem:[%s6617_s8 + $0xb0] sm:$0xff] }
  0x3b   :  { %6625 = vst [vmem:[#allocation24_spill] sm:$0xff] %v5731_v21  ;;  %6626 = vst [vmem:[#allocation25_spill] sm:$0xff] %v5736_v22  ;;  %v5741_v23 = vld [vmem:[%s6617_s8 + $0xb8] sm:$0xff]  ;;  %v5746_v24 = vld [vmem:[%s6617_s8 + $0xc0] sm:$0xff] }
  0x3c   :  { %6627 = vst [vmem:[#allocation26_spill] sm:$0xff] %v5741_v23  ;;  %v5751_v25 = vld [vmem:[%s6617_s8 + $0xc8] sm:$0xff]  ;;  %v5756_v26 = vld [vmem:[%s6617_s8 + $0xd0] sm:$0xff]  ;;  %v5761_v27 = vld [vmem:[%s6617_s8 + $0xd8] sm:$0xff] }
  0x3d   :  { %v5766_v28 = vld [vmem:[%s6617_s8 + $0xe0] sm:$0xff]  ;;  %v5771_v29 = vld [vmem:[%s6617_s8 + $0xe8] sm:$0xff]  ;;  %v5776_v30 = vld [vmem:[%s6617_s8 + $0xf0] sm:$0xff] }
  0x3e   :  { %6628 = vst [vmem:[#allocation27_spill] sm:$0xff] %v5766_v28  ;;  %6629 = vst [vmem:[#allocation28_spill] sm:$0xff] %v5771_v29  ;;  %v5781_v31 = vld [vmem:[%s6617_s8 + $0xf8] sm:$0xff]  ;;  %v5786_v32 = vld [vmem:[%s6617_s8 + $0x100] sm:$0xff] }
  0x3f   :  { %6630 = vst [vmem:[#allocation29_spill] sm:$0xff] %v5776_v30  ;;  %6631 = vst [vmem:[#allocation30_spill] sm:$0xff] %v5781_v31  ;;  %v5791_v33 = vld [vmem:[%s6617_s8 + $0x108] sm:$0xff]  ;;  %v5796_v34 = vld [vmem:[%s6617_s8 + $0x110] sm:$0xff] }
  0x40   :  { %v5801_v35 = vld [vmem:[%s6617_s8 + $0x118] sm:$0xff]  ;;  %v5806_v36 = vld [vmem:[%s6617_s8 + $0x120] sm:$0xff]  ;;  %v5811_v37 = vld [vmem:[%s6617_s8 + $0x128] sm:$0xff] }
  0x41   :  { %v5816_v38 = vld [vmem:[%s6617_s8 + $0x130] sm:$0xff]  ;;  %v5821_v39 = vld [vmem:[%s6617_s8 + $0x138] sm:$0xff]  ;;  %v5826_v40 = vld [vmem:[%s6617_s8 + $0x140] sm:$0xff] }
  0x42   :  { %v5831_v41 = vld [vmem:[%s6617_s8 + $0x148] sm:$0xff]  ;;  %v5836_v42 = vld [vmem:[%s6617_s8 + $0x150] sm:$0xff]  ;;  %v5841_v43 = vld [vmem:[%s6617_s8 + $0x158] sm:$0xff] }
  0x43   :  { %v5846_v44 = vld [vmem:[%s6617_s8 + $0x160] sm:$0xff]  ;;  %v5851_v45 = vld [vmem:[%s6617_s8 + $0x168] sm:$0xff]  ;;  %v5856_v46 = vld [vmem:[%s6617_s8 + $0x170] sm:$0xff] }
  0x44   :  { %v5861_v47 = vld [vmem:[%s6617_s8 + $0x178] sm:$0xff]  ;;  %v5866_v48 = vld [vmem:[%s6617_s8 + $0x180] sm:$0xff]  ;;  %v5871_v49 = vld [vmem:[%s6617_s8 + $0x188] sm:$0xff] }
  0x45   :  { %6632 = vst [vmem:[#allocation31_spill] sm:$0xff] %v5866_v48  ;;  %6633 = vst [vmem:[#allocation32_spill] sm:$0xff] %v5871_v49  ;;  %v5876_v50 = vld [vmem:[%s6617_s8 + $0x190] sm:$0xff]  ;;  %v5881_v51 = vld [vmem:[%s6617_s8 + $0x198] sm:$0xff] }
  0x46   :  { %6634 = vst [vmem:[#allocation33_spill] sm:$0xff] %v5876_v50  ;;  %6635 = vst [vmem:[#allocation34_spill] sm:$0xff] %v5881_v51  ;;  %v5886_v52 = vld [vmem:[%s6617_s8 + $0x1a0] sm:$0xff]  ;;  %v5891_v53 = vld [vmem:[%s6617_s8 + $0x1a8] sm:$0xff] }
  0x47   :  { %6636 = vst [vmem:[#allocation35_spill] sm:$0xff] %v5886_v52  ;;  %6637 = vst [vmem:[#allocation36_spill] sm:$0xff] %v5891_v53  ;;  %v5896_v54 = vld [vmem:[%s6617_s8 + $0x1b0] sm:$0xff]  ;;  %v5901_v55 = vld [vmem:[%s6617_s8 + $0x1b8] sm:$0xff] }
  0x48   :  { %6638 = vst [vmem:[#allocation37_spill] sm:$0xff] %v5896_v54  ;;  %6639 = vst [vmem:[#allocation38_spill] sm:$0xff] %v5901_v55  ;;  %v5906_v56 = vld [vmem:[%s6617_s8 + $0x1c0] sm:$0xff]  ;;  %v5911_v57 = vld [vmem:[%s6617_s8 + $0x1c8] sm:$0xff] }
  0x49   :  { %6640 = vst [vmem:[#allocation39_spill] sm:$0xff] %v5906_v56  ;;  %6641 = vst [vmem:[#allocation40_spill] sm:$0xff] %v5911_v57  ;;  %v5916_v58 = vld [vmem:[%s6617_s8 + $0x1d0] sm:$0xff]  ;;  %v5921_v59 = vld [vmem:[%s6617_s8 + $0x1d8] sm:$0xff] }
  0x4a   :  { %6642 = vst [vmem:[#allocation41_spill] sm:$0xff] %v5916_v58  ;;  %6643 = vst [vmem:[#allocation42_spill] sm:$0xff] %v5921_v59  ;;  %v5926_v60 = vld [vmem:[%s6617_s8 + $0x1e0] sm:$0xff]  ;;  %v5931_v61 = vld [vmem:[%s6617_s8 + $0x1e8] sm:$0xff] }
  0x4b   :  { %6644 = vst [vmem:[#allocation43_spill] sm:$0xff] %v5926_v60  ;;  %6645 = vst [vmem:[#allocation44_spill] sm:$0xff] %v5931_v61  ;;  %v5936_v62 = vld [vmem:[%s6617_s8 + $0x1f0] sm:$0xff]  ;;  %v5941_v63 = vld [vmem:[%s6617_s8 + $0x1f8] sm:$0xff] }
  0x4c   :  { %6646 = vst [vmem:[#allocation45_spill] sm:$0xff] %v5936_v62  ;;  %6647 = vst [vmem:[#allocation46_spill] sm:$0xff] %v5941_v63 }
  0x4d   :  { %263 = vsyncadd [#allocation4 + $0x1], 8192  ;;  %v5067_v55 = vld [vmem:[%s6612_s3 + $0x4] ss:$8 sps:$4 sm:$0xff]   ;;  %v5069_v54 = vld [vmem:[%s6612_s3] ss:$8 sps:$4 sm:$0xff]  }
  0x4e   :  { %v5070_v53 = vld [vmem:[%s6612_s3 + $0x14] ss:$8 sps:$4 sm:$0xff]   ;;  %430 = vmatprep.subr.bf16.mxu0 %v5067_v55  ;;  %v5072_v62 = vld [vmem:[%s6612_s3 + $0x10] ss:$8 sps:$4 sm:$0xff]   ;;  %v5073_v63 = vld [vmem:[%s6612_s3 + $0x24] ss:$8 sps:$4 sm:$0xff]  }
  0x4f   :  { %431 = vmatpush1.bf16.msra.mxu0 %v5069_v54  ;;  %v5075_v61 = vld [vmem:[%s6612_s3 + $0x20] ss:$8 sps:$4 sm:$0xff]   ;;  %v5076_v55 = vld [vmem:[%s6612_s3 + $0x34] ss:$8 sps:$4 sm:$0xff]   ;;  %v5078_v54 = vld [vmem:[%s6612_s3 + $0x30] ss:$8 sps:$4 sm:$0xff]  }
  0x50   :  { %432 = vmatprep.subr.bf16.mxu0 %v5070_v53  ;;  %v5079_v53 = vld [vmem:[%s6612_s3 + $0x44] ss:$8 sps:$4 sm:$0xff]   ;;  %v5106_v60 = vld [vmem:[#allocation5] ss:$8 sps:$4 sm:$0xff]   ;;  %vm426_vm0 = vcmask 523264  }
  0x51   :  { %v5104_v52 = vld [vmem:[#allocation5 + $0x4] ss:$8 sps:$4 sm:$0xff]   ;;  %v5107_v51 = vld [vmem:[#allocation5 + $0x14] ss:$8 sps:$4 sm:$0xff]   ;;  %v5109_v50 = vld [vmem:[#allocation5 + $0x10] ss:$8 sps:$4 sm:$0xff]  }
  0x52   :  { %680 = vmatprep.subr.bf16.mxu1 %v5104_v52  ;;  %v5110_v58 = vld [vmem:[#allocation5 + $0x24] ss:$8 sps:$4 sm:$0xff]   ;;  %v5087_v52 = vld [vmem:[%s6612_s3 + $0x60] ss:$8 sps:$4 sm:$0xff]   ;;  %v5125_v49 = vld [vmem:[#allocation5 + $0x74] ss:$8 sps:$4 sm:$0xff]  }
  0x53   :  { %433 = vmatpush1.bf16.msra.mxu0 %v5072_v62  ;;  %v5081_v62 = vld [vmem:[%s6612_s3 + $0x40] ss:$8 sps:$4 sm:$0xff]   ;;  %681 = vmatpush1.bf16.msra.mxu1 %v5106_v60  ;;  %v5088_v60 = vld [vmem:[%s6612_s3 + $0x74] ss:$8 sps:$4 sm:$0xff]   ;;  %v5196_v23 = vld [vmem:[#allocation5 + $0x1e4] ss:$8 sps:$4 sm:$0xff]  }
  0x54   :  { %434 = vmatprep.subr.bf16.mxu0 %v5073_v63  ;;  %v5082_v63 = vld [vmem:[%s6612_s3 + $0x54] ss:$8 sps:$4 sm:$0xff]   ;;  %682 = vmatprep.subr.bf16.mxu1 %v5107_v51  ;;  %v5115_v51 = vld [vmem:[#allocation5 + $0x30] ss:$8 sps:$4 sm:$0xff]  }
  0x55   :  { %v5131_v48 = vld [vmem:[#allocation5 + $0x94] ss:$8 sps:$4 sm:$0xff]   ;;  %v5245_v29 = vld [vmem:[#allocation5 + $0x2f0] ss:$8 sps:$4 sm:$0xff]  }
  0x57   :  { %435 = vmatpush1.bf16.msra.mxu0 %v5075_v61  ;;  %v5979_v61 = vld [vmem:[%s6609_s0] sm:$0xff]  ;;  %683 = vmatpush1.bf16.msra.mxu1 %v5109_v50 }
  0x58   :  { %436 = vmatprep.subr.bf16.mxu0 %v5076_v55  ;;  %v290_v55 = vcombine.high %v5979_v61, %v5979_v61  ;;  %684 = vmatprep.subr.bf16.mxu1 %v5110_v58  ;;  %v5091_v50 = vld [vmem:[%s6612_s3 + $0x84] ss:$8 sps:$4 sm:$0xff]   ;;  %v5093_v58 = vld [vmem:[%s6612_s3 + $0x80] ss:$8 sps:$4 sm:$0xff]   ;;  %v292_v57 = vpack.c.bf16 %v5979_v61, %v5979_v61  ;;  %v5145_v61 = vld [vmem:[#allocation5 + $0xd0] ss:$8 sps:$4 sm:$0xff]  }
  0x5a   :  { %v293_v59 = vpack.c.bf16 %v290_v55, %v290_v55  ;;  %v5116_v55 = vld [vmem:[#allocation5 + $0x44] ss:$8 sps:$4 sm:$0xff]  }
  0x5b   :  { %437 = vmatpush1.bf16.msra.mxu0 %v5078_v54  ;;  %v5084_v54 = vld [vmem:[%s6612_s3 + $0x50] ss:$8 sps:$4 sm:$0xff]  }
  0x5c   :  { %438 = vmatprep.subr.bf16.mxu0 %v5079_v53  ;;  %v5085_v53 = vld [vmem:[%s6612_s3 + $0x64] ss:$8 sps:$4 sm:$0xff]   ;;  %4320 = vmatprep.mubr.msk.bf16.mxu0 %vm426_vm0, %v293_v59  ;;  %v5090_v59 = vld [vmem:[%s6612_s3 + $0x70] ss:$8 sps:$4 sm:$0xff]  }
  0x5f   :  { %439 = vmatpush1.bf16.msra.mxu0 %v5081_v62  ;;  %v5112_v62 = vld [vmem:[#allocation5 + $0x20] ss:$8 sps:$4 sm:$0xff]  }
  0x60   :  { %440 = vmatprep.subr.bf16.mxu0 %v5082_v63  ;;  %v5113_v63 = vld [vmem:[#allocation5 + $0x34] ss:$8 sps:$4 sm:$0xff]   ;;  %685 = vmatpush1.bf16.msra.mxu1 %v5112_v62  ;;  %v5096_v62 = vld [vmem:[%s6612_s3 + $0x90] ss:$8 sps:$4 sm:$0xff]  }
  0x61   :  { %686 = vmatprep.subr.bf16.mxu1 %v5113_v63  ;;  %v5121_v63 = vld [vmem:[#allocation5 + $0x50] ss:$8 sps:$4 sm:$0xff]  }
  0x63   :  { %441 = vmatpush1.bf16.msra.mxu0 %v5084_v54  ;;  %v5118_v54 = vld [vmem:[#allocation5 + $0x40] ss:$8 sps:$4 sm:$0xff]  }
  0x64   :  { %442 = vmatprep.subr.bf16.mxu0 %v5085_v53  ;;  %687 = vmatpush1.bf16.msra.mxu1 %v5115_v51  ;;  %v5094_v53 = vld [vmem:[%s6612_s3 + $0x94] ss:$8 sps:$4 sm:$0xff]   ;;  %v5099_v51 = vld [vmem:[%s6612_s3 + $0xa0] ss:$8 sps:$4 sm:$0xff]  }
  0x65   :  { %688 = vmatprep.subr.bf16.mxu1 %v5116_v55  ;;  %v5100_v55 = vld [vmem:[%s6612_s3 + $0xb4] ss:$8 sps:$4 sm:$0xff]  }
  0x67   :  { %443 = vmatpush1.bf16.msra.mxu0 %v5087_v52  ;;  %v5119_v52 = vld [vmem:[#allocation5 + $0x54] ss:$8 sps:$4 sm:$0xff]  }
  0x68   :  { %444 = vmatprep.subr.bf16.mxu0 %v5088_v60  ;;  %v5097_v60 = vld [vmem:[%s6612_s3 + $0xa4] ss:$8 sps:$4 sm:$0xff]   ;;  %689 = vmatpush1.bf16.msra.mxu1 %v5118_v54  ;;  %v5127_v54 = vld [vmem:[#allocation5 + $0x70] ss:$8 sps:$4 sm:$0xff]  }
  0x69   :  { %690 = vmatprep.subr.bf16.mxu1 %v5119_v52  ;;  %v5130_v52 = vld [vmem:[#allocation5 + $0x80] ss:$8 sps:$4 sm:$0xff]  }
  0x6b   :  { %445 = vmatpush1.bf16.msra.mxu0 %v5090_v59  ;;  %v5122_v59 = vld [vmem:[#allocation5 + $0x64] ss:$8 sps:$4 sm:$0xff]  }
  0x6c   :  { %446 = vmatprep.subr.bf16.mxu0 %v5091_v50  ;;  %v5124_v50 = vld [vmem:[#allocation5 + $0x60] ss:$8 sps:$4 sm:$0xff]   ;;  %691 = vmatpush1.bf16.msra.mxu1 %v5121_v63 }
  0x6d   :  { %692 = vmatprep.subr.bf16.mxu1 %v5122_v59  ;;  %v5136_v63 = vld [vmem:[#allocation5 + $0xa0] ss:$8 sps:$4 sm:$0xff]   ;;  %v5137_v59 = vld [vmem:[#allocation5 + $0xb4] ss:$8 sps:$4 sm:$0xff]  }
  0x6f   :  { %447 = vmatpush1.bf16.msra.mxu0 %v5093_v58  ;;  %v5102_v58 = vld [vmem:[%s6612_s3 + $0xb0] ss:$8 sps:$4 sm:$0xff]  }
  0x70   :  { %448 = vmatprep.subr.bf16.mxu0 %v5094_v53  ;;  %v5128_v53 = vld [vmem:[#allocation5 + $0x84] ss:$8 sps:$4 sm:$0xff]   ;;  %693 = vmatpush1.bf16.msra.mxu1 %v5124_v50 }
  0x71   :  { %694 = vmatprep.subr.bf16.mxu1 %v5125_v49  ;;  %v5140_v50 = vld [vmem:[#allocation5 + $0xc4] ss:$8 sps:$4 sm:$0xff]   ;;  %v5142_v49 = vld [vmem:[#allocation5 + $0xc0] ss:$8 sps:$4 sm:$0xff]  }
  0x73   :  { %449 = vmatpush1.bf16.msra.mxu0 %v5096_v62  ;;  %v5133_v62 = vld [vmem:[#allocation5 + $0x90] ss:$8 sps:$4 sm:$0xff]  }
  0x74   :  { %450 = vmatprep.subr.bf16.mxu0 %v5097_v60  ;;  %695 = vmatpush1.bf16.msra.mxu1 %v5127_v54  ;;  %v5134_v60 = vld [vmem:[#allocation5 + $0xa4] ss:$8 sps:$4 sm:$0xff]   ;;  %v5151_v54 = vld [vmem:[#allocation5 + $0xf0] ss:$8 sps:$4 sm:$0xff]  }
  0x75   :  { %696 = vmatprep.subr.bf16.mxu1 %v5128_v53  ;;  %v5152_v53 = vld [vmem:[#allocation5 + $0x100] ss:$8 sps:$4 sm:$0xff]  }
  0x77   :  { %451 = vmatpush1.bf16.msra.mxu0 %v5099_v51  ;;  %v5139_v51 = vld [vmem:[#allocation5 + $0xb0] ss:$8 sps:$4 sm:$0xff]  }
  0x78   :  { %452 = vmatprep.subr.bf16.mxu0 %v5100_v55  ;;  %697 = vmatpush1.bf16.msra.mxu1 %v5130_v52  ;;  %v5143_v55 = vld [vmem:[#allocation5 + $0xd4] ss:$8 sps:$4 sm:$0xff]   ;;  %v5154_v52 = vld [vmem:[#allocation5 + $0x104] ss:$8 sps:$4 sm:$0xff]  }
  0x79   :  { %698 = vmatprep.subr.bf16.mxu1 %v5131_v48  ;;  %v5149_v48 = vld [vmem:[#allocation5 + $0xf4] ss:$8 sps:$4 sm:$0xff]  }
  0x7b   :  { %453 = vmatpush1.bf16.msra.mxu0 %v5102_v58  ;;  %v5148_v58 = vld [vmem:[#allocation5 + $0xe0] ss:$8 sps:$4 sm:$0xff]  }
  0x7c   :  { %699 = vmatpush1.bf16.msra.mxu1 %v5133_v62  ;;  %v5157_v62 = vld [vmem:[#allocation5 + $0x114] ss:$8 sps:$4 sm:$0xff]   ;;  %931 = vmatprep.subr.bf16.mxu0 %v5154_v52  ;;  %v5178_v52 = vld [vmem:[#allocation5 + $0x184] ss:$8 sps:$4 sm:$0xff]  }
  0x7d   :  { %700 = vmatprep.subr.bf16.mxu1 %v5134_v60  ;;  %v5155_v60 = vld [vmem:[#allocation5 + $0x110] ss:$8 sps:$4 sm:$0xff]  }
  0x7e   :  { %463 = vmatmul.mubr.bf16.vlgmr.msra.gmra.mrb[0].mxu0 %v292_v57  ;;  %v5146_v57 = vld [vmem:[#allocation5 + $0xe4] ss:$8 sps:$4 sm:$0xff]  }
  0x7f   :  { %932 = vmatpush1.bf16.msra.mxu0 %v5152_v53  ;;  %v5173_v53 = vld [vmem:[#allocation5 + $0x170] ss:$8 sps:$4 sm:$0xff]  }
  0x80   :  { %701 = vmatpush1.bf16.msra.mxu1 %v5136_v63  ;;  %933 = vmatprep.subr.bf16.mxu0 %v5157_v62  ;;  %v5160_v63 = vld [vmem:[#allocation5 + $0x124] ss:$8 sps:$4 sm:$0xff]   ;;  %v5176_v62 = vld [vmem:[#allocation5 + $0x180] ss:$8 sps:$4 sm:$0xff]  }
  0x81   :  { %702 = vmatprep.subr.bf16.mxu1 %v5137_v59  ;;  %v5158_v59 = vld [vmem:[#allocation5 + $0x120] ss:$8 sps:$4 sm:$0xff]  }
  0x83   :  { %934 = vmatpush1.bf16.msra.mxu0 %v5155_v60  ;;  %v5181_v60 = vld [vmem:[#allocation5 + $0x194] ss:$8 sps:$4 sm:$0xff]  }
  0x84   :  { %703 = vmatpush1.bf16.msra.mxu1 %v5139_v51  ;;  %935 = vmatprep.subr.bf16.mxu0 %v5160_v63  ;;  %v5163_v51 = vld [vmem:[#allocation5 + $0x134] ss:$8 sps:$4 sm:$0xff]   ;;  %v5179_v63 = vld [vmem:[#allocation5 + $0x190] ss:$8 sps:$4 sm:$0xff]  }
  0x85   :  { %704 = vmatprep.subr.bf16.mxu1 %v5140_v50  ;;  %v5161_v50 = vld [vmem:[#allocation5 + $0x130] ss:$8 sps:$4 sm:$0xff]  }
  0x87   :  { %936 = vmatpush1.bf16.msra.mxu0 %v5158_v59  ;;  %v5184_v59 = vld [vmem:[#allocation5 + $0x1a4] ss:$8 sps:$4 sm:$0xff]  }
  0x88   :  { %705 = vmatpush1.bf16.msra.mxu1 %v5142_v49  ;;  %937 = vmatprep.subr.bf16.mxu0 %v5163_v51  ;;  %v5166_v49 = vld [vmem:[#allocation5 + $0x144] ss:$8 sps:$4 sm:$0xff]   ;;  %v5182_v51 = vld [vmem:[#allocation5 + $0x1a0] ss:$8 sps:$4 sm:$0xff]  }
  0x89   :  { %706 = vmatprep.subr.bf16.mxu1 %v5143_v55  ;;  %v5164_v55 = vld [vmem:[#allocation5 + $0x140] ss:$8 sps:$4 sm:$0xff]  }
  0x8b   :  { %938 = vmatpush1.bf16.msra.mxu0 %v5161_v50  ;;  %v5187_v50 = vld [vmem:[#allocation5 + $0x1b4] ss:$8 sps:$4 sm:$0xff]  }
  0x8c   :  { %707 = vmatpush1.bf16.msra.mxu1 %v5145_v61  ;;  %939 = vmatprep.subr.bf16.mxu0 %v5166_v49  ;;  %v5169_v61 = vld [vmem:[#allocation5 + $0x154] ss:$8 sps:$4 sm:$0xff]   ;;  %v5185_v49 = vld [vmem:[#allocation5 + $0x1b0] ss:$8 sps:$4 sm:$0xff]  }
  0x8d   :  { %708 = vmatprep.subr.bf16.mxu1 %v5146_v57  ;;  %v5167_v57 = vld [vmem:[#allocation5 + $0x150] ss:$8 sps:$4 sm:$0xff]  }
  0x8f   :  { %940 = vmatpush1.bf16.msra.mxu0 %v5164_v55  ;;  %v5190_v55 = vld [vmem:[#allocation5 + $0x1c4] ss:$8 sps:$4 sm:$0xff]  }
  0x90   :  { %709 = vmatpush1.bf16.msra.mxu1 %v5148_v58  ;;  %941 = vmatprep.subr.bf16.mxu0 %v5169_v61  ;;  %v5172_v58 = vld [vmem:[#allocation5 + $0x164] ss:$8 sps:$4 sm:$0xff]   ;;  %v5188_v61 = vld [vmem:[#allocation5 + $0x1c0] ss:$8 sps:$4 sm:$0xff]  }
  0x91   :  { %710 = vmatprep.subr.bf16.mxu1 %v5149_v48  ;;  %v5170_v48 = vld [vmem:[#allocation5 + $0x160] ss:$8 sps:$4 sm:$0xff]  }
  0x93   :  { %942 = vmatpush1.bf16.msra.mxu0 %v5167_v57  ;;  %v5193_v57 = vld [vmem:[#allocation5 + $0x1d4] ss:$8 sps:$4 sm:$0xff]  }
  0x94   :  { %711 = vmatpush1.bf16.msra.mxu1 %v5151_v54  ;;  %943 = vmatprep.subr.bf16.mxu0 %v5172_v58  ;;  %v5175_v54 = vld [vmem:[#allocation5 + $0x174] ss:$8 sps:$4 sm:$0xff]   ;;  %v5191_v58 = vld [vmem:[#allocation5 + $0x1d0] ss:$8 sps:$4 sm:$0xff]  }
  0x97   :  { %944 = vmatpush1.bf16.msra.mxu0 %v5170_v48  ;;  %v6621_v48 = vlaneseq }
  0x98   :  { %945 = vmatprep.subr.bf16.mxu0 %v5175_v54 }
  0x99   :  { %v6026_v54 = vshrl.u32 %v6621_v48, 7 }
  0x9b   :  { %946 = vmatpush1.bf16.msra.mxu0 %v5173_v53  ;;  %v6029_v53 = vsub.s32 0, %v6026_v54 }
  0x9c   :  { %947 = vmatprep.subr.bf16.mxu0 %v5178_v52  ;;  %v294_v52 = vld [vmem:[#allocation8] ss:$8 sm:$0x3] }
  0x9f   :  { %948 = vmatpush1.bf16.msra.mxu0 %v5176_v62  ;;  %v6032_v62 = vsub.s32 1, %v6026_v54 }
  0xa0   :  { %949 = vmatprep.subr.bf16.mxu0 %v5181_v60  ;;  %v299_v60 = vrot.slane %v294_v52, %v6029_v53 }
  0xa3   :  { %950 = vmatpush1.bf16.msra.mxu0 %v5179_v63  ;;  %v303_v63 = vrot.slane %v294_v52, %v6032_v62  ;;  %v5194_v52 = vld [vmem:[#allocation5 + $0x1e0] ss:$8 sps:$4 sm:$0xff]  }
  0xa4   :  { %951 = vmatprep.subr.bf16.mxu0 %v5184_v59 }
  0xa7   :  { %952 = vmatpush1.bf16.msra.mxu0 %v5182_v51 }
  0xa8   :  { %953 = vmatprep.subr.bf16.mxu0 %v5187_v50 }
  0xab   :  { %954 = vmatpush1.bf16.msra.mxu0 %v5185_v49 }
  0xac   :  { %955 = vmatprep.subr.bf16.mxu0 %v5190_v55 }
  0xaf   :  { %956 = vmatpush1.bf16.msra.mxu0 %v5188_v61 }
  0xb0   :  { %957 = vmatprep.subr.bf16.mxu0 %v5193_v57 }
  0xb3   :  { %958 = vmatpush1.bf16.msra.mxu0 %v5191_v58 }
  0xb4   :  { %959 = vmatprep.subr.bf16.mxu0 %v5196_v23  ;;  %v5214_v23 = vld [vmem:[#allocation5 + $0x244] ss:$8 sps:$4 sm:$0xff]  }
  0xb7   :  { %960 = vmatpush1.bf16.msra.mxu0 %v5194_v52  ;;  %v5212_v52 = vld [vmem:[#allocation5 + $0x240] ss:$8 sps:$4 sm:$0xff]  }
 0x151   :  { %v464_v59 = vpop.f32.mrb[0].mxu0 }
 0x152   :  { %v465_v51 = vadd.f32 %v464_v59, %v299_v60  ;;  %v466_v50 = vpop.f32.mrb[1].mxu0  ;;  %v5199_v60 = vld [vmem:[#allocation5 + $0x1f4] ss:$8 sps:$4 sm:$0xff]   ;;  %v5200_v59 = vld [vmem:[#allocation5 + $0x200] ss:$8 sps:$4 sm:$0xff]  }
 0x153   :  { %v467_v49 = vadd.f32 %v466_v50, %v303_v63  ;;  %v468_v55 = vpop.f32.mrb[2].mxu0  ;;  %v5197_v63 = vld [vmem:[#allocation5 + $0x1f0] ss:$8 sps:$4 sm:$0xff]   ;;  %961 = vmatprep.subr.bf16.mxu0 %v5199_v60  ;;  %v5205_v50 = vld [vmem:[#allocation5 + $0x214] ss:$8 sps:$4 sm:$0xff]  }
 0x154   :  { %v6036_v61 = vmax.f32 %v465_v51, 0.0  ;;  %v469_v57 = vpop.f32.mrb[3].mxu0  ;;  %962 = vmatpush1.bf16.msra.mxu0 %v5197_v63  ;;  %v5202_v51 = vld [vmem:[#allocation5 + $0x204] ss:$8 sps:$4 sm:$0xff]   ;;  %v5217_v60 = vld [vmem:[#allocation5 + $0x254] ss:$8 sps:$4 sm:$0xff]  }
 0x155   :  { %v6038_v58 = vmax.f32 %v467_v49, 0.0  ;;  %1184 = vmatprep.subr.bf16.mxu1 %v5202_v51  ;;  %v5203_v49 = vld [vmem:[#allocation5 + $0x210] ss:$8 sps:$4 sm:$0xff]   ;;  %v5208_v55 = vld [vmem:[#allocation5 + $0x224] ss:$8 sps:$4 sm:$0xff]  }
 0x156   :  { %v505_v56 = vpack.c.bf16 %v6036_v61, %v6036_v61  ;;  %v5206_v57 = vld [vmem:[#allocation5 + $0x220] ss:$8 sps:$4 sm:$0xff]   ;;  %v5215_v63 = vld [vmem:[#allocation5 + $0x250] ss:$8 sps:$4 sm:$0xff]   ;;  %v5220_v51 = vld [vmem:[#allocation5 + $0x264] ss:$8 sps:$4 sm:$0xff]  }
 0x157   :  { %v506_v48 = vpack.c.bf16 %v6038_v58, %v6038_v58 }
 0x159   :  { %712 = vmatprep.mubr.bf16.mxu1 %v506_v48  ;;  %v5209_v48 = vld [vmem:[#allocation5 + $0x230] ss:$8 sps:$4 sm:$0xff]  }
 0x15a   :  { %713 = vmatmul.mubr.bf16.vlgmr.msra.gmra.mrb[0].mxu1 %v505_v56  ;;  %v5211_v56 = vld [vmem:[#allocation5 + $0x234] ss:$8 sps:$4 sm:$0xff]  }
 0x15b   :  { %1185 = vmatpush1.bf16.msra.mxu1 %v5200_v59  ;;  %v5218_v59 = vld [vmem:[#allocation5 + $0x260] ss:$8 sps:$4 sm:$0xff]  }
 0x15c   :  { %1186 = vmatprep.subr.bf16.mxu1 %v5205_v50  ;;  %v5223_v50 = vld [vmem:[#allocation5 + $0x274] ss:$8 sps:$4 sm:$0xff]  }
 0x15f   :  { %1187 = vmatpush1.bf16.msra.mxu1 %v5203_v49  ;;  %v5221_v49 = vld [vmem:[#allocation5 + $0x270] ss:$8 sps:$4 sm:$0xff]  }
 0x160   :  { %1188 = vmatprep.subr.bf16.mxu1 %v5208_v55  ;;  %v5226_v55 = vld [vmem:[#allocation5 + $0x284] ss:$8 sps:$4 sm:$0xff]  }
 0x163   :  { %1189 = vmatpush1.bf16.msra.mxu1 %v5206_v57  ;;  %v5224_v57 = vld [vmem:[#allocation5 + $0x280] ss:$8 sps:$4 sm:$0xff]  }
 0x164   :  { %1190 = vmatprep.subr.bf16.mxu1 %v5211_v56  ;;  %v5229_v56 = vld [vmem:[#allocation5 + $0x294] ss:$8 sps:$4 sm:$0xff]  }
 0x167   :  { %1191 = vmatpush1.bf16.msra.mxu1 %v5209_v48  ;;  %v5227_v48 = vld [vmem:[#allocation5 + $0x290] ss:$8 sps:$4 sm:$0xff]  }
 0x168   :  { %1192 = vmatprep.subr.bf16.mxu1 %v5214_v23  ;;  %v5232_v23 = vld [vmem:[#allocation5 + $0x2a4] ss:$8 sps:$4 sm:$0xff]  }
 0x16b   :  { %1193 = vmatpush1.bf16.msra.mxu1 %v5212_v52  ;;  %v5230_v52 = vld [vmem:[#allocation5 + $0x2a0] ss:$8 sps:$4 sm:$0xff]  }
 0x16c   :  { %1194 = vmatprep.subr.bf16.mxu1 %v5217_v60  ;;  %v5235_v60 = vld [vmem:[#allocation5 + $0x2b4] ss:$8 sps:$4 sm:$0xff]  }
 0x16f   :  { %1195 = vmatpush1.bf16.msra.mxu1 %v5215_v63  ;;  %v5233_v63 = vld [vmem:[#allocation5 + $0x2b0] ss:$8 sps:$4 sm:$0xff]  }
 0x170   :  { %1196 = vmatprep.subr.bf16.mxu1 %v5220_v51  ;;  %v5238_v51 = vld [vmem:[#allocation5 + $0x2c4] ss:$8 sps:$4 sm:$0xff]  }
 0x173   :  { %1197 = vmatpush1.bf16.msra.mxu1 %v5218_v59  ;;  %v5236_v59 = vld [vmem:[#allocation5 + $0x2c0] ss:$8 sps:$4 sm:$0xff]  }
 0x174   :  { %1198 = vmatprep.subr.bf16.mxu1 %v5223_v50  ;;  %v5241_v50 = vld [vmem:[#allocation5 + $0x2d4] ss:$8 sps:$4 sm:$0xff]  }
 0x177   :  { %1199 = vmatpush1.bf16.msra.mxu1 %v5221_v49  ;;  %v5239_v49 = vld [vmem:[#allocation5 + $0x2d0] ss:$8 sps:$4 sm:$0xff]  }
 0x178   :  { %1200 = vmatprep.subr.bf16.mxu1 %v5226_v55  ;;  %v508_v55 = vld [vmem:[#allocation8 + $0x1] ss:$8 sm:$0x3] }
 0x17b   :  { %1201 = vmatpush1.bf16.msra.mxu1 %v5224_v57  ;;  %v513_v57 = vrot.slane %v508_v55, %v6029_v53 }
 0x17c   :  { %1202 = vmatprep.subr.bf16.mxu1 %v5229_v56  ;;  %v517_v56 = vrot.slane %v508_v55, %v6032_v62  ;;  %v5248_v55 = vld [vmem:[#allocation5 + $0x300] ss:$8 sps:$4 sm:$0xff]  }
 0x17f   :  { %1203 = vmatpush1.bf16.msra.mxu1 %v5227_v48 }
 0x180   :  { %1204 = vmatprep.subr.bf16.mxu1 %v5232_v23 }
 0x183   :  { %1205 = vmatpush1.bf16.msra.mxu1 %v5230_v52 }
 0x184   :  { %1206 = vmatprep.subr.bf16.mxu1 %v5235_v60 }
 0x187   :  { %1207 = vmatpush1.bf16.msra.mxu1 %v5233_v63 }
 0x188   :  { %1208 = vmatprep.subr.bf16.mxu1 %v5238_v51 }
 0x18b   :  { %1209 = vmatpush1.bf16.msra.mxu1 %v5236_v59  ;;  %v5244_v59 = vld [vmem:[#allocation5 + $0x2e4] ss:$8 sps:$4 sm:$0xff]  }
 0x18c   :  { %1210 = vmatprep.subr.bf16.mxu1 %v5241_v50  ;;  %v5242_v50 = vld [vmem:[#allocation5 + $0x2e0] ss:$8 sps:$4 sm:$0xff]  }
 0x18f   :  { %1211 = vmatpush1.bf16.msra.mxu1 %v5239_v49  ;;  %v5247_v49 = vld [vmem:[#allocation5 + $0x2f4] ss:$8 sps:$4 sm:$0xff]  }
 0x190   :  { %1212 = vmatprep.subr.bf16.mxu1 %v5244_v59  ;;  %v5271_v59 = vld [vmem:[#allocation5 + $0x374] ss:$8 sps:$4 sm:$0xff]  }
 0x193   :  { %1213 = vmatpush1.bf16.msra.mxu1 %v5242_v50  ;;  %v5269_v50 = vld [vmem:[#allocation5 + $0x370] ss:$8 sps:$4 sm:$0xff]  }
 0x194   :  { %1214 = vmatprep.subr.bf16.mxu1 %v5247_v49  ;;  %v5274_v49 = vld [vmem:[#allocation5 + $0x384] ss:$8 sps:$4 sm:$0xff]  }
 0x197   :  { %1215 = vmatpush1.bf16.msra.mxu1 %v5245_v29  ;;  %v5265_v29 = vld [vmem:[#allocation5 + $0x354] ss:$8 sps:$4 sm:$0xff]  }
 0x22d   :  { %v714_v48 = vpop.f32.mrb[0].mxu1 }
 0x22e   :  { %v715_v23 = vadd.f32 %v714_v48, %v513_v57  ;;  %v716_v31 = vpop.f32.mrb[1].mxu1  ;;  %v5250_v57 = vld [vmem:[#allocation5 + $0x304] ss:$8 sps:$4 sm:$0xff]   ;;  %v5253_v48 = vld [vmem:[#allocation5 + $0x314] ss:$8 sps:$4 sm:$0xff]  }
 0x22f   :  { %v717_v52 = vadd.f32 %v716_v31, %v517_v56  ;;  %v718_v22 = vpop.f32.mrb[2].mxu1  ;;  %1435 = vmatprep.subr.bf16.mxu0 %v5250_v57  ;;  %v5254_v31 = vld [vmem:[#allocation5 + $0x320] ss:$8 sps:$4 sm:$0xff]   ;;  %v5257_v56 = vld [vmem:[#allocation5 + $0x330] ss:$8 sps:$4 sm:$0xff]  }
 0x230   :  { %v721_v60 = vmax.f32 %v715_v23, 0.0  ;;  %v719_v30 = vpop.f32.mrb[3].mxu1  ;;  %v5251_v22 = vld [vmem:[#allocation5 + $0x310] ss:$8 sps:$4 sm:$0xff]   ;;  %v5262_v23 = vld [vmem:[#allocation5 + $0x344] ss:$8 sps:$4 sm:$0xff]  }
 0x231   :  { %v722_v63 = vmax.f32 %v717_v52, 0.0  ;;  %v5256_v30 = vld [vmem:[#allocation5 + $0x324] ss:$8 sps:$4 sm:$0xff]   ;;  %v5260_v52 = vld [vmem:[#allocation5 + $0x340] ss:$8 sps:$4 sm:$0xff]  }
 0x232   :  { %v756_v51 = vpack.c.bf16 %v721_v60, %v721_v60  ;;  %v5263_v60 = vld [vmem:[#allocation5 + $0x350] ss:$8 sps:$4 sm:$0xff]   ;;  %v5277_v57 = vld [vmem:[#allocation5 + $0x394] ss:$8 sps:$4 sm:$0xff]  }
 0x233   :  { %v757_v21 = vpack.c.bf16 %v722_v63, %v722_v63  ;;  %v5268_v63 = vld [vmem:[#allocation5 + $0x364] ss:$8 sps:$4 sm:$0xff]  }
 0x235   :  { %963 = vmatprep.mubr.bf16.mxu0 %v757_v21  ;;  %v5259_v21 = vld [vmem:[#allocation5 + $0x334] ss:$8 sps:$4 sm:$0xff]  }
 0x236   :  { %964 = vmatmul.mubr.bf16.vlgmr.msra.gmra.mrb[4].mxu0 %v756_v51  ;;  %v5266_v51 = vld [vmem:[#allocation5 + $0x360] ss:$8 sps:$4 sm:$0xff]  }
 0x237   :  { %1436 = vmatpush1.bf16.msra.mxu0 %v5248_v55  ;;  %v5272_v55 = vld [vmem:[#allocation5 + $0x380] ss:$8 sps:$4 sm:$0xff]  }
 0x238   :  { %1437 = vmatprep.subr.bf16.mxu0 %v5253_v48  ;;  %v5275_v48 = vld [vmem:[#allocation5 + $0x390] ss:$8 sps:$4 sm:$0xff]  }
 0x23b   :  { %1438 = vmatpush1.bf16.msra.mxu0 %v5251_v22  ;;  %v5280_v22 = vld [vmem:[#allocation5 + $0x3a4] ss:$8 sps:$4 sm:$0xff]  }
 0x23c   :  { %1439 = vmatprep.subr.bf16.mxu0 %v5256_v30  ;;  %v5278_v30 = vld [vmem:[#allocation5 + $0x3a0] ss:$8 sps:$4 sm:$0xff]  }
 0x23f   :  { %1440 = vmatpush1.bf16.msra.mxu0 %v5254_v31  ;;  %v5283_v31 = vld [vmem:[#allocation5 + $0x3b4] ss:$8 sps:$4 sm:$0xff]  }
 0x240   :  { %1441 = vmatprep.subr.bf16.mxu0 %v5259_v21  ;;  %v5281_v21 = vld [vmem:[#allocation5 + $0x3b0] ss:$8 sps:$4 sm:$0xff]  }
 0x243   :  { %1442 = vmatpush1.bf16.msra.mxu0 %v5257_v56  ;;  %v5286_v56 = vld [vmem:[#allocation5 + $0x3c4] ss:$8 sps:$4 sm:$0xff]  }
 0x244   :  { %1443 = vmatprep.subr.bf16.mxu0 %v5262_v23  ;;  %v5284_v23 = vld [vmem:[#allocation5 + $0x3c0] ss:$8 sps:$4 sm:$0xff]  }
 0x247   :  { %1444 = vmatpush1.bf16.msra.mxu0 %v5260_v52  ;;  %v5289_v52 = vld [vmem:[#allocation5 + $0x3d4] ss:$8 sps:$4 sm:$0xff]  }
 0x248   :  { %1445 = vmatprep.subr.bf16.mxu0 %v5265_v29  ;;  %v5287_v29 = vld [vmem:[#allocation5 + $0x3d0] ss:$8 sps:$4 sm:$0xff]  }
 0x24b   :  { %1446 = vmatpush1.bf16.msra.mxu0 %v5263_v60  ;;  %v759_v60 = vld [vmem:[#allocation8 + $0x2] ss:$8 sm:$0x3] }
 0x24c   :  { %1447 = vmatprep.subr.bf16.mxu0 %v5268_v63  ;;  %v764_v63 = vrot.slane %v759_v60, %v6029_v53 }
 0x24f   :  { %1448 = vmatpush1.bf16.msra.mxu0 %v5266_v51  ;;  %v768_v51 = vrot.slane %v759_v60, %v6032_v62  ;;  %v5293_v60 = vld [vmem:[#allocation5 + $0x3f0] ss:$8 sps:$4 sm:$0xff]  }
 0x250   :  { %1449 = vmatprep.subr.bf16.mxu0 %v5271_v59 }
 0x253   :  { %1450 = vmatpush1.bf16.msra.mxu0 %v5269_v50 }
 0x254   :  { %1451 = vmatprep.subr.bf16.mxu0 %v5274_v49 }
 0x257   :  { %1452 = vmatpush1.bf16.msra.mxu0 %v5272_v55 }
 0x258   :  { %1453 = vmatprep.subr.bf16.mxu0 %v5277_v57 }
 0x25b   :  { %1454 = vmatpush1.bf16.msra.mxu0 %v5275_v48 }
 0x25c   :  { %1455 = vmatprep.subr.bf16.mxu0 %v5280_v22 }
 0x25f   :  { %1456 = vmatpush1.bf16.msra.mxu0 %v5278_v30 }
 0x260   :  { %1457 = vmatprep.subr.bf16.mxu0 %v5283_v31 }
 0x263   :  { %1458 = vmatpush1.bf16.msra.mxu0 %v5281_v21 }
 0x264   :  { %1459 = vmatprep.subr.bf16.mxu0 %v5286_v56 }
 0x267   :  { %1460 = vmatpush1.bf16.msra.mxu0 %v5284_v23 }
 0x268   :  { %1461 = vmatprep.subr.bf16.mxu0 %v5289_v52  ;;  %v5292_v52 = vld [vmem:[#allocation5 + $0x3e4] ss:$8 sps:$4 sm:$0xff]  }
 0x26b   :  { %1462 = vmatpush1.bf16.msra.mxu0 %v5287_v29  ;;  %v5290_v29 = vld [vmem:[#allocation5 + $0x3e0] ss:$8 sps:$4 sm:$0xff]  }
 0x26c   :  { %1463 = vmatprep.subr.bf16.mxu0 %v5292_v52  ;;  %v5314_v52 = vld [vmem:[#allocation5 + $0x460] ss:$8 sps:$4 sm:$0xff]  }
 0x26f   :  { %1464 = vmatpush1.bf16.msra.mxu0 %v5290_v29  ;;  %v5319_v29 = vld [vmem:[#allocation5 + $0x474] ss:$8 sps:$4 sm:$0xff]  }
 0x309   :  { %v965_v59 = vpop.f32.mrb[4].mxu0 }
 0x30a   :  { %v966_v50 = vadd.f32 %v965_v59, %v764_v63  ;;  %v967_v49 = vpop.f32.mrb[5].mxu0  ;;  %v5298_v63 = vld [vmem:[#allocation5 + $0x404] ss:$8 sps:$4 sm:$0xff]   ;;  %v5299_v59 = vld [vmem:[#allocation5 + $0x410] ss:$8 sps:$4 sm:$0xff]  }
 0x30b   :  { %v968_v55 = vadd.f32 %v967_v49, %v768_v51  ;;  %v969_v57 = vpop.f32.mrb[6].mxu0  ;;  %v5301_v51 = vld [vmem:[#allocation5 + $0x414] ss:$8 sps:$4 sm:$0xff]   ;;  %1688 = vmatprep.subr.bf16.mxu1 %v5298_v63  ;;  %v5302_v49 = vld [vmem:[#allocation5 + $0x420] ss:$8 sps:$4 sm:$0xff]  }
 0x30c   :  { %v972_v48 = vadd.f32 %v966_v50, %v6036_v61  ;;  %v970_v22 = vpop.f32.mrb[7].mxu0  ;;  %v5295_v61 = vld [vmem:[#allocation5 + $0x3f4] ss:$8 sps:$4 sm:$0xff]   ;;  %v5304_v50 = vld [vmem:[#allocation5 + $0x424] ss:$8 sps:$4 sm:$0xff]  }
 0x30d   :  { %v973_v30 = vadd.f32 %v968_v55, %v6038_v58  ;;  %1465 = vmatprep.subr.bf16.mxu0 %v5295_v61  ;;  %v5296_v58 = vld [vmem:[#allocation5 + $0x400] ss:$8 sps:$4 sm:$0xff]   ;;  %v5307_v55 = vld [vmem:[#allocation5 + $0x434] ss:$8 sps:$4 sm:$0xff]   ;;  %v5305_v57 = vld [vmem:[#allocation5 + $0x430] ss:$8 sps:$4 sm:$0xff]  }
 0x30e   :  { %v6050_v31 = vmax.f32 %v972_v48, 0.0  ;;  %1466 = vmatpush1.bf16.msra.mxu0 %v5293_v60  ;;  %v5310_v48 = vld [vmem:[#allocation5 + $0x444] ss:$8 sps:$4 sm:$0xff]   ;;  %v5308_v22 = vld [vmem:[#allocation5 + $0x440] ss:$8 sps:$4 sm:$0xff]  }
 0x30f   :  { %v6052_v21 = vmax.f32 %v973_v30, 0.0  ;;  %v5313_v30 = vld [vmem:[#allocation5 + $0x454] ss:$8 sps:$4 sm:$0xff]   ;;  %v5317_v61 = vld [vmem:[#allocation5 + $0x470] ss:$8 sps:$4 sm:$0xff]  }
 0x310   :  { %v1009_v23 = vpack.c.bf16 %v6050_v31, %v6050_v31  ;;  %v5322_v60 = vld [vmem:[#allocation5 + $0x484] ss:$8 sps:$4 sm:$0xff]   ;;  %v5325_v63 = vld [vmem:[#allocation5 + $0x494] ss:$8 sps:$4 sm:$0xff]  }
 0x311   :  { %v1010_v56 = vpack.c.bf16 %v6052_v21, %v6052_v21 }
 0x313   :  { %1216 = vmatprep.mubr.bf16.mxu1 %v1010_v56  ;;  %v5311_v56 = vld [vmem:[#allocation5 + $0x450] ss:$8 sps:$4 sm:$0xff]  }
 0x314   :  { %1217 = vmatmul.mubr.bf16.vlgmr.msra.gmra.mrb[4].mxu1 %v1009_v23  ;;  %v5316_v23 = vld [vmem:[#allocation5 + $0x464] ss:$8 sps:$4 sm:$0xff]  }
 0x315   :  { %1689 = vmatpush1.bf16.msra.mxu1 %v5296_v58  ;;  %v5320_v58 = vld [vmem:[#allocation5 + $0x480] ss:$8 sps:$4 sm:$0xff]  }
 0x316   :  { %1690 = vmatprep.subr.bf16.mxu1 %v5301_v51  ;;  %v5323_v51 = vld [vmem:[#allocation5 + $0x490] ss:$8 sps:$4 sm:$0xff]  }
 0x319   :  { %1691 = vmatpush1.bf16.msra.mxu1 %v5299_v59  ;;  %v5328_v59 = vld [vmem:[#allocation5 + $0x4a4] ss:$8 sps:$4 sm:$0xff]  }
 0x31a   :  { %1692 = vmatprep.subr.bf16.mxu1 %v5304_v50  ;;  %v5326_v50 = vld [vmem:[#allocation5 + $0x4a0] ss:$8 sps:$4 sm:$0xff]  }
 0x31d   :  { %1693 = vmatpush1.bf16.msra.mxu1 %v5302_v49  ;;  %v5331_v49 = vld [vmem:[#allocation5 + $0x4b4] ss:$8 sps:$4 sm:$0xff]  }
 0x31e   :  { %1694 = vmatprep.subr.bf16.mxu1 %v5307_v55  ;;  %v5329_v55 = vld [vmem:[#allocation5 + $0x4b0] ss:$8 sps:$4 sm:$0xff]  }
 0x321   :  { %1695 = vmatpush1.bf16.msra.mxu1 %v5305_v57  ;;  %v5334_v57 = vld [vmem:[#allocation5 + $0x4c4] ss:$8 sps:$4 sm:$0xff]  }
 0x322   :  { %1696 = vmatprep.subr.bf16.mxu1 %v5310_v48  ;;  %v5332_v48 = vld [vmem:[#allocation5 + $0x4c0] ss:$8 sps:$4 sm:$0xff]  }
 0x325   :  { %1697 = vmatpush1.bf16.msra.mxu1 %v5308_v22  ;;  %v5337_v22 = vld [vmem:[#allocation5 + $0x4d4] ss:$8 sps:$4 sm:$0xff]  }
 0x326   :  { %1698 = vmatprep.subr.bf16.mxu1 %v5313_v30  ;;  %v5335_v30 = vld [vmem:[#allocation5 + $0x4d0] ss:$8 sps:$4 sm:$0xff]  }
 0x329   :  { %1699 = vmatpush1.bf16.msra.mxu1 %v5311_v56  ;;  %v1012_v56 = vld [vmem:[#allocation8 + $0x3] ss:$8 sm:$0x3] }
 0x32a   :  { %1700 = vmatprep.subr.bf16.mxu1 %v5316_v23  ;;  %v1017_v23 = vrot.slane %v1012_v56, %v6029_v53 }
 0x32d   :  { %1701 = vmatpush1.bf16.msra.mxu1 %v5314_v52  ;;  %v1021_v52 = vrot.slane %v1012_v56, %v6032_v62  ;;  %v5344_v56 = vld [vmem:[#allocation5 + $0x500] ss:$8 sps:$4 sm:$0xff]  }
 0x32e   :  { %1702 = vmatprep.subr.bf16.mxu1 %v5319_v29 }
 0x331   :  { %1703 = vmatpush1.bf16.msra.mxu1 %v5317_v61 }
 0x332   :  { %1704 = vmatprep.subr.bf16.mxu1 %v5322_v60 }
 0x335   :  { %1705 = vmatpush1.bf16.msra.mxu1 %v5320_v58 }
 0x336   :  { %1706 = vmatprep.subr.bf16.mxu1 %v5325_v63 }
 0x339   :  { %1707 = vmatpush1.bf16.msra.mxu1 %v5323_v51 }
 0x33a   :  { %1708 = vmatprep.subr.bf16.mxu1 %v5328_v59 }
 0x33d   :  { %1709 = vmatpush1.bf16.msra.mxu1 %v5326_v50 }
 0x33e   :  { %1710 = vmatprep.subr.bf16.mxu1 %v5331_v49 }
 0x341   :  { %1711 = vmatpush1.bf16.msra.mxu1 %v5329_v55 }
 0x342   :  { %1712 = vmatprep.subr.bf16.mxu1 %v5334_v57  ;;  %v5340_v57 = vld [vmem:[#allocation5 + $0x4e4] ss:$8 sps:$4 sm:$0xff]  }
 0x345   :  { %1713 = vmatpush1.bf16.msra.mxu1 %v5332_v48  ;;  %v5338_v48 = vld [vmem:[#allocation5 + $0x4e0] ss:$8 sps:$4 sm:$0xff]  }
 0x346   :  { %1714 = vmatprep.subr.bf16.mxu1 %v5337_v22  ;;  %v5343_v22 = vld [vmem:[#allocation5 + $0x4f4] ss:$8 sps:$4 sm:$0xff]  }
 0x349   :  { %1715 = vmatpush1.bf16.msra.mxu1 %v5335_v30  ;;  %v5341_v30 = vld [vmem:[#allocation5 + $0x4f0] ss:$8 sps:$4 sm:$0xff]  }
 0x34a   :  { %1716 = vmatprep.subr.bf16.mxu1 %v5340_v57  ;;  %v5362_v57 = vld [vmem:[#allocation5 + $0x560] ss:$8 sps:$4 sm:$0xff]  }
 0x34d   :  { %1717 = vmatpush1.bf16.msra.mxu1 %v5338_v48  ;;  %v5367_v48 = vld [vmem:[#allocation5 + $0x574] ss:$8 sps:$4 sm:$0xff]  }
 0x34e   :  { %1718 = vmatprep.subr.bf16.mxu1 %v5343_v22  ;;  %v5365_v22 = vld [vmem:[#allocation5 + $0x570] ss:$8 sps:$4 sm:$0xff]  }
 0x351   :  { %1719 = vmatpush1.bf16.msra.mxu1 %v5341_v30  ;;  %v5370_v30 = vld [vmem:[#allocation5 + $0x584] ss:$8 sps:$4 sm:$0xff]  }
 0x3e7   :  { %v1218_v29 = vpop.f32.mrb[4].mxu1 }
 0x3e8   :  { %v1219_v61 = vadd.f32 %v1218_v29, %v1017_v23  ;;  %v1220_v60 = vpop.f32.mrb[5].mxu1  ;;  %v5346_v23 = vld [vmem:[#allocation5 + $0x504] ss:$8 sps:$4 sm:$0xff]   ;;  %v5349_v29 = vld [vmem:[#allocation5 + $0x514] ss:$8 sps:$4 sm:$0xff]  }
 0x3e9   :  { %v1221_v58 = vadd.f32 %v1220_v60, %v1021_v52  ;;  %v1222_v63 = vpop.f32.mrb[6].mxu1  ;;  %1939 = vmatprep.subr.bf16.mxu0 %v5346_v23  ;;  %v5347_v52 = vld [vmem:[#allocation5 + $0x510] ss:$8 sps:$4 sm:$0xff]   ;;  %v5350_v60 = vld [vmem:[#allocation5 + $0x520] ss:$8 sps:$4 sm:$0xff]  }
 0x3ea   :  { %v1225_v51 = vmax.f32 %v1219_v61, 0.0  ;;  %v1223_v59 = vpop.f32.mrb[7].mxu1  ;;  %v5352_v61 = vld [vmem:[#allocation5 + $0x524] ss:$8 sps:$4 sm:$0xff]   ;;  %v5353_v63 = vld [vmem:[#allocation5 + $0x530] ss:$8 sps:$4 sm:$0xff]  }
 0x3eb   :  { %v1226_v50 = vmax.f32 %v1221_v58, 0.0  ;;  %v5355_v58 = vld [vmem:[#allocation5 + $0x534] ss:$8 sps:$4 sm:$0xff]   ;;  %v5356_v59 = vld [vmem:[#allocation5 + $0x540] ss:$8 sps:$4 sm:$0xff]  }
 0x3ec   :  { %v1260_v55 = vpack.c.bf16 %v1225_v51, %v1225_v51  ;;  %v5358_v51 = vld [vmem:[#allocation5 + $0x544] ss:$8 sps:$4 sm:$0xff]   ;;  %v5373_v23 = vld [vmem:[#allocation5 + $0x594] ss:$8 sps:$4 sm:$0xff]  }
 0x3ed   :  { %v1261_v49 = vpack.c.bf16 %v1226_v50, %v1226_v50  ;;  %v5361_v50 = vld [vmem:[#allocation5 + $0x554] ss:$8 sps:$4 sm:$0xff]  }
 0x3ef   :  { %1467 = vmatprep.mubr.bf16.mxu0 %v1261_v49  ;;  %v5359_v49 = vld [vmem:[#allocation5 + $0x550] ss:$8 sps:$4 sm:$0xff]  }
 0x3f0   :  { %1468 = vmatmul.mubr.bf16.vlgmr.msra.gmra.mrb[8].mxu0 %v1260_v55  ;;  %v5364_v55 = vld [vmem:[#allocation5 + $0x564] ss:$8 sps:$4 sm:$0xff]  }
 0x3f1   :  { %1940 = vmatpush1.bf16.msra.mxu0 %v5344_v56  ;;  %v5368_v56 = vld [vmem:[#allocation5 + $0x580] ss:$8 sps:$4 sm:$0xff]  }
 0x3f2   :  { %1941 = vmatprep.subr.bf16.mxu0 %v5349_v29  ;;  %v5371_v29 = vld [vmem:[#allocation5 + $0x590] ss:$8 sps:$4 sm:$0xff]  }
 0x3f5   :  { %1942 = vmatpush1.bf16.msra.mxu0 %v5347_v52  ;;  %v5376_v52 = vld [vmem:[#allocation5 + $0x5a4] ss:$8 sps:$4 sm:$0xff]  }
 0x3f6   :  { %1943 = vmatprep.subr.bf16.mxu0 %v5352_v61  ;;  %v5374_v61 = vld [vmem:[#allocation5 + $0x5a0] ss:$8 sps:$4 sm:$0xff]  }
 0x3f9   :  { %1944 = vmatpush1.bf16.msra.mxu0 %v5350_v60  ;;  %v5379_v60 = vld [vmem:[#allocation5 + $0x5b4] ss:$8 sps:$4 sm:$0xff]  }
 0x3fa   :  { %1945 = vmatprep.subr.bf16.mxu0 %v5355_v58  ;;  %v5377_v58 = vld [vmem:[#allocation5 + $0x5b0] ss:$8 sps:$4 sm:$0xff]  }
 0x3fd   :  { %1946 = vmatpush1.bf16.msra.mxu0 %v5353_v63  ;;  %v5382_v63 = vld [vmem:[#allocation5 + $0x5c4] ss:$8 sps:$4 sm:$0xff]  }
 0x3fe   :  { %1947 = vmatprep.subr.bf16.mxu0 %v5358_v51  ;;  %v5380_v51 = vld [vmem:[#allocation5 + $0x5c0] ss:$8 sps:$4 sm:$0xff]  }
 0x401   :  { %1948 = vmatpush1.bf16.msra.mxu0 %v5356_v59  ;;  %v5385_v59 = vld [vmem:[#allocation5 + $0x5d4] ss:$8 sps:$4 sm:$0xff]  }
 0x402   :  { %1949 = vmatprep.subr.bf16.mxu0 %v5361_v50  ;;  %v5383_v50 = vld [vmem:[#allocation5 + $0x5d0] ss:$8 sps:$4 sm:$0xff]  }
 0x405   :  { %1950 = vmatpush1.bf16.msra.mxu0 %v5359_v49  ;;  %v1263_v49 = vld [vmem:[#allocation8 + $0x4] ss:$8 sm:$0x3] }
 0x406   :  { %1951 = vmatprep.subr.bf16.mxu0 %v5364_v55  ;;  %v1268_v55 = vrot.slane %v1263_v49, %v6029_v53 }
 0x409   :  { %1952 = vmatpush1.bf16.msra.mxu0 %v5362_v57  ;;  %v1272_v57 = vrot.slane %v1263_v49, %v6032_v62  ;;  %v5391_v49 = vld [vmem:[#allocation5 + $0x5f4] ss:$8 sps:$4 sm:$0xff]  }
 0x40a   :  { %1953 = vmatprep.subr.bf16.mxu0 %v5367_v48 }
 0x40d   :  { %1954 = vmatpush1.bf16.msra.mxu0 %v5365_v22 }
 0x40e   :  { %1955 = vmatprep.subr.bf16.mxu0 %v5370_v30 }
 0x411   :  { %1956 = vmatpush1.bf16.msra.mxu0 %v5368_v56 }
 0x412   :  { %1957 = vmatprep.subr.bf16.mxu0 %v5373_v23 }
 0x415   :  { %1958 = vmatpush1.bf16.msra.mxu0 %v5371_v29 }
 0x416   :  { %1959 = vmatprep.subr.bf16.mxu0 %v5376_v52 }
 0x419   :  { %1960 = vmatpush1.bf16.msra.mxu0 %v5374_v61 }
 0x41a   :  { %1961 = vmatprep.subr.bf16.mxu0 %v5379_v60 }
 0x41d   :  { %1962 = vmatpush1.bf16.msra.mxu0 %v5377_v58 }
 0x41e   :  { %1963 = vmatprep.subr.bf16.mxu0 %v5382_v63 }
 0x421   :  { %1964 = vmatpush1.bf16.msra.mxu0 %v5380_v51 }
 0x422   :  { %1965 = vmatprep.subr.bf16.mxu0 %v5385_v59  ;;  %v5388_v59 = vld [vmem:[#allocation5 + $0x5e4] ss:$8 sps:$4 sm:$0xff]  }
 0x425   :  { %1966 = vmatpush1.bf16.msra.mxu0 %v5383_v50  ;;  %v5386_v50 = vld [vmem:[#allocation5 + $0x5e0] ss:$8 sps:$4 sm:$0xff]  }
 0x426   :  { %1967 = vmatprep.subr.bf16.mxu0 %v5388_v59  ;;  %v1767_v59 = vld [vmem:[#allocation8 + $0x6] ss:$8 sm:$0x3] }
 0x429   :  { %1968 = vmatpush1.bf16.msra.mxu0 %v5386_v50  ;;  %v1772_v50 = vrot.slane %v1767_v59, %v6029_v53 }
 0x42a   :  { %1969 = vmatprep.subr.bf16.mxu0 %v5391_v49  ;;  %v1776_v49 = vrot.slane %v1767_v59, %v6032_v62 }
 0x4c3   :  { %v1469_v48 = vpop.f32.mrb[8].mxu0 }
 0x4c4   :  { %v1470_v22 = vadd.f32 %v1469_v48, %v1268_v55  ;;  %v1471_v30 = vpop.f32.mrb[9].mxu0  ;;  %v5389_v55 = vld [vmem:[#allocation5 + $0x5f0] ss:$8 sps:$4 sm:$0xff]  }
 0x4c5   :  { %v1472_v56 = vadd.f32 %v1471_v30, %v1272_v57  ;;  %v1473_v23 = vpop.f32.mrb[10].mxu0  ;;  %1970 = vmatpush1.bf16.msra.mxu0 %v5389_v55  ;;  %v1516_v57 = vld [vmem:[#allocation8 + $0x5] ss:$8 sm:$0x3] }
 0x4c6   :  { %v1476_v29 = vadd.f32 %v1470_v22, %v6050_v31  ;;  %v1474_v52 = vpop.f32.mrb[11].mxu0  ;;  %v1521_v31 = vrot.slane %v1516_v57, %v6029_v53  ;;  %v1525_v48 = vrot.slane %v1516_v57, %v6032_v62 }
 0x4c7   :  { %v1477_v61 = vadd.f32 %v1472_v56, %v6052_v21 }
 0x4c8   :  { %v1478_v60 = vmax.f32 %v1476_v29, 0.0 }
 0x4c9   :  { %v1479_v58 = vmax.f32 %v1477_v61, 0.0 }
 0x4ca   :  { %v1513_v51 = vpack.c.bf16 %v1478_v60, %v1478_v60 }
 0x4cb   :  { %v1514_v63 = vpack.c.bf16 %v1479_v58, %v1479_v58 }
 0x4cd   :  { %1720 = vmatprep.mubr.bf16.mxu1 %v1514_v63 }
 0x4ce   :  { %1721 = vmatmul.mubr.bf16.vlgmr.msra.gmra.mrb[8].mxu1 %v1513_v51 }
 0x5a1   :  { %v1722_v21 = vpop.f32.mrb[8].mxu1 }
 0x5a2   :  { %v1723_v22 = vadd.f32 %v1722_v21, %v1521_v31  ;;  %v1724_v30 = vpop.f32.mrb[9].mxu1 }
 0x5a3   :  { %v1725_v56 = vadd.f32 %v1724_v30, %v1525_v48  ;;  %v1726_v23 = vpop.f32.mrb[10].mxu1 }
 0x5a4   :  { %v1729_v29 = vmax.f32 %v1723_v22, 0.0  ;;  %v1727_v52 = vpop.f32.mrb[11].mxu1 }
 0x5a5   :  { %v1730_v61 = vmax.f32 %v1725_v56, 0.0 }
 0x5a6   :  { %v1764_v51 = vpack.c.bf16 %v1729_v29, %v1729_v29 }
 0x5a7   :  { %v1765_v63 = vpack.c.bf16 %v1730_v61, %v1730_v61 }
 0x5a9   :  { %1971 = vmatprep.mubr.bf16.mxu0 %v1765_v63 }
 0x5aa   :  { %1972 = vmatmul.mubr.bf16.vlgmr.msra.gmra.mrb[12].mxu0 %v1764_v51 }
 0x67d   :  { %v1973_v55 = vpop.f32.mrb[12].mxu0 }
 0x67e   :  { %v1974_v20 = vadd.f32 %v1973_v55, %v1772_v50  ;;  %v1975_v57 = vpop.f32.mrb[13].mxu0 }
 0x67f   :  { %v1976_v28 = vadd.f32 %v1975_v57, %v1776_v49  ;;  %v1977_v31 = vpop.f32.mrb[14].mxu0 }
 0x680   :  { %v6068_v21 = vadd.f32 %v1974_v20, %v1478_v60  ;;  %v1978_v48 = vpop.f32.mrb[15].mxu0 }
 0x681   :  { %v1981_v22 = vadd.f32 %v1976_v28, %v1479_v58 }
 0x682   :  { %v1982_v30 = vmax.f32 %v6068_v21, 0.0 }
 0x683   :  { %v1983_v56 = vmax.f32 %v1981_v22, 0.0 }
 0x684   :  { %5503 = dma.done.wait [#allocation4], 16384 }
 0x685   :  { %5504 = vsyncadd [#allocation4], 4294950912  ;;  %v6071_v23 = vpack.c.bf16 %v1983_v56, %v1983_v56  ;;  %v1989_v29 = vld [vmem:[#allocation2 + $0x8] sm:$0xff]  ;;  %v1991_v52 = vld [vmem:[#allocation2 + $0x18] sm:$0xff] }
 0x686   :  { %v1988_v61 = vld [vmem:[#allocation2] sm:$0xff]  ;;  %2163 = vmatprep.subr.bf16.mxu1 %v1989_v29  ;;  %2204 = vmatprep.subr.bf16.mxu0 %v1991_v52  ;;  %v1990_v20 = vld [vmem:[#allocation2 + $0x10] sm:$0xff]  ;;  %v1997_v60 = vld [vmem:[#allocation2 + $0x48] sm:$0xff] }
 0x687   :  { %2195 = vmatprep.mubr.bf16.mxu1 %v6071_v23  ;;  %2236 = vmatprep.mubr.bf16.mxu0 %v6071_v23  ;;  %v1999_v63 = vld [vmem:[#allocation2 + $0x58] sm:$0xff]  ;;  %v1996_v28 = vld [vmem:[#allocation2 + $0x40] sm:$0xff]  ;;  %v1998_v58 = vld [vmem:[#allocation2 + $0x50] sm:$0xff] }
 0x688   :  { %2164 = vmatpush1.bf16.msra.mxu1 %v1988_v61  ;;  %2205 = vmatpush1.bf16.msra.mxu0 %v1990_v20  ;;  %v2005_v51 = vld [vmem:[#allocation2 + $0x88] sm:$0xff]  ;;  %v2007_v59 = vld [vmem:[#allocation2 + $0x98] sm:$0xff]  ;;  %v2004_v50 = vld [vmem:[#allocation2 + $0x80] sm:$0xff] }
 0x689   :  { %2165 = vmatprep.subr.bf16.mxu1 %v1997_v60  ;;  %2206 = vmatprep.subr.bf16.mxu0 %v1999_v63  ;;  %v2006_v49 = vld [vmem:[#allocation2 + $0x90] sm:$0xff]  ;;  %v2013_v55 = vld [vmem:[#allocation2 + $0xc8] sm:$0xff]  ;;  %v2015_v57 = vld [vmem:[#allocation2 + $0xd8] sm:$0xff] }
 0x68a   :  { %v2012_v31 = vld [vmem:[#allocation2 + $0xc0] sm:$0xff]  ;;  %v2014_v48 = vld [vmem:[#allocation2 + $0xd0] sm:$0xff]  ;;  %v2021_v22 = vld [vmem:[#allocation2 + $0x108] sm:$0xff] }
 0x68b   :  { %v2023_v56 = vld [vmem:[#allocation2 + $0x118] sm:$0xff]  ;;  %v2020_v29 = vld [vmem:[#allocation2 + $0x100] sm:$0xff]  ;;  %v2022_v52 = vld [vmem:[#allocation2 + $0x110] sm:$0xff] }
 0x68c   :  { %2166 = vmatpush1.bf16.msra.mxu1 %v1996_v28  ;;  %2207 = vmatpush1.bf16.msra.mxu0 %v1998_v58  ;;  %v2029_v61 = vld [vmem:[#allocation2 + $0x148] sm:$0xff]  ;;  %v2031_v20 = vld [vmem:[#allocation2 + $0x158] sm:$0xff]  ;;  %v2028_v60 = vld [vmem:[#allocation2 + $0x140] sm:$0xff] }
 0x68d   :  { %2167 = vmatprep.subr.bf16.mxu1 %v2005_v51  ;;  %2208 = vmatprep.subr.bf16.mxu0 %v2007_v59  ;;  %v2030_v63 = vld [vmem:[#allocation2 + $0x150] sm:$0xff]  ;;  %v2037_v28 = vld [vmem:[#allocation2 + $0x188] sm:$0xff]  ;;  %v2039_v58 = vld [vmem:[#allocation2 + $0x198] sm:$0xff] }
 0x68e   :  { %v2036_v51 = vld [vmem:[#allocation2 + $0x180] sm:$0xff]  ;;  %v2038_v59 = vld [vmem:[#allocation2 + $0x190] sm:$0xff] }
 0x68f   :  { %v2000_v21 = vld [vmem:[#allocation2 + $0x60] sm:$0xff] }
 0x690   :  { %2168 = vmatpush1.bf16.msra.mxu1 %v2004_v50  ;;  %2209 = vmatpush1.bf16.msra.mxu0 %v2006_v49  ;;  %v2045_v50 = vld [vmem:[#allocation2 + $0x1c8] sm:$0xff]  ;;  %v2047_v49 = vld [vmem:[#allocation2 + $0x1d8] sm:$0xff] }
 0x691   :  { %2169 = vmatprep.subr.bf16.mxu1 %v2013_v55  ;;  %2210 = vmatprep.subr.bf16.mxu0 %v2015_v57  ;;  %v2044_v55 = vld [vmem:[#allocation2 + $0x1c0] sm:$0xff]  ;;  %v2046_v57 = vld [vmem:[#allocation2 + $0x1d0] sm:$0xff] }
 0x694   :  { %2170 = vmatpush1.bf16.msra.mxu1 %v2012_v31  ;;  %2211 = vmatpush1.bf16.msra.mxu0 %v2014_v48  ;;  %v2053_v31 = vld [vmem:[#allocation2 + $0x208] sm:$0xff]  ;;  %v2055_v48 = vld [vmem:[#allocation2 + $0x218] sm:$0xff] }
 0x695   :  { %2171 = vmatprep.subr.bf16.mxu1 %v2021_v22  ;;  %2212 = vmatprep.subr.bf16.mxu0 %v2023_v56  ;;  %v2052_v22 = vld [vmem:[#allocation2 + $0x200] sm:$0xff]  ;;  %v2054_v56 = vld [vmem:[#allocation2 + $0x210] sm:$0xff] }
 0x698   :  { %2172 = vmatpush1.bf16.msra.mxu1 %v2020_v29  ;;  %2213 = vmatpush1.bf16.msra.mxu0 %v2022_v52  ;;  %v2061_v29 = vld [vmem:[#allocation2 + $0x248] sm:$0xff]  ;;  %v2063_v52 = vld [vmem:[#allocation2 + $0x258] sm:$0xff] }
 0x699   :  { %2173 = vmatprep.subr.bf16.mxu1 %v2029_v61  ;;  %2214 = vmatprep.subr.bf16.mxu0 %v2031_v20  ;;  %v2060_v61 = vld [vmem:[#allocation2 + $0x240] sm:$0xff]  ;;  %v2062_v20 = vld [vmem:[#allocation2 + $0x250] sm:$0xff] }
 0x69c   :  { %2174 = vmatpush1.bf16.msra.mxu1 %v2028_v60  ;;  %2215 = vmatpush1.bf16.msra.mxu0 %v2030_v63  ;;  %v2069_v60 = vld [vmem:[#allocation2 + $0x288] sm:$0xff]  ;;  %v2071_v63 = vld [vmem:[#allocation2 + $0x298] sm:$0xff] }
 0x69d   :  { %2175 = vmatprep.subr.bf16.mxu1 %v2037_v28  ;;  %2216 = vmatprep.subr.bf16.mxu0 %v2039_v58  ;;  %v2068_v28 = vld [vmem:[#allocation2 + $0x280] sm:$0xff]  ;;  %v2070_v58 = vld [vmem:[#allocation2 + $0x290] sm:$0xff] }
 0x6a0   :  { %2176 = vmatpush1.bf16.msra.mxu1 %v2036_v51  ;;  %2217 = vmatpush1.bf16.msra.mxu0 %v2038_v59  ;;  %v2077_v51 = vld [vmem:[#allocation2 + $0x2c8] sm:$0xff]  ;;  %v2079_v59 = vld [vmem:[#allocation2 + $0x2d8] sm:$0xff] }
 0x6a1   :  { %2177 = vmatprep.subr.bf16.mxu1 %v2045_v50  ;;  %2218 = vmatprep.subr.bf16.mxu0 %v2047_v49  ;;  %v2076_v50 = vld [vmem:[#allocation2 + $0x2c0] sm:$0xff]  ;;  %v2078_v49 = vld [vmem:[#allocation2 + $0x2d0] sm:$0xff] }
 0x6a4   :  { %2178 = vmatpush1.bf16.msra.mxu1 %v2044_v55  ;;  %2219 = vmatpush1.bf16.msra.mxu0 %v2046_v57  ;;  %v2085_v55 = vld [vmem:[#allocation2 + $0x308] sm:$0xff]  ;;  %v2087_v57 = vld [vmem:[#allocation2 + $0x318] sm:$0xff] }
 0x6a5   :  { %2179 = vmatprep.subr.bf16.mxu1 %v2053_v31  ;;  %2220 = vmatprep.subr.bf16.mxu0 %v2055_v48  ;;  %v2084_v31 = vld [vmem:[#allocation2 + $0x300] sm:$0xff]  ;;  %v2086_v48 = vld [vmem:[#allocation2 + $0x310] sm:$0xff] }
 0x6a8   :  { %2180 = vmatpush1.bf16.msra.mxu1 %v2052_v22  ;;  %2221 = vmatpush1.bf16.msra.mxu0 %v2054_v56  ;;  %v2093_v22 = vld [vmem:[#allocation2 + $0x348] sm:$0xff]  ;;  %v2095_v56 = vld [vmem:[#allocation2 + $0x358] sm:$0xff] }
 0x6a9   :  { %2181 = vmatprep.subr.bf16.mxu1 %v2061_v29  ;;  %2222 = vmatprep.subr.bf16.mxu0 %v2063_v52  ;;  %v2092_v29 = vld [vmem:[#allocation2 + $0x340] sm:$0xff]  ;;  %v2094_v52 = vld [vmem:[#allocation2 + $0x350] sm:$0xff] }
 0x6ac   :  { %2182 = vmatpush1.bf16.msra.mxu1 %v2060_v61  ;;  %2223 = vmatpush1.bf16.msra.mxu0 %v2062_v20  ;;  %v2101_v61 = vld [vmem:[#allocation2 + $0x388] sm:$0xff]  ;;  %v2103_v20 = vld [vmem:[#allocation2 + $0x398] sm:$0xff] }
 0x6ad   :  { %2183 = vmatprep.subr.bf16.mxu1 %v2069_v60  ;;  %2224 = vmatprep.subr.bf16.mxu0 %v2071_v63  ;;  %v2100_v60 = vld [vmem:[#allocation2 + $0x380] sm:$0xff]  ;;  %v2102_v63 = vld [vmem:[#allocation2 + $0x390] sm:$0xff] }
 0x6b0   :  { %2184 = vmatpush1.bf16.msra.mxu1 %v2068_v28  ;;  %2225 = vmatpush1.bf16.msra.mxu0 %v2070_v58  ;;  %v2109_v28 = vld [vmem:[#allocation2 + $0x3c8] sm:$0xff]  ;;  %v2111_v58 = vld [vmem:[#allocation2 + $0x3d8] sm:$0xff] }
 0x6b1   :  { %2185 = vmatprep.subr.bf16.mxu1 %v2077_v51  ;;  %2226 = vmatprep.subr.bf16.mxu0 %v2079_v59  ;;  %v2108_v51 = vld [vmem:[#allocation2 + $0x3c0] sm:$0xff]  ;;  %v2110_v59 = vld [vmem:[#allocation2 + $0x3d0] sm:$0xff] }
 0x6b4   :  { %2186 = vmatpush1.bf16.msra.mxu1 %v2076_v50  ;;  %2227 = vmatpush1.bf16.msra.mxu0 %v2078_v49  ;;  %v1993_v50 = vld [vmem:[#allocation2 + $0x28] sm:$0xff]  ;;  %v1995_v49 = vld [vmem:[#allocation2 + $0x38] sm:$0xff] }
 0x6b5   :  { %2187 = vmatprep.subr.bf16.mxu1 %v2085_v55  ;;  %2228 = vmatprep.subr.bf16.mxu0 %v2087_v57  ;;  %v6078_v55 = vpack.c.bf16 %v1982_v30, %v1982_v30  ;;  %v1992_v57 = vld [vmem:[#allocation2 + $0x20] sm:$0xff]  ;;  %v2009_v30 = vld [vmem:[#allocation2 + $0xa8] sm:$0xff] }
 0x6b8   :  { %2188 = vmatpush1.bf16.msra.mxu1 %v2084_v31  ;;  %2229 = vmatpush1.bf16.msra.mxu0 %v2086_v48  ;;  %v1994_v31 = vld [vmem:[#allocation2 + $0x30] sm:$0xff]  ;;  %v2001_v48 = vld [vmem:[#allocation2 + $0x68] sm:$0xff] }
 0x6b9   :  { %2189 = vmatprep.subr.bf16.mxu1 %v2093_v22  ;;  %2230 = vmatprep.subr.bf16.mxu0 %v2095_v56  ;;  %v2003_v22 = vld [vmem:[#allocation2 + $0x78] sm:$0xff]  ;;  %v2002_v56 = vld [vmem:[#allocation2 + $0x70] sm:$0xff] }
 0x6bc   :  { %2190 = vmatpush1.bf16.msra.mxu1 %v2092_v29  ;;  %2231 = vmatpush1.bf16.msra.mxu0 %v2094_v52  ;;  %v2011_v29 = vld [vmem:[#allocation2 + $0xb8] sm:$0xff]  ;;  %v2008_v52 = vld [vmem:[#allocation2 + $0xa0] sm:$0xff] }
 0x6bd   :  { %2191 = vmatprep.subr.bf16.mxu1 %v2101_v61  ;;  %2232 = vmatprep.subr.bf16.mxu0 %v2103_v20  ;;  %v2010_v61 = vld [vmem:[#allocation2 + $0xb0] sm:$0xff]  ;;  %v2017_v20 = vld [vmem:[#allocation2 + $0xe8] sm:$0xff] }
 0x6c0   :  { %2192 = vmatpush1.bf16.msra.mxu1 %v2100_v60  ;;  %2233 = vmatpush1.bf16.msra.mxu0 %v2102_v63  ;;  %v2019_v60 = vld [vmem:[#allocation2 + $0xf8] sm:$0xff]  ;;  %v2016_v63 = vld [vmem:[#allocation2 + $0xe0] sm:$0xff] }
 0x6c1   :  { %2193 = vmatprep.subr.bf16.mxu1 %v2109_v28  ;;  %2234 = vmatprep.subr.bf16.mxu0 %v2111_v58  ;;  %v2018_v28 = vld [vmem:[#allocation2 + $0xf0] sm:$0xff]  ;;  %v2025_v58 = vld [vmem:[#allocation2 + $0x128] sm:$0xff] }
 0x6c4   :  { %2194 = vmatpush1.bf16.msra.mxu1 %v2108_v51  ;;  %2235 = vmatpush1.bf16.msra.mxu0 %v2110_v59  ;;  %v2027_v51 = vld [vmem:[#allocation2 + $0x138] sm:$0xff]  ;;  %v2026_v59 = vld [vmem:[#allocation2 + $0x130] sm:$0xff] }
 0x6c5   :  { %2245 = vmatprep.subr.bf16.mxu1 %v1993_v50  ;;  %2286 = vmatprep.subr.bf16.mxu0 %v1995_v49  ;;  %v2033_v50 = vld [vmem:[#allocation2 + $0x168] sm:$0xff]  ;;  %v2035_v49 = vld [vmem:[#allocation2 + $0x178] sm:$0xff] }
 0x6c7   :  { %2196 = vmatmul.mubr.bf16.vlgmr.msra.gmra.mrb[12].mxu1 %v6078_v55  ;;  %2237 = vmatmul.mubr.bf16.vlgmr.msra.gmra.mrb[16].mxu0 %v6078_v55 }
 0x6c8   :  { %2246 = vmatpush1.bf16.msra.mxu1 %v1992_v57  ;;  %2287 = vmatpush1.bf16.msra.mxu0 %v1994_v31  ;;  %v2032_v57 = vld [vmem:[#allocation2 + $0x160] sm:$0xff]  ;;  %v2034_v31 = vld [vmem:[#allocation2 + $0x170] sm:$0xff] }
 0x6c9   :  { %2247 = vmatprep.subr.bf16.mxu1 %v2001_v48  ;;  %2288 = vmatprep.subr.bf16.mxu0 %v2003_v22  ;;  %v2041_v48 = vld [vmem:[#allocation2 + $0x1a8] sm:$0xff]  ;;  %v2043_v22 = vld [vmem:[#allocation2 + $0x1b8] sm:$0xff] }
 0x6ca   :  { %2277 = vmatprep.mubr.bf16.mxu1 %v6071_v23  ;;  %2318 = vmatprep.mubr.bf16.mxu0 %v6071_v23  ;;  %v2024_v23 = vld [vmem:[#allocation2 + $0x120] sm:$0xff] }
 0x6cc   :  { %2248 = vmatpush1.bf16.msra.mxu1 %v2000_v21  ;;  %2289 = vmatpush1.bf16.msra.mxu0 %v2002_v56  ;;  %v2040_v21 = vld [vmem:[#allocation2 + $0x1a0] sm:$0xff]  ;;  %v2042_v56 = vld [vmem:[#allocation2 + $0x1b0] sm:$0xff] }
 0x6cd   :  { %2249 = vmatprep.subr.bf16.mxu1 %v2009_v30  ;;  %2290 = vmatprep.subr.bf16.mxu0 %v2011_v29  ;;  %v2049_v30 = vld [vmem:[#allocation2 + $0x1e8] sm:$0xff]  ;;  %v2051_v29 = vld [vmem:[#allocation2 + $0x1f8] sm:$0xff] }
 0x6d0   :  { %2250 = vmatpush1.bf16.msra.mxu1 %v2008_v52  ;;  %2291 = vmatpush1.bf16.msra.mxu0 %v2010_v61  ;;  %v2048_v52 = vld [vmem:[#allocation2 + $0x1e0] sm:$0xff]  ;;  %v2050_v61 = vld [vmem:[#allocation2 + $0x1f0] sm:$0xff] }
 0x6d1   :  { %2251 = vmatprep.subr.bf16.mxu1 %v2017_v20  ;;  %2292 = vmatprep.subr.bf16.mxu0 %v2019_v60  ;;  %v2057_v20 = vld [vmem:[#allocation2 + $0x228] sm:$0xff]  ;;  %v2059_v60 = vld [vmem:[#allocation2 + $0x238] sm:$0xff] }
 0x6d4   :  { %2252 = vmatpush1.bf16.msra.mxu1 %v2016_v63  ;;  %2293 = vmatpush1.bf16.msra.mxu0 %v2018_v28  ;;  %v2056_v63 = vld [vmem:[#allocation2 + $0x220] sm:$0xff]  ;;  %v2058_v28 = vld [vmem:[#allocation2 + $0x230] sm:$0xff] }
 0x6d5   :  { %2253 = vmatprep.subr.bf16.mxu1 %v2025_v58  ;;  %2294 = vmatprep.subr.bf16.mxu0 %v2027_v51  ;;  %v2065_v58 = vld [vmem:[#allocation2 + $0x268] sm:$0xff]  ;;  %v2067_v51 = vld [vmem:[#allocation2 + $0x278] sm:$0xff] }
 0x6d8   :  { %2254 = vmatpush1.bf16.msra.mxu1 %v2024_v23  ;;  %2295 = vmatpush1.bf16.msra.mxu0 %v2026_v59  ;;  %v2064_v23 = vld [vmem:[#allocation2 + $0x260] sm:$0xff]  ;;  %v2066_v59 = vld [vmem:[#allocation2 + $0x270] sm:$0xff] }
 0x6d9   :  { %2255 = vmatprep.subr.bf16.mxu1 %v2033_v50  ;;  %2296 = vmatprep.subr.bf16.mxu0 %v2035_v49  ;;  %v2073_v50 = vld [vmem:[#allocation2 + $0x2a8] sm:$0xff]  ;;  %v2075_v49 = vld [vmem:[#allocation2 + $0x2b8] sm:$0xff] }
 0x6dc   :  { %2256 = vmatpush1.bf16.msra.mxu1 %v2032_v57  ;;  %2297 = vmatpush1.bf16.msra.mxu0 %v2034_v31  ;;  %v2072_v57 = vld [vmem:[#allocation2 + $0x2a0] sm:$0xff]  ;;  %v2074_v31 = vld [vmem:[#allocation2 + $0x2b0] sm:$0xff] }
 0x6dd   :  { %2257 = vmatprep.subr.bf16.mxu1 %v2041_v48  ;;  %2298 = vmatprep.subr.bf16.mxu0 %v2043_v22  ;;  %v2081_v48 = vld [vmem:[#allocation2 + $0x2e8] sm:$0xff]  ;;  %v2083_v22 = vld [vmem:[#allocation2 + $0x2f8] sm:$0xff] }
 0x6e0   :  { %2258 = vmatpush1.bf16.msra.mxu1 %v2040_v21  ;;  %2299 = vmatpush1.bf16.msra.mxu0 %v2042_v56  ;;  %v2080_v21 = vld [vmem:[#allocation2 + $0x2e0] sm:$0xff]  ;;  %v2082_v56 = vld [vmem:[#allocation2 + $0x2f0] sm:$0xff] }
 0x6e1   :  { %2259 = vmatprep.subr.bf16.mxu1 %v2049_v30  ;;  %2300 = vmatprep.subr.bf16.mxu0 %v2051_v29  ;;  %v2089_v30 = vld [vmem:[#allocation2 + $0x328] sm:$0xff]  ;;  %v2091_v29 = vld [vmem:[#allocation2 + $0x338] sm:$0xff] }
 0x6e4   :  { %2260 = vmatpush1.bf16.msra.mxu1 %v2048_v52  ;;  %2301 = vmatpush1.bf16.msra.mxu0 %v2050_v61  ;;  %v2088_v52 = vld [vmem:[#allocation2 + $0x320] sm:$0xff]  ;;  %v2090_v61 = vld [vmem:[#allocation2 + $0x330] sm:$0xff] }
 0x6e5   :  { %2261 = vmatprep.subr.bf16.mxu1 %v2057_v20  ;;  %2302 = vmatprep.subr.bf16.mxu0 %v2059_v60  ;;  %v2097_v20 = vld [vmem:[#allocation2 + $0x368] sm:$0xff]  ;;  %v2099_v60 = vld [vmem:[#allocation2 + $0x378] sm:$0xff] }
 0x6e8   :  { %2262 = vmatpush1.bf16.msra.mxu1 %v2056_v63  ;;  %2303 = vmatpush1.bf16.msra.mxu0 %v2058_v28  ;;  %v2096_v63 = vld [vmem:[#allocation2 + $0x360] sm:$0xff]  ;;  %v2098_v28 = vld [vmem:[#allocation2 + $0x370] sm:$0xff] }
 0x6e9   :  { %2263 = vmatprep.subr.bf16.mxu1 %v2065_v58  ;;  %2304 = vmatprep.subr.bf16.mxu0 %v2067_v51  ;;  %v2105_v58 = vld [vmem:[#allocation2 + $0x3a8] sm:$0xff]  ;;  %v2107_v51 = vld [vmem:[#allocation2 + $0x3b8] sm:$0xff] }
 0x6ec   :  { %2264 = vmatpush1.bf16.msra.mxu1 %v2064_v23  ;;  %2305 = vmatpush1.bf16.msra.mxu0 %v2066_v59  ;;  %v2104_v23 = vld [vmem:[#allocation2 + $0x3a0] sm:$0xff]  ;;  %v2106_v59 = vld [vmem:[#allocation2 + $0x3b0] sm:$0xff] }
 0x6ed   :  { %2265 = vmatprep.subr.bf16.mxu1 %v2073_v50  ;;  %2306 = vmatprep.subr.bf16.mxu0 %v2075_v49  ;;  %v2113_v50 = vld [vmem:[#allocation2 + $0x3e8] sm:$0xff]  ;;  %v2115_v49 = vld [vmem:[#allocation2 + $0x3f8] sm:$0xff] }
 0x6f0   :  { %2266 = vmatpush1.bf16.msra.mxu1 %v2072_v57  ;;  %2307 = vmatpush1.bf16.msra.mxu0 %v2074_v31  ;;  %v2112_v57 = vld [vmem:[#allocation2 + $0x3e0] sm:$0xff]  ;;  %v2114_v31 = vld [vmem:[#allocation2 + $0x3f0] sm:$0xff] }
 0x6f1   :  { %2267 = vmatprep.subr.bf16.mxu1 %v2081_v48  ;;  %2308 = vmatprep.subr.bf16.mxu0 %v2083_v22  ;;  %v2119_v48 = vld [vmem:[#allocation8 + $0x7] ss:$8 sm:$0xf] }
 0x6f2   :  { %v2120_v22 = vld [vmem:[#allocation8 + $0x7] ss:$8 sm:$0xf0] }
 0x6f4   :  { %2268 = vmatpush1.bf16.msra.mxu1 %v2080_v21  ;;  %2309 = vmatpush1.bf16.msra.mxu0 %v2082_v56  ;;  %v2121_v21 = vor.u32 %v2120_v22, %v2119_v48  ;;  %v2133_v56 = vsub.s32 2, %v6026_v54 }
 0x6f5   :  { %2269 = vmatprep.subr.bf16.mxu1 %v2089_v30  ;;  %2310 = vmatprep.subr.bf16.mxu0 %v2091_v29  ;;  %v2137_v30 = vsub.s32 3, %v6026_v54 }
 0x6f6   :  { %v2126_v29 = vrot.slane %v2121_v21, %v6029_v53 }
 0x6f8   :  { %2270 = vmatpush1.bf16.msra.mxu1 %v2088_v52  ;;  %2311 = vmatpush1.bf16.msra.mxu0 %v2090_v61  ;;  %v2134_v52 = vrot.slane %v2121_v21, %v2133_v56  ;;  %v2130_v61 = vrot.slane %v2121_v21, %v6032_v62  ;;  %v2141_v56 = vsub.s32 4, %v6026_v54 }
 0x6f9   :  { %2271 = vmatprep.subr.bf16.mxu1 %v2097_v20  ;;  %2312 = vmatprep.subr.bf16.mxu0 %v2099_v60  ;;  %v2138_v20 = vrot.slane %v2121_v21, %v2137_v30  ;;  %v2149_v30 = vsub.s32 6, %v6026_v54 }
 0x6fc   :  { %2272 = vmatpush1.bf16.msra.mxu1 %v2096_v63  ;;  %2313 = vmatpush1.bf16.msra.mxu0 %v2098_v28 }
 0x6fd   :  { %2273 = vmatprep.subr.bf16.mxu1 %v2105_v58  ;;  %2314 = vmatprep.subr.bf16.mxu0 %v2107_v51 }
 0x700   :  { %2274 = vmatpush1.bf16.msra.mxu1 %v2104_v23  ;;  %2315 = vmatpush1.bf16.msra.mxu0 %v2106_v59 }
 0x701   :  { %2275 = vmatprep.subr.bf16.mxu1 %v2113_v50  ;;  %2316 = vmatprep.subr.bf16.mxu0 %v2115_v49 }
 0x704   :  { %2276 = vmatpush1.bf16.msra.mxu1 %v2112_v57  ;;  %2317 = vmatpush1.bf16.msra.mxu0 %v2114_v31 }
 0x705   :  { %4556 = vmatprep.subr.bf16.mxu1 %v5666_v8  ;;  %4600 = vmatprep.subr.bf16.mxu0 %v5826_v40 }
 0x707   :  { %2278 = vmatmul.mubr.bf16.vlgmr.msra.gmra.mrb[16].mxu1 %v6078_v55  ;;  %2319 = vmatmul.mubr.bf16.vlgmr.msra.gmra.mrb[20].mxu0 %v6078_v55 }
 0x79a   :  { %v2197_v60 = vpop.f32.mrb[12].mxu1  ;;  %v2238_v63 = vpop.f32.mrb[16].mxu0 }
 0x79b   :  { %v6090_v28 = vadd.f32 %v2197_v60, %v2126_v29  ;;  %v6092_v58 = vadd.f32 %v2238_v63, %v2134_v52  ;;  %v2199_v55 = vpop.f32.mrb[13].mxu1  ;;  %v2240_v51 = vpop.f32.mrb[17].mxu0  ;;  %v2145_v29 = vsub.s32 5, %v6026_v54  ;;  %v2153_v52 = vsub.s32 7, %v6026_v54 }
 0x79c   :  { %v2200_v23 = vadd.f32 %v2199_v55, %v2130_v61  ;;  %v6094_v59 = vadd.f32 %v2240_v51, %v2138_v20  ;;  %v2201_v50 = vpop.f32.mrb[14].mxu1  ;;  %v2242_v49 = vpop.f32.mrb[18].mxu0  ;;  %v2142_v61 = vrot.slane %v2121_v21, %v2141_v56  ;;  %v2150_v20 = vrot.slane %v2121_v21, %v2149_v30 }
 0x79d   :  { %6648 = vst [vmem:[#allocation47_spill] sm:$0xff] %v6092_v58  ;;  %v2202_v31 = vpop.f32.mrb[15].mxu1  ;;  %v2243_v62 = vpop.f32.mrb[19].mxu0  ;;  %v2146_v60 = vrot.slane %v2121_v21, %v2145_v29  ;;  %v2154_v63 = vrot.slane %v2121_v21, %v2153_v52 }
 0x79e   :  { %v2328_v48 = vmax.f32 %v2200_v23, 0.0 }
 0x7da   :  { %v2279_v55 = vpop.f32.mrb[16].mxu1  ;;  %v2320_v51 = vpop.f32.mrb[20].mxu0 }
 0x7db   :  { %v2280_v50 = vadd.f32 %v2279_v55, %v2142_v61  ;;  %v6103_v49 = vadd.f32 %v2320_v51, %v2150_v20  ;;  %v2281_v23 = vpop.f32.mrb[17].mxu1  ;;  %v2322_v31 = vpop.f32.mrb[21].mxu0 }
 0x7dc   :  { %v2282_v62 = vadd.f32 %v2281_v23, %v2146_v60  ;;  %v6105_v53 = vadd.f32 %v2322_v31, %v2154_v63  ;;  %v2283_v22 = vpop.f32.mrb[18].mxu1  ;;  %v2324_v57 = vpop.f32.mrb[22].mxu0 }
 0x7dd   :  { %v2331_v58 = vmax.f32 %v2280_v50, 0.0  ;;  %v2333_v19 = vmax.f32 %v6103_v49, 0.0  ;;  %v2284_v54 = vpop.f32.mrb[19].mxu1  ;;  %v2325_v56 = vpop.f32.mrb[23].mxu0 }
 0x7de   :  { %v2332_v30 = vmax.f32 %v2282_v62, 0.0  ;;  %v2334_v21 = vmax.f32 %v6105_v53, 0.0 }
 0x7df   :  { %5505 = dma.done.wait [#allocation4 + $0x1], 8192 }
 0x7e0   :  { %5506 = vsyncadd [#allocation4 + $0x1], 4294959104  ;;  %v2409_v29 = vpack.c.bf16 %v2332_v30, %v2332_v30  ;;  %v2405_v52 = vpack.c.bf16 %v2328_v48, %v2328_v48  ;;  %4557 = vmatpush3.bf16.msra.mxu1 %v5626_v0  ;;  %4601 = vmatpush3.bf16.msra.mxu0 %v5786_v32  ;;  %v2577_v0 = vld [vmem:[%s6615_s6] sm:$0xff]  ;;  %v2579_v8 = vld [vmem:[%s6615_s6 + $0x10] sm:$0xff]  ;;  %vm5524_vm1 = vmmov 0   ;;  %vm2586_vm2 = vcmask 261120  }
 0x7e1   :  { %4558 = vmatprep.subr.bf16.mxu1 %v5671_v9  ;;  %4602 = vmatprep.subr.bf16.mxu0 %v5831_v41  ;;  %v2580_v9 = vld [vmem:[%s6615_s6 + $0x18] sm:$0xff]  ;;  %v6659_v32 = vld [vmem:[#allocation47_spill] sm:$0xff]  ;;  %v2410_v57 = vpack.c.bf16 %v2333_v19, %v2333_v19  ;;  %v6677_v53 = vld [vmem:[#allocation38_spill] sm:$0xff]  ;;  %s5526_s24 = smov 96   ;;  %s5527_s8 = smov 32   ;;  %vm3269_vm4 = vcmask 27648  }
 0x7e2   :  { %2529 = vmatprep.mubr.bf16.mxu0 %v2409_v29  ;;  %2449 = vmatprep.mubr.bf16.mxu1 %v2405_v52  ;;  %v6666_v40 = vld [vmem:[#allocation41_spill] sm:$0xff]  ;;  %v4514_v19 = vld [vmem:[%s6615_s6 + $0x28] ss:$0 sm:$0xff]  ;;  %vm3285_vm5 = vcmask 1043456   ;;  %vm3281_vm6 = vcmask 31744   ;;  %vm3776_vm7 = vcmask 254976  }
 0x7e3   :  { %v6667_v41 = vld [vmem:[#allocation33_spill] sm:$0xff]  ;;  %vm3865_vm8 = vcmask 1041408   ;;  %vm3861_vm9 = vcmask 15360   ;;  %vm4198_vm10 = vcmask 33792   ;;  %s5530_s22 = smov [#allocation11]  }
 0x7e4   :  { %4559 = vmatpush3.bf16.msra.mxu1 %v5631_v1  ;;  %4603 = vmatpush3.bf16.msra.mxu0 %v5791_v33  ;;  %v2578_v1 = vld [vmem:[%s6615_s6 + $0x8] sm:$0xff]  ;;  %v6660_v33 = vmax.f32 %v6659_v32, 0.0  ;;  %v4513_v54 = vld [vmem:[%s6615_s6 + $0x20] ss:$0 sm:$0xff]  ;;  %v2690_v32 = vld [vmem:[%s6615_s6 + $0x38] sm:$0xff]  ;;  %s4257_s4 = sshll.u32 %s5530_s22, 4  ;;  %s4258_s4 = int_to_ptr.vmem [resolvable:$true] %s4257_s4 }
 0x7e5   :  { %4560 = vmatprep.subr.bf16.mxu1 %v5676_v10  ;;  %4604 = vmatprep.subr.bf16.mxu0 %v5836_v42  ;;  %v6650_v10 = vmax.f32 %v6094_v59, 0.0  ;;  %v6668_v42 = vld [vmem:[#allocation42_spill] sm:$0xff]  ;;  %s5455_s0 = scalar_lea.vmem %s4258_s4, 32  ;;  %p5460_p3 = scmp.lt.s32.totalorder %s4258_s4, %s4258_s4 }
 0x7e6   :  { %v6676_v59 = vld [vmem:[#allocation46_spill] sm:$0xff]  ;;  %p5456_p2 = scmp.ne.s32.totalorder %s4258_s4, %s5455_s0  ;;  %p5461_p4 = scmp.lt.s32.totalorder %s5455_s0, %s5455_s0 }
 0x7e8   :  { %4561 = vmatpush3.bf16.msra.mxu1 %v5636_v2  ;;  %4605 = vmatpush3.bf16.msra.mxu0 %v5796_v34  ;;  %v2408_v2 = vpack.c.bf16 %v2331_v58, %v2331_v58  ;;  %v6661_v34 = vld [vmem:[#allocation26_spill] sm:$0xff]  ;;  %v6675_v58 = vld [vmem:[#allocation37_spill] sm:$0xff]  ;;  %p5462_p5 = por %p5461_p4, %p5460_p3 }
 0x7e9   :  { %4562 = vmatprep.subr.bf16.mxu1 %v5681_v11  ;;  %4606 = vmatprep.subr.bf16.mxu0 %v5841_v43  ;;  %v4949_v11 = vpack.c.bf16 %v2580_v9, %v2579_v8  ;;  %v6669_v43 = vld [vmem:[#allocation34_spill] sm:$0xff] }
 0x7ea   :  { %p5463_p6 = pnand %p5462_p5, %p5456_p2 }
 0x7ec   :  { %4563 = vmatpush3.bf16.msra.mxu1 %v5641_v3  ;;  %4607 = vmatpush3.bf16.msra.mxu0 %v5801_v35  ;;  %v6649_v3 = vmax.f32 %v6090_v28, 0.0  ;;  %v2411_v35 = vpack.c.bf16 %v2334_v21, %v2334_v21  ;;  %v6674_v28 = vld [vmem:[#allocation45_spill] sm:$0xff] }
 0x7ed   :  { %4564 = vmatprep.subr.bf16.mxu1 %v5686_v12  ;;  %4608 = vmatprep.subr.bf16.mxu0 %v5846_v44  ;;  %v5525_v12 = vmov 0.0   ;;  %v6670_v44 = vld [vmem:[#allocation43_spill] sm:$0xff] }
 0x7f0   :  { %4565 = vmatpush3.bf16.msra.mxu1 %v5646_v4  ;;  %4609 = vmatpush3.bf16.msra.mxu0 %v5806_v36  ;;  %v2404_v4 = vpack.c.bf16 %v6649_v3, %v6649_v3  ;;  %v6662_v36 = vld [vmem:[#allocation39_spill] sm:$0xff] }
 0x7f1   :  { %4566 = vmatprep.subr.bf16.mxu1 %v5691_v13  ;;  %4610 = vmatprep.subr.bf16.mxu0 %v5851_v45  ;;  %v6170_v13 = vld [vmem:[%s6610_s1] sm:$0xf]  ;;  %v6671_v45 = vld [vmem:[#allocation35_spill] sm:$0xff] }
 0x7f4   :  { %4567 = vmatpush3.bf16.msra.mxu1 %v5651_v5  ;;  %4611 = vmatpush3.bf16.msra.mxu0 %v5811_v37  ;;  %v4946_v5 = vpack.c.bf16 %v2578_v1, %v2577_v0  ;;  %v6663_v37 = vld [vmem:[#allocation31_spill] sm:$0xff] }
 0x7f5   :  { %4568 = vmatprep.subr.bf16.mxu1 %v5696_v14  ;;  %4612 = vmatprep.subr.bf16.mxu0 %v5856_v46  ;;  %v6651_v14 = vld [vmem:[#allocation22_spill] sm:$0xff]  ;;  %v6672_v46 = vld [vmem:[#allocation44_spill] sm:$0xff] }
 0x7f8   :  { %4569 = vmatpush3.bf16.msra.mxu1 %v5656_v6  ;;  %4613 = vmatpush3.bf16.msra.mxu0 %v5816_v38  ;;  %v5523_v6 = vmov 0.0|0.0   ;;  %v6664_v38 = vld [vmem:[#allocation40_spill] sm:$0xff] }
 0x7f9   :  { %4570 = vmatprep.subr.bf16.mxu1 %v5701_v15  ;;  %4614 = vmatprep.subr.bf16.mxu0 %v5861_v47  ;;  %v6652_v15 = vld [vmem:[#allocation27_spill] sm:$0xff]  ;;  %v6673_v47 = vld [vmem:[#allocation36_spill] sm:$0xff] }
 0x7fc   :  { %4571 = vmatpush3.bf16.msra.mxu1 %v5661_v7  ;;  %4615 = vmatpush3.bf16.msra.mxu0 %v5821_v39  ;;  %v2407_v7 = vpack.c.bf16 %v6650_v10, %v6650_v10  ;;  %v6665_v39 = vld [vmem:[#allocation32_spill] sm:$0xff] }
 0x7fd   :  { %4578 = vmatprep.subr.bf16.mxu1 %v5746_v24  ;;  %4945 = vmatprep.subr.bf16.mxu0 %v5523_v6  ;;  %v6655_v24 = vld [vmem:[#allocation24_spill] sm:$0xff] }
 0x7ff   :  { %2530 = vmatmul.mubr.bf16.vlgmr.msra.gmra.mrb[24].mxu0 %v2408_v2  ;;  %2450 = vmatmul.mubr.bf16.vlgmr.msra.gmra.mrb[20].mxu1 %v2404_v4 }
 0x800   :  { %4579 = vmatpush3.bf16.msra.mxu1 %v5706_v16  ;;  %4947 = vmatpush3.bf16.msra.mxu0 %v4946_v5  ;;  %v6653_v16 = vld [vmem:[#allocation23_spill] sm:$0xff] }
 0x801   :  { %4580 = vmatprep.subr.bf16.mxu1 %v5751_v25  ;;  %4948 = vmatprep.subr.bf16.mxu0 %v5523_v6  ;;  %v6656_v25 = vld [vmem:[#allocation29_spill] sm:$0xff] }
 0x802   :  { %4746 = vmatprep.mubr.msk.f32.mxu0 %vm5524_vm1, %v5525_v12  ;;  %2489 = vmatprep.mubr.bf16.mxu1 %v2407_v7 }
 0x804   :  { %4581 = vmatpush3.bf16.msra.mxu1 %v5711_v17  ;;  %4950 = vmatpush3.bf16.msra.mxu0 %v4949_v11  ;;  %v6654_v17 = vld [vmem:[#allocation28_spill] sm:$0xff] }
 0x805   :  { %4582 = vmatprep.subr.bf16.mxu1 %v5756_v26  ;;  %4951 = vmatprep.subr.bf16.mxu0 %v5523_v6  ;;  %v6657_v26 = vld [vmem:[#allocation25_spill] sm:$0xff] }
 0x807   :  { %4747 = vmatmul.mubr.msk.f32.vlgmr.msra.gmra.mrb[28].mxu0 %vm2586_vm2, %v6170_v13 }
 0x808   :  { %4583 = vmatpush3.bf16.msra.mxu1 %v5716_v18  ;;  %4757 = vmatprep.mubr.msk.f32.mxu0 %vm5524_vm1, %v5525_v12  ;;  %v6658_v18 = vld [vmem:[#allocation30_spill] sm:$0xff] }
 0x809   :  { %4584 = vmatprep.subr.bf16.mxu1 %v5761_v27  ;;  %v2406_v27 = vpack.c.bf16 %v6660_v33, %v6660_v33  ;;  %v2859_v33 = vld [vmem:[%s6615_s6 + $0x58] sm:$0xff] }
 0x80c   :  { %4585 = vmatpush3.bf16.msra.mxu1 %v6651_v14 }
 0x80d   :  { %4586 = vmatprep.subr.bf16.mxu1 %v6652_v15 }
 0x810   :  { %4587 = vmatpush3.bf16.msra.mxu1 %v6653_v16 }
 0x811   :  { %4588 = vmatprep.subr.bf16.mxu1 %v6654_v17 }
 0x814   :  { %4589 = vmatpush3.bf16.msra.mxu1 %v6655_v24 }
 0x815   :  { %4590 = vmatprep.subr.bf16.mxu1 %v6656_v25 }
 0x818   :  { %4591 = vmatpush3.bf16.msra.mxu1 %v6657_v26 }
 0x819   :  { %4592 = vmatprep.subr.bf16.mxu1 %v6658_v18  ;;  %v2689_v18 = vld [vmem:[%s6615_s6 + $0x30] sm:$0xff] }
 0x81c   :  { %4593 = vmatpush3.bf16.msra.mxu1 %v6661_v34  ;;  %v2860_v34 = vld [vmem:[%s6615_s6 + $0x60] sm:$0xff] }
 0x81d   :  { %4622 = vmatprep.subr.bf16.mxu1 %v6662_v36  ;;  %v2692_v36 = vld [vmem:[%s6615_s6 + $0x48] sm:$0xff] }
 0x81f   :  { %2490 = vmatmul.mubr.bf16.vlgmr.msra.gmra.mrb[24].mxu1 %v2406_v27  ;;  %v4952_v27 = vpack.c.bf16 %v2690_v32, %v2689_v18  ;;  %v3106_v18 = vld [vmem:[%s6615_s6 + $0x150] sm:$0xff] }
 0x820   :  { %4623 = vmatpush3.bf16.msra.mxu1 %v6663_v37  ;;  %2569 = vmatprep.mubr.bf16.mxu1 %v2411_v35  ;;  %v2691_v35 = vld [vmem:[%s6615_s6 + $0x40] sm:$0xff]  ;;  %v4970_v37 = vpack.c.bf16 %v2860_v34, %v2859_v33  ;;  %v3107_v33 = vld [vmem:[%s6615_s6 + $0x158] sm:$0xff] }
 0x821   :  { %4624 = vmatprep.subr.bf16.mxu1 %v6664_v38  ;;  %v2861_v38 = vld [vmem:[%s6615_s6 + $0x68] sm:$0xff]  ;;  %4953 = vmatpush3.bf16.msra.mxu0 %v4952_v27  ;;  %v3108_v27 = vld [vmem:[%s6615_s6 + $0x160] sm:$0xff] }
 0x822   :  { %4954 = vmatprep.subr.bf16.mxu0 %v5523_v6  ;;  %v5000_v34 = vpack.c.bf16 %v3108_v27, %v3107_v33  ;;  %v3538_v27 = vld [vmem:[%s6615_s6 + $0x1b0] sm:$0xff] }
 0x824   :  { %4625 = vmatpush3.bf16.msra.mxu1 %v6665_v39  ;;  %v2862_v39 = vld [vmem:[%s6615_s6 + $0x70] sm:$0xff] }
 0x825   :  { %4626 = vmatprep.subr.bf16.mxu1 %v6666_v40  ;;  %v4955_v40 = vpack.c.bf16 %v2692_v36, %v2691_v35  ;;  %v3109_v35 = vld [vmem:[%s6615_s6 + $0x168] sm:$0xff]  ;;  %v3110_v36 = vld [vmem:[%s6615_s6 + $0x170] sm:$0xff] }
 0x827   :  { %4956 = vmatpush3.bf16.msra.mxu0 %v4955_v40 }
 0x828   :  { %4627 = vmatpush3.bf16.msra.mxu1 %v6667_v41  ;;  %4957 = vmatprep.subr.bf16.mxu0 %v5523_v6 }
 0x829   :  { %4628 = vmatprep.subr.bf16.mxu1 %v6668_v42  ;;  %v4973_v42 = vpack.c.bf16 %v2862_v39, %v2861_v38  ;;  %v4523_v38 = vld [vmem:[%s6615_s6 + $0x130] ss:$0 sm:$0xff] }
 0x82c   :  { %4629 = vmatpush3.bf16.msra.mxu1 %v6669_v43 }
 0x82d   :  { %4630 = vmatprep.subr.bf16.mxu1 %v6670_v44 }
 0x830   :  { %4631 = vmatpush3.bf16.msra.mxu1 %v6671_v45 }
 0x831   :  { %4632 = vmatprep.subr.bf16.mxu1 %v6672_v46 }
 0x834   :  { %4633 = vmatpush3.bf16.msra.mxu1 %v6673_v47 }
 0x835   :  { %4634 = vmatprep.subr.bf16.mxu1 %v6674_v28 }
 0x838   :  { %4635 = vmatpush3.bf16.msra.mxu1 %v6675_v58  ;;  %v2773_v58 = vld [vmem:[%s6615_s6 + $0xa8] sm:$0xff] }
 0x839   :  { %4636 = vmatprep.subr.bf16.mxu1 %v6676_v59  ;;  %v2774_v59 = vld [vmem:[%s6615_s6 + $0xb0] sm:$0xff] }
 0x83c   :  { %4637 = vmatpush3.bf16.msra.mxu1 %v6677_v53  ;;  %v4958_v53 = vpack.c.bf16 %v2774_v59, %v2773_v58  ;;  %v3189_v59 = vld [vmem:[%s6615_s6 + $0x290] sm:$0xf] }
 0x83d   :  { %4969 = vmatprep.subr.bf16.mxu1 %v5523_v6  ;;  %vm3267_vm3 = vcmp.gt.f32.partialorder %v3189_v59, 0.5  ;;  %v3625_v59 = vld [vmem:[%s6615_s6 + $0x200] sm:$0xff] }
 0x83f   :  { %2570 = vmatmul.mubr.bf16.vlgmr.msra.gmra.mrb[28].mxu1 %v2410_v57  ;;  %v2939_v57 = vld [vmem:[%s6615_s6 + $0xf8] sm:$0xff] }
 0x840   :  { %4787 = vmatprep.mubr.msk.f32.mxu1 %vm5524_vm1, %v5525_v12  ;;  %4971 = vmatpush3.bf16.msra.mxu1 %v4970_v37  ;;  %v5003_v37 = vpack.c.bf16 %v3110_v36, %v3109_v35  ;;  %v3618_v36 = vld [vmem:[%s6615_s6 + $0x1c8] sm:$0xff] }
 0x841   :  { %4972 = vmatprep.subr.bf16.mxu1 %v5523_v6 }
 0x844   :  { %4974 = vmatpush3.bf16.msra.mxu1 %v4973_v42 }
 0x845   :  { %4975 = vmatprep.subr.bf16.mxu1 %v5523_v6 }
 0x8d2   :  { %v4616_v48 = vpop.f32.mrb[24].mxu0  ;;  %v4572_v22 = vpop.f32.mrb[20].mxu1 }
 0x8d3   :  { %v4617_v61 = vpop.f32.mrb[25].mxu0  ;;  %v4573_v20 = vpop.f32.mrb[21].mxu1 }
 0x8d4   :  { %v4618_v60 = vadd.f32 %v4617_v61, %v4616_v48  ;;  %v4619_v63 = vpop.f32.mrb[26].mxu0  ;;  %v4574_v55 = vadd.f32 %v4573_v20, %v4572_v22  ;;  %v4575_v51 = vpop.f32.mrb[22].mxu1  ;;  %v2775_v22 = vld [vmem:[%s6615_s6 + $0xb8] sm:$0xff]  ;;  %v2776_v61 = vld [vmem:[%s6615_s6 + $0xc0] sm:$0xff] }
 0x8d5   :  { %v4620_v50 = vpop.f32.mrb[27].mxu0  ;;  %v4576_v49 = vpop.f32.mrb[23].mxu1  ;;  %v2940_v20 = vld [vmem:[%s6615_s6 + $0x100] sm:$0xff] }
 0x8d6   :  { %v2452_v21 = vadd.f32 %v4574_v55, %v4513_v54  ;;  %v4961_v55 = vpack.c.bf16 %v2776_v61, %v2775_v22  ;;  %v2777_v50 = vld [vmem:[%s6615_s6 + $0xc8] sm:$0xff]  ;;  %v2778_v49 = vld [vmem:[%s6615_s6 + $0xd0] sm:$0xff]  ;;  %v2779_v54 = vld [vmem:[%s6615_s6 + $0xd8] sm:$0xff] }
 0x8da   :  { %v2656_v23 = vpop.f32.mrb[28].mxu0 }
 0x8db   :  { %v2657_v31 = vadd.f32 %v4514_v19, %v2656_v23  ;;  %v4748_v62 = vpop.f32.mrb[29].mxu0  ;;  %v2942_v19 = vld [vmem:[%s6615_s6 + $0x110] sm:$0xff]  ;;  %v2943_v23 = vld [vmem:[%s6615_s6 + $0x118] sm:$0xff] }
 0x8dc   :  { %v4982_v62 = vpack.c.bf16 %v2943_v23, %v2942_v19 }
 0x8dd   :  { %2668 = vrot.lane.b32.xlu0 %v2657_v31, %s5516_s25 }
 0x8f2   :  { %v4594_v56 = vpop.f32.mrb[24].mxu1 }
 0x8f3   :  { %v4595_v30 = vpop.f32.mrb[25].mxu1 }
 0x8f4   :  { %v4596_v29 = vadd.f32 %v4595_v30, %v4594_v56  ;;  %v4597_v52 = vpop.f32.mrb[26].mxu1  ;;  %v2780_v56 = vld [vmem:[%s6615_s6 + $0xe0] sm:$0xff] }
 0x8f5   :  { %v4598_v0 = vpop.f32.mrb[27].mxu1  ;;  %v4967_v30 = vpack.c.bf16 %v2780_v56, %v2779_v54 }
 0x8f6   :  { %v2492_v1 = vadd.f32 %v4596_v29, %v2452_v21  ;;  %v2944_v21 = vld [vmem:[%s6615_s6 + $0x120] sm:$0xff]  ;;  %v2945_v29 = vld [vmem:[%s6615_s6 + $0x128] sm:$0xff] }
 0x8f7   :  { %v4985_v52 = vpack.c.bf16 %v2945_v29, %v2944_v21  ;;  %v3024_v0 = vld [vmem:[%s6615_s6 + $0x80] sm:$0xff] }
 0x8f8   :  { %v2532_v2 = vadd.f32 %v4618_v60, %v2492_v1  ;;  %v2941_v60 = vld [vmem:[%s6615_s6 + $0x108] sm:$0xff] }
 0x8f9   :  { %v4979_v51 = vpack.c.bf16 %v2941_v60, %v2940_v20  ;;  %v3025_v1 = vld [vmem:[%s6615_s6 + $0x88] sm:$0xff] }
 0x912   :  { %v4638_v3 = vpop.f32.mrb[28].mxu1 }
 0x913   :  { %v4639_v4 = vpop.f32.mrb[29].mxu1 }
 0x914   :  { %v4640_v5 = vadd.f32 %v4639_v4, %v4638_v3  ;;  %v4641_v8 = vpop.f32.mrb[30].mxu1  ;;  %v4521_v3 = vld [vmem:[%s6615_s6 + $0x78] ss:$0 sm:$0xff] }
 0x915   :  { %v4642_v9 = vpop.f32.mrb[31].mxu1  ;;  %v4988_v8 = vpack.c.bf16 %v3025_v1, %v3024_v0 }
 0x916   :  { %v2572_v10 = vadd.f32 %v4640_v5, %v2532_v2  ;;  %v4517_v2 = vld [vmem:[%s6615_s6 + $0x50] ss:$0 sm:$0xff] }
 0x918   :  { %v2660_v7 = vadd.f32 %v2657_v31, %v2572_v10  ;;  %v4964_v31 = vpack.c.bf16 %v2778_v49, %v2777_v50 }
 0x91a   :  { %v4516_v11 = vmul.f32 -1.442695, %v2660_v7 }
 0x91c   :  { %5393 = vpow2.f32 %v4516_v11 }
 0x926   :  { %v5394_v14 = vpop.eup %5393 }
 0x927   :  { %v2664_v15 = vadd.f32 1.0, %v5394_v14  ;;  %v3026_v14 = vld [vmem:[%s6615_s6 + $0x90] sm:$0xff] }
 0x929   :  { %5395 = vrcp.f32 %v2664_v15  ;;  %v3027_v15 = vld [vmem:[%s6615_s6 + $0x98] sm:$0xff] }
 0x933   :  { %v5396_v16 = vpop.eup %5395 }
 0x934   :  { %v2678_v44 = vsub.f32 1.0, %v5396_v16 }
 0x94f   :  { %v2669_v17 = vpop.permute.xlu0 %2668 }
 0x950   :  { %v2671_v24 = vmul.f32 %v5396_v16, %v2669_v17  ;;  %v3103_v17 = vld [vmem:[%s6615_s6 + $0x138] sm:$0xff] }
 0x952   :  { %2673 = vrot.lane.b32.xlu0 %v2671_v24, %s5516_s25  ;;  %v3104_v24 = vld [vmem:[%s6615_s6 + $0x140] sm:$0xff] }
 0x9c4   :  { %v2674_v25 = vpop.permute.xlu0 %2673 }
 0x9c5   :  { %v2676_v26 = vadd.f32 %v2674_v25, %v2572_v10  ;;  %v4994_v25 = vpack.c.bf16 %v3104_v24, %v3103_v17  ;;  %v3534_v17 = vld [vmem:[%s6615_s6 + $0x190] sm:$0xff] }
 0x9c7   :  { %5397 = vtanh.f32 %v2676_v26  ;;  %v3105_v26 = vld [vmem:[%s6615_s6 + $0x148] sm:$0xff] }
 0x9c8   :  { %v4997_v32 = vpack.c.bf16 %v3106_v18, %v3105_v26  ;;  %v3536_v18 = vld [vmem:[%s6615_s6 + $0x1a0] sm:$0xff] }
 0x9d1   :  { %v5398_v41 = vpop.eup %5397 }
 0x9d2   :  { %2680 = vrot.lane.b32.xlu1 %v5398_v41, %s5526_s24  ;;  %v4519_v41 = vld [vmem:[%s6615_s6 + $0xe8] ss:$0 sm:$0xff] }
 0x9d6   :  { %2684 = vrot.lane.b32.xlu1 %v6170_v13, %s5527_s8  ;;  %v2938_v13 = vld [vmem:[%s6615_s6 + $0xf0] sm:$0xff] }
 0x9d7   :  { %v4976_v48 = vpack.c.bf16 %v2939_v57, %v2938_v13 }
 0xa44   :  { %v2681_v43 = vpop.permute.xlu1 %2680 }
 0xa45   :  { %v2683_v46 = vmul.f32 %v2681_v43, %v2678_v44 }
 0xa48   :  { %v2685_v45 = vpop.permute.xlu1 %2684 }
 0xa49   :  { %v2687_v47 = vmul.f32 %v5396_v16, %v2685_v45  ;;  %v4991_v16 = vpack.c.bf16 %v3027_v15, %v3026_v14  ;;  %v3532_v15 = vld [vmem:[%s6615_s6 + $0x180] sm:$0xff] }
 0xa4b   :  { %v2688_v28 = vadd.f32 %v2687_v47, %v2683_v46  ;;  %v4525_v46 = vld [vmem:[%s6615_s6 + $0xa0] ss:$0 sm:$0xff] }
 0xa4d   :  { %2699 = vrot.lane.b32.xlu0 %v2688_v28, %s5526_s24 }
 0xabf   :  { %v2700_v63 = vpop.permute.xlu0 %2699 }
 0xac0   :  { %4758 = vmatmul.mubr.msk.f32.vlgmr.msra.gmra.mrb[30].mxu0 %vm2586_vm2, %v2700_v63  ;;  %4788 = vmatmul.mubr.msk.f32.vlgmr.msra.gmra.mrb[32].mxu1 %vm2586_vm2, %v2700_v63 }
 0xac1   :  { %4959 = vmatpush3.bf16.msra.mxu0 %v4958_v53  ;;  %4977 = vmatpush3.bf16.msra.mxu1 %v4976_v48  ;;  %v4527_v48 = vld [vmem:[%s6615_s6 + $0x178] ss:$0 sm:$0xff] }
 0xac2   :  { %4960 = vmatprep.subr.bf16.mxu0 %v5523_v6  ;;  %4978 = vmatprep.subr.bf16.mxu1 %v5523_v6 }
 0xac3   :  { %4776 = vmatprep.mubr.msk.f32.mxu0 %vm5524_vm1, %v5525_v12  ;;  %4806 = vmatprep.mubr.msk.f32.mxu1 %vm5524_vm1, %v5525_v12 }
 0xac5   :  { %4962 = vmatpush3.bf16.msra.mxu0 %v4961_v55  ;;  %4980 = vmatpush3.bf16.msra.mxu1 %v4979_v51 }
 0xac6   :  { %4963 = vmatprep.subr.bf16.mxu0 %v5523_v6  ;;  %4981 = vmatprep.subr.bf16.mxu1 %v5523_v6 }
 0xac9   :  { %4965 = vmatpush3.bf16.msra.mxu0 %v4964_v31  ;;  %4983 = vmatpush3.bf16.msra.mxu1 %v4982_v62 }
 0xaca   :  { %4966 = vmatprep.subr.bf16.mxu0 %v5523_v6  ;;  %4984 = vmatprep.subr.bf16.mxu1 %v5523_v6 }
 0xacd   :  { %4968 = vmatpush3.bf16.msra.mxu0 %v4967_v30  ;;  %4986 = vmatpush3.bf16.msra.mxu1 %v4985_v52 }
 0xace   :  { %4987 = vmatprep.subr.bf16.mxu0 %v5523_v6  ;;  %4839 = vmatprep.subr.mxu1 %v5525_v12 }
 0xb93   :  { %v2769_v4 = vpop.f32.mrb[30].mxu0  ;;  %v2934_v5 = vpop.f32.mrb[32].mxu1 }
 0xb94   :  { %v2770_v9 = vadd.f32 %v4517_v2, %v2769_v4  ;;  %v2935_v10 = vadd.f32 %v4521_v3, %v2934_v5  ;;  %v4759_v7 = vpop.f32.mrb[31].mxu0  ;;  %v4789_v11 = vpop.f32.mrb[33].mxu1 }
 0xb96   :  { %4777 = vmatmul.mubr.msk.f32.vlgmr.msra.gmra.mrb[32].mxu0 %vm426_vm0, %v2770_v9  ;;  %4807 = vmatmul.mubr.msk.f32.vlgmr.msra.gmra.mrb[34].mxu1 %vm426_vm0, %v2935_v10 }
 0xb97   :  { %4989 = vmatpush3.bf16.msra.mxu0 %v4988_v8  ;;  %4817 = vmatprep.mubr.msk.f32.mxu0 %vm5524_vm1, %v5525_v12 }
 0xb98   :  { %4990 = vmatprep.subr.bf16.mxu0 %v5523_v6  ;;  %4841 = vmatprep.mubr.msk.f32.mxu1 %vm5524_vm1, %v5525_v12 }
 0xb9b   :  { %4992 = vmatpush3.bf16.msra.mxu0 %v4991_v16  ;;  %v3533_v16 = vld [vmem:[%s6615_s6 + $0x188] sm:$0xff] }
 0xb9c   :  { %4993 = vmatprep.subr.bf16.mxu0 %v5523_v6  ;;  %v5006_v24 = vpack.c.bf16 %v3533_v16, %v3532_v15 }
 0xb9e   :  { %4818 = vmatmul.mubr.msk.f32.vlgmr.msra.gmra.mrb[34].mxu0 %vm2586_vm2, %v2700_v63 }
 0xb9f   :  { %4995 = vmatpush3.bf16.msra.mxu0 %v4994_v25  ;;  %4836 = vmatprep.mubr.msk.f32.mxu0 %vm5524_vm1, %v5525_v12  ;;  %v3535_v25 = vld [vmem:[%s6615_s6 + $0x198] sm:$0xff] }
 0xba0   :  { %4996 = vmatprep.subr.bf16.mxu0 %v5523_v6  ;;  %v5009_v26 = vpack.c.bf16 %v3535_v25, %v3534_v17  ;;  %v4112_v17 = vld [vmem:[%s6615_s6 + $0x278] sm:$0xff] }
 0xba3   :  { %4998 = vmatpush3.bf16.msra.mxu0 %v4997_v32  ;;  %v3537_v32 = vld [vmem:[%s6615_s6 + $0x1a8] sm:$0xff] }
 0xba4   :  { %4999 = vmatprep.subr.bf16.mxu0 %v5523_v6  ;;  %v5012_v33 = vpack.c.bf16 %v3537_v32, %v3536_v18 }
 0xba7   :  { %5001 = vmatpush3.bf16.msra.mxu0 %v5000_v34  ;;  %v3539_v34 = vld [vmem:[%s6615_s6 + $0x1b8] sm:$0xff] }
 0xba8   :  { %5002 = vmatprep.subr.bf16.mxu0 %v5523_v6  ;;  %v5015_v35 = vpack.c.bf16 %v3539_v34, %v3538_v27  ;;  %v5528_v34 = vmov 0  }
 0xba9   :  { %5392 = vset.pattern.permute.xlu0 %v5528_v34 }
 0xbab   :  { %5004 = vmatpush3.bf16.msra.mxu0 %v5003_v37  ;;  %v3619_v37 = vld [vmem:[%s6615_s6 + $0x1d0] sm:$0xff] }
 0xbac   :  { %5005 = vmatprep.subr.bf16.mxu0 %v5523_v6 }
 0xc69   :  { %v2855_v39 = vpop.f32.mrb[32].mxu0  ;;  %v3020_v40 = vpop.f32.mrb[34].mxu1 }
 0xc6a   :  { %v3021_v42 = vadd.f32 %v4523_v38, %v3020_v40  ;;  %v4778_v43 = vpop.f32.mrb[33].mxu0  ;;  %v4808_v44 = vpop.f32.mrb[35].mxu1  ;;  %v2856_v45 = vadd.f32 %v4519_v41, %v2855_v39  ;;  %v3620_v38 = vld [vmem:[%s6615_s6 + $0x1d8] sm:$0xff]  ;;  %v5018_v39 = vpack.c.bf16 %v3619_v37, %v3618_v36  ;;  %v3621_v40 = vld [vmem:[%s6615_s6 + $0x1e0] sm:$0xff] }
 0xc6b   :  { %v5021_v41 = vpack.c.bf16 %v3621_v40, %v3620_v38  ;;  %v3623_v43 = vld [vmem:[%s6615_s6 + $0x1f0] sm:$0xff]  ;;  %v4551_v38 = vld [vmem:[%s6615_s6 + $0x260] ss:$0 sm:$0xff] }
 0xc6c   :  { %4840 = vmatpush3.xpose.msk.msra.mxu1 %vm2586_vm2, %v3021_v42 }
 0xc6d   :  { %4844 = vmatprep.subr.mxu1 %v5525_v12 }
 0xc6f   :  { %4842 = vmatmul.mubr.msk.f32.vlgmr.msra.gmra.mrb[36].mxu1 %vm2586_vm2, %v2856_v45 }
 0xc70   :  { %4846 = vmatprep.mubr.msk.f32.mxu1 %vm5524_vm1, %v5525_v12 }
 0xc71   :  { %v3099_v47 = vpop.f32.mrb[34].mxu0 }
 0xc72   :  { %v3100_v28 = vadd.f32 %v4525_v46, %v3099_v47  ;;  %v4819_v58 = vpop.f32.mrb[35].mxu0 }
 0xc73   :  { %v3624_v58 = vld [vmem:[%s6615_s6 + $0x1f8] sm:$0xff] }
 0xc74   :  { %4837 = vmatmul.mubr.msk.f32.vlgmr.msra.gmra.mrb[36].mxu0 %vm426_vm0, %v3100_v28 }
 0xc75   :  { %4875 = vmatprep.mubr.msk.f32.mxu0 %vm5524_vm1, %v5525_v12  ;;  %5007 = vmatpush3.bf16.msra.mxu0 %v5006_v24  ;;  %v4113_v24 = vld [vmem:[%s6615_s6 + $0x280] sm:$0xff] }
 0xc76   :  { %5008 = vmatprep.subr.bf16.mxu0 %v5523_v6  ;;  %v5045_v25 = vpack.c.bf16 %v4113_v24, %v4112_v17 }
 0xc79   :  { %5010 = vmatpush3.bf16.msra.mxu0 %v5009_v26  ;;  %v4550_v26 = vld [vmem:[%s6615_s6 + $0x258] ss:$0 sm:$0xff] }
 0xc7a   :  { %5011 = vmatprep.subr.bf16.mxu0 %v5523_v6 }
 0xc7d   :  { %5013 = vmatpush3.bf16.msra.mxu0 %v5012_v33 }
 0xc7e   :  { %5014 = vmatprep.subr.bf16.mxu0 %v5523_v6 }
 0xc81   :  { %5016 = vmatpush3.bf16.msra.mxu0 %v5015_v35 }
 0xc82   :  { %4897 = vmatprep.subr.mxu0 %v5525_v12 }
 0xd42   :  { %v3262_v13 = vpop.f32.mrb[36].mxu1 }
 0xd43   :  { %v3266_v57 = vmul.f32 0.17677669, %v3262_v13  ;;  %v4843_v53 = vpop.f32.mrb[37].mxu1  ;;  %v5027_v13 = vpack.c.bf16 %v3625_v59, %v3624_v58 }
 0xd45   :  { %v3268_v22 = vsel %vm3267_vm3, %v3266_v57, -1e+30  ;;  %v4537_v57 = vld [vmem:[%s6615_s6 + $0x1c0] ss:$0 sm:$0xff] }
 0xd46   :  { %v3270_v61 = vsel %vm3269_vm4, %v3268_v22, -inf }
 0xd47   :  { %v3185_v20 = vpop.f32.mrb[36].mxu0  ;;  %3271 = vmax.xlane.f32.xlu1 %v3270_v61  ;;  %v3779_v61 = vld [vmem:[%s6615_s6 + $0x208] sm:$0xff] }
 0xd48   :  { %v3186_v60 = vadd.f32 %v4527_v48, %v3185_v20  ;;  %v4838_v63 = vpop.f32.mrb[37].mxu0  ;;  %v3780_v20 = vld [vmem:[%s6615_s6 + $0x210] sm:$0xff] }
 0xd49   :  { %v5030_v63 = vpack.c.bf16 %v3780_v20, %v3779_v61 }
 0xd4a   :  { %4845 = vmatpush3.msk.msra.mxu1 %vm3285_vm5, %v3186_v60 }
 0xd4b   :  { %4849 = vmatprep.subr.mxu1 %v5525_v12 }
 0xd58   :  { %3359 = vrot.lane.b32.xlu1 %v2856_v45, %s5526_s24 }
 0xdd4   :  { %v3272_v55 = vpop.xlane.xlu1 %3271 }
 0xdd5   :  { %v3273_v51 = vsub.f32 %v3268_v22, %v3272_v55  ;;  %v3782_v55 = vld [vmem:[%s6615_s6 + $0x220] sm:$0xff] }
 0xdd7   :  { %v3274_v50 = vmul.f32 1.442695, %v3273_v51 }
 0xdd8   :  { %v3360_v56 = vpop.permute.xlu1 %3359 }
 0xdd9   :  { %5399 = vpow2.f32 %v3274_v50  ;;  %v3699_v50 = vld [vmem:[%s6615_s6 + $0x298] sm:$0x3] }
 0xde3   :  { %v5400_v49 = vpop.eup %5399 }
 0xde4   :  { %v3276_v19 = vsel %vm3269_vm4, %v5400_v49, 0.0 }
 0xde5   :  { %3277 = vadd.xlane.f32.xlu0 %v3276_v19 }
 0xdfb   :  { %3361 = vrot.lane.b32.xlu0 %v3021_v42, %s5526_s24  ;;  %v3622_v42 = vld [vmem:[%s6615_s6 + $0x1e8] sm:$0xff] }
 0xdfc   :  { %v5024_v44 = vpack.c.bf16 %v3623_v43, %v3622_v42 }
 0xe72   :  { %v3278_v23 = vpop.xlane.xlu0 %3277 }
 0xe73   :  { %5401 = vrcp.f32 %v3278_v23 }
 0xe76   :  { %v3362_v54 = vpop.permute.xlu0 %3361 }
 0xe7d   :  { %v5402_v31 = vpop.eup %5401 }
 0xe7e   :  { %v3280_v62 = vmul.f32 %v5402_v31, %v5400_v49 }
 0xe80   :  { %4847 = vmatmul.mubr.msk.f32.vlgmr.msra.gmra.mrb[38].mxu1 %vm3281_vm6, %v3280_v62  ;;  %v4542_v62 = vld [vmem:[%s6615_s6 + $0x228] ss:$0 sm:$0xff] }
 0xe81   :  { %4850 = vmatpush3.xpose.msk.msra.mxu1 %vm2586_vm2, %v3362_v54  ;;  %4851 = vmatprep.mubr.msk.f32.mxu1 %vm5524_vm1, %v5525_v12  ;;  %v3940_v54 = vld [vmem:[%s6615_s6 + $0x230] sm:$0xff] }
 0xe82   :  { %4854 = vmatprep.subr.mxu1 %v5525_v12 }
 0xe84   :  { %4852 = vmatmul.mubr.msk.f32.vlgmr.msra.gmra.mrb[40].mxu1 %vm2586_vm2, %v3360_v56  ;;  %v3941_v56 = vld [vmem:[%s6615_s6 + $0x238] sm:$0xff] }
 0xe85   :  { %4856 = vmatprep.mubr.msk.f32.mxu1 %vm5524_vm1, %v5525_v12 }
 0xf53   :  { %v6414_v30 = vpop.f32.mrb[38].mxu1 }
 0xf54   :  { %v4848_v21 = vpop.f32.mrb[39].mxu1 }
 0xf57   :  { %v3433_v29 = vpop.f32.mrb[40].mxu1 }
 0xf58   :  { %v3437_v52 = vmul.f32 0.17677669, %v3433_v29  ;;  %v4853_v0 = vpop.f32.mrb[41].mxu1 }
 0xf59   :  { %v5036_v0 = vpack.c.bf16 %v3941_v56, %v3940_v54 }
 0xf5a   :  { %v3438_v1 = vsel %vm3267_vm3, %v3437_v52, -1e+30  ;;  %v3778_v52 = vld [vmem:[%s6611_s2] sm:$0x3] }
 0xf5b   :  { %v3439_v2 = vsel %vm3269_vm4, %v3438_v1, -inf }
 0xf5c   :  { %3440 = vmax.xlane.f32.xlu1 %v3439_v2  ;;  %v3943_v2 = vld [vmem:[%s6615_s6 + $0x248] sm:$0xff] }
 0xfe9   :  { %v3441_v3 = vpop.xlane.xlu1 %3440 }
 0xfea   :  { %v3442_v4 = vsub.f32 %v3438_v1, %v3441_v3  ;;  %v3942_v1 = vld [vmem:[%s6615_s6 + $0x240] sm:$0xff] }
 0xfeb   :  { %v5039_v3 = vpack.c.bf16 %v3943_v2, %v3942_v1 }
 0xfec   :  { %v3443_v5 = vmul.f32 1.442695, %v3442_v4 }
 0xfee   :  { %5403 = vpow2.f32 %v3443_v5 }
 0xff8   :  { %v5404_v8 = vpop.eup %5403 }
 0xff9   :  { %v3445_v9 = vsel %vm3269_vm4, %v5404_v8, 0.0 }
 0xffa   :  { %3446 = vadd.xlane.f32.xlu0 %v3445_v9  ;;  %v4546_v9 = vld [vmem:[%s6615_s6 + $0x250] ss:$0 sm:$0xff] }
0x1010   :  { %3450 = vrot.lane.b32.xlu0 %v3186_v60, %s5526_s24  ;;  %v3781_v60 = vld [vmem:[%s6615_s6 + $0x218] sm:$0xff] }
0x1011   :  { %v5033_v51 = vpack.c.bf16 %v3782_v55, %v3781_v60 }
0x1087   :  { %v3447_v10 = vpop.xlane.xlu0 %3446 }
0x1088   :  { %5405 = vrcp.f32 %v3447_v10  ;;  %v4110_v10 = vld [vmem:[%s6615_s6 + $0x268] sm:$0xff] }
0x108b   :  { %v3451_v7 = vpop.permute.xlu0 %3450 }
0x108c   :  { %4855 = vmatpush3.msk.msra.mxu1 %vm3285_vm5, %v3451_v7  ;;  %v4111_v7 = vld [vmem:[%s6615_s6 + $0x270] sm:$0xff] }
0x108d   :  { %5017 = vmatprep.subr.bf16.mxu1 %v5523_v6  ;;  %v5042_v16 = vpack.c.bf16 %v4111_v7, %v4110_v10 }
0x1092   :  { %v5406_v11 = vpop.eup %5405 }
0x1093   :  { %v3449_v14 = vmul.f32 %v5406_v11, %v5404_v8 }
0x1095   :  { %4857 = vmatmul.mubr.msk.f32.vlgmr.msra.gmra.mrb[42].mxu1 %vm3281_vm6, %v3449_v14 }
0x1096   :  { %4894 = vmatprep.mubr.msk.f32.mxu1 %vm5524_vm1, %v5525_v12  ;;  %5019 = vmatpush3.bf16.msra.mxu1 %v5018_v39 }
0x1097   :  { %5020 = vmatprep.subr.bf16.mxu1 %v5523_v6 }
0x109a   :  { %5022 = vmatpush3.bf16.msra.mxu1 %v5021_v41 }
0x109b   :  { %5023 = vmatprep.subr.bf16.mxu1 %v5523_v6 }
0x109e   :  { %5025 = vmatpush3.bf16.msra.mxu1 %v5024_v44 }
0x109f   :  { %5026 = vmatprep.subr.bf16.mxu1 %v5523_v6 }
0x10a2   :  { %5028 = vmatpush3.bf16.msra.mxu1 %v5027_v13 }
0x10a3   :  { %5029 = vmatprep.subr.bf16.mxu1 %v5523_v6 }
0x1168   :  { %v3523_v45 = vpop.f32.mrb[42].mxu1 }
0x1169   :  { %3528 = vrot.lane.b32.xlu1 %v3523_v45, %s5527_s8  ;;  %v4858_v46 = vpop.f32.mrb[43].mxu1 }
0x11db   :  { %v3529_v47 = vpop.permute.xlu1 %3528 }
0x11dc   :  { %v3531_v28 = vsel %vm2586_vm2, %v6414_v30, %v3529_v47  ;;  %v6678_v47 = vlaneseq }
0x11dd   :  { %4876 = vmatmul.mubr.msk.f32.vlgmr.msra.gmra.mrb[38].mxu0 %vm426_vm0, %v3531_v28 }
0x11de   :  { %4899 = vmatprep.mubr.msk.f32.mxu0 %vm5524_vm1, %v5525_v12  ;;  %v4219_v28 = vand.u32 127, %v6678_v47 }
0x12b0   :  { %v3614_v53 = vpop.f32.mrb[38].mxu0 }
0x12b1   :  { %v3615_v48 = vadd.f32 %v4537_v57, %v3614_v53  ;;  %v4877_v22 = vpop.f32.mrb[39].mxu0 }
0x12b3   :  { %4895 = vmatmul.mubr.msk.f32.vlgmr.msra.gmra.mrb[44].mxu1 %vm426_vm0, %v3615_v48 }
0x12b4   :  { %4910 = vmatprep.mubr.msk.f32.mxu1 %vm5524_vm1, %v5525_v12  ;;  %5031 = vmatpush3.bf16.msra.mxu1 %v5030_v63 }
0x12b5   :  { %5032 = vmatprep.subr.bf16.mxu1 %v5523_v6 }
0x12b8   :  { %5034 = vmatpush3.bf16.msra.mxu1 %v5033_v51 }
0x12b9   :  { %4929 = vmatprep.subr.mxu1 %v5525_v12 }
0x1386   :  { %v3695_v49 = vpop.f32.mrb[44].mxu1 }
0x1387   :  { %v4896_v19 = vpop.f32.mrb[45].mxu1  ;;  %4898 = vmatpush3.msk.msra.mxu0 %vm3285_vm5, %v3695_v49 }
0x1388   :  { %4900 = vmatmul.mubr.msk.f32.vlgmr.msra.gmra.mrb[40].mxu0 %vm3281_vm6, %v3699_v50  ;;  %4913 = vmatprep.subr.mxu0 %v5525_v12 }
0x1389   :  { %4915 = vmatprep.mubr.msk.f32.mxu0 %vm5524_vm1, %v5525_v12 }
0x145b   :  { %v3772_v23 = vpop.f32.mrb[40].mxu0 }
0x145c   :  { %v4901_v31 = vpop.f32.mrb[41].mxu0  ;;  %4911 = vmatmul.mubr.msk.f32.vlgmr.msra.gmra.mrb[46].mxu1 %vm2586_vm2, %v3772_v23  ;;  %3777 = vst.msk [vmem:[#allocation11] sm:$0x3] %vm3776_vm7, %v3772_v23 }
0x145d   :  { %4931 = vmatprep.mubr.msk.f32.mxu1 %vm5524_vm1, %v5525_v12 }
0x152f   :  { %v3857_v30 = vpop.f32.mrb[46].mxu1 }
0x1530   :  { %v3858_v21 = vadd.f32 %v4542_v62, %v3857_v30  ;;  %v4912_v29 = vpop.f32.mrb[47].mxu1 }
0x1532   :  { %4914 = vmatpush3.msk.msra.mxu0 %vm3865_vm8, %v3858_v21 }
0x1533   :  { %4916 = vmatmul.mubr.msk.f32.vlgmr.msra.gmra.mrb[42].mxu0 %vm3861_vm9, %v3778_v52  ;;  %5035 = vmatprep.subr.bf16.mxu0 %v5523_v6 }
0x1534   :  { %5037 = vmatpush3.bf16.msra.mxu0 %v5036_v0  ;;  %4926 = vmatprep.mubr.msk.f32.mxu0 %vm5524_vm1, %v5525_v12 }
0x1535   :  { %5038 = vmatprep.subr.bf16.mxu0 %v5523_v6 }
0x1538   :  { %5040 = vmatpush3.bf16.msra.mxu0 %v5039_v3 }
0x1606   :  { %v3935_v4 = vpop.f32.mrb[42].mxu0 }
0x1607   :  { %v3939_v5 = vmax.f32 %v3935_v4, 0.0  ;;  %v4917_v8 = vpop.f32.mrb[43].mxu0 }
0x1609   :  { %4927 = vmatmul.mubr.msk.f32.vlgmr.msra.gmra.mrb[44].mxu0 %vm2586_vm2, %v3939_v5 }
0x16dc   :  { %v4018_v11 = vpop.f32.mrb[44].mxu0 }
0x16dd   :  { %v4019_v14 = vadd.f32 %v4546_v9, %v4018_v11  ;;  %v4928_v15 = vpop.f32.mrb[45].mxu0 }
0x16df   :  { %4930 = vmatpush3.msk.msra.mxu1 %vm3865_vm8, %v4019_v14 }
0x16e0   :  { %4932 = vmatmul.mubr.msk.f32.vlgmr.msra.gmra.mrb[48].mxu1 %vm3861_vm9, %v3778_v52  ;;  %5041 = vmatprep.subr.bf16.mxu1 %v5523_v6 }
0x16e1   :  { %5043 = vmatpush3.bf16.msra.mxu1 %v5042_v16  ;;  %4942 = vmatprep.mubr.msk.f32.mxu1 %vm5524_vm1, %v5525_v12  ;;  %v4552_v12 = vld [vmem:[%s6615_s6 + $0x288] ss:$0 sm:$0xff]  ;;  %s5529_s6 = smov [#allocation10]  }
0x16e2   :  { %5044 = vmatprep.subr.bf16.mxu1 %v5523_v6  ;;  %s4245_s25 = sshll.u32 %s5529_s6, 4  ;;  %s4246_s25 = int_to_ptr.vmem [resolvable:$true] %s4245_s25 }
0x16e5   :  { %5046 = vmatpush3.bf16.msra.mxu1 %v5045_v25 }
0x17b3   :  { %v4091_v18 = vpop.f32.mrb[48].mxu1 }
0x17b4   :  { %v4100_v32 = vmul.f32 %v4550_v26, %v4091_v18  ;;  %4943 = vmatmul.mubr.msk.f32.vlgmr.msra.gmra.mrb[50].mxu1 %vm2586_vm2, %v4091_v18  ;;  %v4933_v33 = vpop.f32.mrb[49].mxu1 }
0x17b6   :  { %v4101_v27 = vsel %vm3776_vm7, %v4100_v32, 0.0 }
0x17b7   :  { %4102 = vadd.xlane.f32.xlu1 %v4101_v27 }
0x1844   :  { %v4103_v39 = vpop.xlane.xlu1 %4102 }
0x1845   :  { %v4109_v40 = vadd.f32 %v4551_v38, %v4103_v39 }
0x1887   :  { %v4188_v6 = vpop.f32.mrb[50].mxu1 }
0x1888   :  { %v4189_v35 = vadd.f32 %v4552_v12, %v4188_v6  ;;  %v4944_v36 = vpop.f32.mrb[51].mxu1 }
0x188a   :  { %v4199_v37 = vsel %vm4198_vm10, %v4189_v35, 0.0 }
0x188b   :  { %4200 = vadd.xlane.f32.xlu0 %v4199_v37 }
0x18a1   :  { %4194 = vperm.xlu0 %5392, %v4109_v40  }
0x1918   :  { %v4201_v41 = vpop.xlane.xlu0 %4200 }
0x1919   :  { %v4203_v43 = vmul.f32 0.2, %v4201_v41 }
0x1920   :  { %v4195_v42 = vpop.permute.xlu0 %4194 }
0x1921   :  { %v4197_v44 = vadd.f32 %v4195_v42, %v4189_v35 }
0x1923   :  { %v4204_v45 = vsub.f32 %v4197_v44, %v4203_v43 }
0x1925   :  { %v4205_v46 = vsel %vm4198_vm10, %v4204_v45, -inf }
0x1926   :  { %4206 = vmax.xlane.f32.xlu1 %v4205_v46 }
0x19b3   :  { %v4207_v58 = vpop.xlane.xlu1 %4206 }
0x19b4   :  { %v4208_v59 = vsub.f32 %v4204_v45, %v4207_v58  ;;  %vm4220_vm11 = vcmp.eq.f32.partialorder %v4204_v45, %v4207_v58 }
0x19b5   :  { %v4221_v13 = vsel %vm4220_vm11, %v4219_v28, 2147483647 }
0x19b6   :  { %v4209_v57 = vmul.f32 1.442695, %v4208_v59  ;;  %v4222_v53 = vsel %vm4198_vm10, %v4221_v13, 2147483647 }
0x19b7   :  { %v4224_v48 = vshra.s32 %v4222_v53, 16  ;;  %v4223_v60 = vand.u32 65535, %v4222_v53 }
0x19b8   :  { %5407 = vpow2.f32 %v4209_v57 }
0x19b9   :  { %v4226_v22 = vcvt.s32.f32 %v4224_v48  ;;  %v4225_v55 = vcvt.s32.f32 %v4223_v60 }
0x19bb   :  { %4227 = vmin.xlane.f32.xlu1 %v4226_v22 }
0x19c2   :  { %v5408_v61 = vpop.eup %5407 }
0x19c3   :  { %v4211_v20 = vsel %vm4198_vm10, %v5408_v61, 0.0 }
0x19c4   :  { %4212 = vadd.xlane.f32.xlu1 %v4211_v20 }
0x1a48   :  { %v4228_v63 = vpop.xlane.xlu1 %4227 }
0x1a49   :  { %vm4229_vm12 = vcmp.eq.f32.partialorder %v4226_v22, %v4228_v63 }
0x1a4a   :  { %v4230_v51 = vsel %vm4229_vm12, %v4225_v55, inf }
0x1a4b   :  { %4231 = vmin.xlane.f32.xlu1 %v4230_v51 }
0x1a51   :  { %v4213_v50 = vpop.xlane.xlu1 %4212 }
0x1a52   :  { %5409 = vlog2.f32 %v4213_v50 }
0x1a5c   :  { %v5410_v49 = vpop.eup %5409 }
0x1a5d   :  { %v4215_v19 = vmul.f32 0.6931472, %v5410_v49 }
0x1a5e   :  { %5466 = shalt.err (!%p5463_p6)
}
0x1a5f   :  { %s5467_s23 = scalar_lea.hbm %s6620_s11, 32 }
0x1a60   :  { %p5468_p7 = scmp.ne.s32.totalorder %s6620_s11, %s5467_s23  ;;  %p5471_p8 = scmp.lt.u32.totalorder %s5467_s23, %s6620_s11 }
0x1a62   :  { %p5473_p9 = pnand %p5471_p8, %p5468_p7 }
0x1a64   :  { %5476 = shalt.err (!%p5473_p9)
}
0x1a65   :  { %4260 = dma.vmem_to_hbm [thread:$0]  %s4258_s4, 32, %s6620_s11, [#allocation12]   ;;  %v4216_v23 = vsub.f32 %v4208_v59, %v4215_v19 }
0x1a66   :  { %s5477_s12 = scalar_lea.vmem %s4246_s25, 32  ;;  %p5482_p11 = scmp.lt.s32.totalorder %s4246_s25, %s4246_s25 }
0x1a67   :  { %4217 = vst.msk [vmem:[#allocation10] sm:$0x3] %vm4198_vm10, %v4216_v23  ;;  %p5478_p10 = scmp.ne.s32.totalorder %s4246_s25, %s5477_s12  ;;  %p5483_p12 = scmp.lt.s32.totalorder %s5477_s12, %s5477_s12 }
0x1a69   :  { %p5484_p13 = por %p5483_p12, %p5482_p11 }
0x1a6b   :  { %p5485_p0 = pnand %p5484_p13, %p5478_p10 }
0x1a6d   :  { %5488 = shalt.err (!%p5485_p0)
}
0x1a6e   :  { %s5489_s5 = scalar_lea.hbm %s6618_s9, 32 }
0x1a6f   :  { %p5490_p1 = scmp.ne.s32.totalorder %s6618_s9, %s5489_s5  ;;  %p5493_p2 = scmp.lt.u32.totalorder %s5489_s5, %s6618_s9 }
0x1a71   :  { %p5495_p3 = pnand %p5493_p2, %p5490_p1 }
0x1a73   :  { %5498 = shalt.err (!%p5495_p3)
}
0x1a74   :  { %4248 = dma.vmem_to_hbm [thread:$0]  %s4246_s25, 32, %s6618_s9, [#allocation7]   ;;  %v4234_v31 = vcvt.f32.s32 %v4228_v63  ;;  %vm4237_vm13 = vcmask 1024  }
0x1a76   :  { %v4235_v54 = vshll.u32 %v4234_v31, 16 }
0x1ad8   :  { %v4232_v62 = vpop.xlane.xlu1 %4231 }
0x1ad9   :  { %v4233_v56 = vcvt.f32.s32 %v4232_v62 }
0x1adb   :  { %v4236_v30 = vadd.s32 %v4235_v54, %v4233_v56 }
0x1add   :  { %4238 = vst.msk [vmem:[%s6619_s10] sm:$0x3] %vm4237_vm13, %v4236_v30 }
0x1ade   :  { %5507 = dma.done.wait [#allocation7], 32  }
0x1adf   :  { %5508 = vsyncadd [#allocation7], 4294967264 }
0x1ae0   :  { %5509 = dma.done.wait [#allocation12], 32  }
0x1ae1   :  { %5510 = vsyncadd [#allocation12], 4294967264 }
0x1ae2   :  { %4269 = vsyncpa [#allocation6], 1 }
0x1ae3   :  { %4270 = vsyncpa [#allocation9], 1 }
0x1ae4   :  { %4271 = vsyncpa [#allocation7], 1 }
0x1ae5   :  { %4272 = vsyncpa [#allocation12], 1 }
0x1ae6   :  { %4273 = vsyncmov [#allocation4] }
0x1ae9   :  { %s4274_s9 = vpop.sfrf %4273 }
0x1aea   :  { %p4554_p4 = scmp.ne.s32.totalorder %s4274_s9, 0 }
0x1aec   :  { %4278 = shalt.err (%p4554_p4)  }
0x1aed   :  { %4280 = vsyncmov [#allocation4 + $0x1] }
0x1af0   :  { %s4281_s19 = vpop.sfrf %4280 }
0x1af1   :  { %p4555_p5 = scmp.ne.s32.totalorder %s4281_s19, 0 }
0x1af3   :  { %4285 = shalt.err (%p4555_p5)  }

</bundles_post_ra>
